<compile_context>
chip_gen: v7x
topology: tpu7x:2x2x1
jax: 0.10.0
libtpu: 0.0.40
codegen_flags: <defaults>
</compile_context>

<pallas_src>
import jax
import jax.numpy as jnp
from jax import lax
from jax.experimental import pallas as pl
from jax.experimental.pallas import tpu as pltpu


def _round_up(n, m):
    return ((n + m - 1) // m) * m


def _sigmoid(x):
    # Exact logistic keeps tight agreement with the f32 reference.  The divide
    # could be moved to the EUP with pl.reciprocal(..., approx=True) if looser
    # accuracy is acceptable; exp/tanh already run on the EUP slot.
    return 1.0 / (1.0 + jnp.exp(-x))


def seq_ae_kernel(x_ref, wih_e_ref, whh_e_ref, be_ref,
                  wih_d_ref, whh_d_ref, bd_ref, o_ref):
    """Encoder LSTM + decoder LSTM for one batch block.

    x_ref    : (T, Bb, D)      time-major input block
    wih_e_ref: (D,  4*Hp)      encoder input->gates (per-gate lane-padded, order i,f,g,o)
    whh_e_ref: (Hp, 4*Hp)      encoder hidden->gates
    be_ref   : (1,  4*Hp)      encoder bias (b_ih + b_hh, per-gate padded)
    wih_d_ref: (Hp, 4*Dp)      decoder input->gates
    whh_d_ref: (Dp, 4*Dp)      decoder hidden->gates
    bd_ref   : (1,  4*Dp)      decoder bias
    o_ref    : (Bb, T*Dp)      batch-first output slab; step t lives in lanes [t*Dp,(t+1)*Dp)
    """
    T, Bb, D = x_ref.shape
    Hp = whh_e_ref.shape[0]
    Dp = whh_d_ref.shape[0]
    f32 = jnp.float32

    wih_e = wih_e_ref[...]
    whh_e = whh_e_ref[...]
    be = be_ref[...]
    wih_d = wih_d_ref[...]
    whh_d = whh_d_ref[...]
    bd = bd_ref[...]

    # ---- hoisted encoder input projection: ONE big MXU matmul + one bias add ----
    x_flat = x_ref[...].reshape(T * Bb, D)                       # time-major flatten
    xproj = jnp.dot(x_flat, wih_e, preferred_element_type=f32) + be   # (T*Bb, 4*Hp)
    xproj = xproj.reshape(T, Bb, 4 * Hp)                         # leading-axis per-step views

    def lstm_cell(pre, c, hp):
        # gate slices are at multiples of 128 lanes -> pure VPU/EUP, no shuffles
        i_g = _sigmoid(pre[:, 0 * hp:1 * hp])
        f_g = _sigmoid(pre[:, 1 * hp:2 * hp])
        g_g = jnp.tanh(pre[:, 2 * hp:3 * hp])
        o_g = _sigmoid(pre[:, 3 * hp:4 * hp])
        c_new = f_g * c + i_g * g_g
        h_new = o_g * jnp.tanh(c_new)
        return h_new, c_new

    # ---- encoder recurrence (statically unrolled; only h @ whh_e is serial) ----
    h = jnp.zeros((Bb, Hp), f32)
    c = jnp.zeros((Bb, Hp), f32)
    for t in range(T):                                           # static unroll (small fixed T)
        pre = xproj[t] + jnp.dot(h, whh_e, preferred_element_type=f32)
        h, c = lstm_cell(pre, c, Hp)
    h_enc = h                                                    # (Bb, Hp) == "encoded"

    # ---- decoder: constant input per step -> hoist its projection + bias ----
    dproj = jnp.dot(h_enc, wih_d, preferred_element_type=f32) + bd     # (Bb, 4*Dp)

    hd = jnp.zeros((Bb, Dp), f32)
    cd = jnp.zeros((Bb, Dp), f32)
    outs = []
    for t in range(T):                                           # static unroll
        pre = dproj + jnp.dot(hd, whh_d, preferred_element_type=f32)
        hd, cd = lstm_cell(pre, cd, Dp)
        outs.append(hd)                                          # (Bb, Dp), full (8,128) tiles

    # single lane-dense store of all decoder hidden states (batch-first slab)
    o_ref[...] = jnp.concatenate(outs, axis=-1)                  # (Bb, T*Dp)


# ------------------------- wrapper-side weight packing -------------------------
def _pack_gates_w(w, hid, hid_pad):
    """PyTorch (4*hid, in_dim) -> transposed, per-gate lane-padded (in_dim, 4*hid_pad)."""
    in_dim = w.shape[1]
    w4 = w.reshape(4, hid, in_dim).astype(jnp.float32)
    w4 = jnp.pad(w4, ((0, 0), (0, hid_pad - hid), (0, 0)))
    return jnp.transpose(w4, (2, 0, 1)).reshape(in_dim, 4 * hid_pad)


def _pad_rows(w, rows, rows_pad):
    return jnp.pad(w, ((0, rows_pad - rows), (0, 0)))


def _pack_gates_b(b, hid, hid_pad):
    b4 = b.reshape(4, hid).astype(jnp.float32)
    b4 = jnp.pad(b4, ((0, 0), (0, hid_pad - hid)))
    return b4.reshape(1, 4 * hid_pad)


def seq_ae_forward(x, params):
    """x: (B, T, D) batch-first, like the PyTorch module. Returns (B, T, D)."""
    B, T, D = x.shape
    H = params["whh_e"].shape[1]

    Hp = _round_up(H, 128)          # lane-pad each gate to a full 128-lane tile
    Dp = _round_up(D, 128)
    B_blk = 8                       # fill sublanes; also the per-core batch tile
    B_pad = _round_up(max(B, 1), B_blk)
    n_blk = B_pad // B_blk

    # Weight packing (glue, done once per call; XLA fuses it).
    # NOTE(prod): store these in bf16 on v6e/v7x (keep f32 accumulation + gate math).
    wih_e = _pack_gates_w(params["wih_e"], H, Hp)                          # (D,  4Hp)
    whh_e = _pad_rows(_pack_gates_w(params["whh_e"], H, Hp), H, Hp)        # (Hp, 4Hp)
    be = _pack_gates_b(params["bih_e"] + params["bhh_e"], H, Hp)           # (1,  4Hp)
    wih_d = _pad_rows(_pack_gates_w(params["wih_d"], D, Dp), H, Hp)        # (Hp, 4Dp)
    whh_d = _pad_rows(_pack_gates_w(params["whh_d"], D, Dp), D, Dp)        # (Dp, 4Dp)
    bd = _pack_gates_b(params["bih_d"] + params["bhh_d"], D, Dp)           # (1,  4Dp)

    # Time-major + batch-pad the input (single fused pass; padded rows are zeros
    # and are sliced off the output, so they cannot affect real results).
    x_tm = jnp.transpose(x.astype(jnp.float32), (1, 0, 2))                 # (T, B, D)
    x_tm = jnp.pad(x_tm, ((0, 0), (0, B_pad - B), (0, 0)))                 # (T, B_pad, D)

    out_flat = pl.pallas_call(
        seq_ae_kernel,
        out_shape=jax.ShapeDtypeStruct((B_pad, T * Dp), jnp.float32),
        grid=(n_blk,),
        in_specs=[
            pl.BlockSpec((T, B_blk, D), lambda i: (0, i, 0)),
            pl.BlockSpec((D, 4 * Hp), lambda i: (0, 0)),
            pl.BlockSpec((Hp, 4 * Hp), lambda i: (0, 0)),
            pl.BlockSpec((1, 4 * Hp), lambda i: (0, 0)),
            pl.BlockSpec((Hp, 4 * Dp), lambda i: (0, 0)),
            pl.BlockSpec((Dp, 4 * Dp), lambda i: (0, 0)),
            pl.BlockSpec((1, 4 * Dp), lambda i: (0, 0)),
        ],
        out_specs=pl.BlockSpec((B_blk, T * Dp), lambda i: (i, 0)),
        compiler_params=pltpu.CompilerParams(
            # batch blocks are independent -> megacore-parallel on v7x
            dimension_semantics=("parallel",),
            # NOTE(prod): raise vmem_limit_bytes / re-derive B_blk for large T
            # (v7x has 64 MiB VMEM vs 128 MiB on v5e/v6e).
        ),
    )(x_tm, wih_e, whh_e, be, wih_d, whh_d, bd)

    # Output is already batch-first: just split lanes into (T, Dp) and drop padding.
    return out_flat.reshape(B_pad, T, Dp)[:B, :, :D]


# ---------------- pure-JAX reference (for verification only) ----------------
def _lstm_ref(x_seq, wih, whh, bih, bhh, hidden):
    """x_seq: (B, T, in). PyTorch gate order i,f,g,o. Returns (outputs, h_last)."""
    B = x_seq.shape[0]
    H = hidden

    def cell(carry, xt):
        h, c = carry
        gates = xt @ wih.T + h @ whh.T + bih + bhh
        i = jax.nn.sigmoid(gates[:, 0 * H:1 * H])
        f = jax.nn.sigmoid(gates[:, 1 * H:2 * H])
        g = jnp.tanh(gates[:, 2 * H:3 * H])
        o = jax.nn.sigmoid(gates[:, 3 * H:4 * H])
        c_new = f * c + i * g
        h_new = o * jnp.tanh(c_new)
        return (h_new, c_new), h_new

    init = (jnp.zeros((B, H), jnp.float32), jnp.zeros((B, H), jnp.float32))
    (h_last, _), outs = lax.scan(cell, init, jnp.transpose(x_seq, (1, 0, 2)))
    return jnp.transpose(outs, (1, 0, 2)), h_last


def seq_ae_reference(x, params):
    B, T, D = x.shape
    H = params["whh_e"].shape[1]
    _, h_enc = _lstm_ref(x, params["wih_e"], params["whh_e"],
                         params["bih_e"], params["bhh_e"], H)
    dec_in = jnp.broadcast_to(h_enc[:, None, :], (B, T, H))
    outs, _ = _lstm_ref(dec_in, params["wih_d"], params["whh_d"],
                        params["bih_d"], params["bhh_d"], D)
    return outs


def init_params(key, input_dim, units):
    """Deterministic init mirroring PyTorch LSTM param shapes (n_layers=1)."""
    D, H = input_dim, units
    ks = jax.random.split(key, 8)
    s_e = 1.0 / jnp.sqrt(H)
    s_d = 1.0 / jnp.sqrt(D)
    u = lambda k, shp, s: jax.random.uniform(k, shp, jnp.float32, -s, s)
    return {
        "wih_e": u(ks[0], (4 * H, D), s_e),
        "whh_e": u(ks[1], (4 * H, H), s_e),
        "bih_e": u(ks[2], (4 * H,), s_e),
        "bhh_e": u(ks[3], (4 * H,), s_e),
        "wih_d": u(ks[4], (4 * D, H), s_d),
        "whh_d": u(ks[5], (4 * D, D), s_d),
        "bih_d": u(ks[6], (4 * D,), s_d),
        "bhh_d": u(ks[7], (4 * D,), s_d),
    }


if __name__ == "__main__":
    B, T, D, H = 2, 8, 8, 16   # batch, seq len, input_dim, units

    key = jax.random.PRNGKey(0)
    k_x, k_p = jax.random.split(key)
    x = jax.random.normal(k_x, (B, T, D), jnp.float32)
    params = init_params(k_p, D, H)

    out = jax.block_until_ready(seq_ae_forward(x, params))
    ref = seq_ae_reference(x, params)

    assert out.shape == (B, T, D)
    assert jnp.allclose(out, ref, atol=1e-4, rtol=1e-4), "mismatch vs reference"

    print("KERNEL_OK")
</pallas_src>

<mosaic_0001>
module attributes {stable_mosaic.version = 11 : i64} {
  func.func @seq_ae_kernel(%arg0: i32, %arg1: memref<8x8x8xf32, #tpu.memory_space<vmem>>, %arg2: memref<8x512xf32, #tpu.memory_space<vmem>>, %arg3: memref<128x512xf32, #tpu.memory_space<vmem>>, %arg4: memref<1x512xf32, #tpu.memory_space<vmem>>, %arg5: memref<128x512xf32, #tpu.memory_space<vmem>>, %arg6: memref<128x512xf32, #tpu.memory_space<vmem>>, %arg7: memref<1x512xf32, #tpu.memory_space<vmem>>, %arg8: memref<8x1024xf32, #tpu.memory_space<vmem>>) attributes {dimension_semantics = [#tpu.dimension_semantics<parallel>], iteration_bounds = array<i64: 1>, scalar_prefetch = 0 : i64, scratch_operands = 0 : i64, tpu.core_type = #tpu.core_type<tc>, window_params = [{transform_indices = @transform_0, window_bounds = array<i64: 8, 8, 8>}, {pipeline_mode = #tpu.pipeline_mode<synchronous>, transform_indices = @transform_1, window_bounds = array<i64: 8, 512>}, {pipeline_mode = #tpu.pipeline_mode<synchronous>, transform_indices = @transform_2, window_bounds = array<i64: 128, 512>}, {pipeline_mode = #tpu.pipeline_mode<synchronous>, transform_indices = @transform_3, window_bounds = array<i64: 1, 512>}, {pipeline_mode = #tpu.pipeline_mode<synchronous>, transform_indices = @transform_4, window_bounds = array<i64: 128, 512>}, {pipeline_mode = #tpu.pipeline_mode<synchronous>, transform_indices = @transform_5, window_bounds = array<i64: 128, 512>}, {pipeline_mode = #tpu.pipeline_mode<synchronous>, transform_indices = @transform_6, window_bounds = array<i64: 1, 512>}, {transform_indices = @transform_7, window_bounds = array<i64: 8, 1024>}]} {
    %c0 = arith.constant 0 : index
    %c0_0 = arith.constant 0 : index
    %0 = vector.load %arg2[%c0, %c0_0] : memref<8x512xf32, #tpu.memory_space<vmem>>, vector<8x512xf32>
    %c0_1 = arith.constant 0 : index
    %c0_2 = arith.constant 0 : index
    %1 = vector.load %arg3[%c0_1, %c0_2] : memref<128x512xf32, #tpu.memory_space<vmem>>, vector<128x512xf32>
    %c0_3 = arith.constant 0 : index
    %c0_4 = arith.constant 0 : index
    %2 = vector.load %arg4[%c0_3, %c0_4] : memref<1x512xf32, #tpu.memory_space<vmem>>, vector<1x512xf32>
    %c0_5 = arith.constant 0 : index
    %c0_6 = arith.constant 0 : index
    %3 = vector.load %arg5[%c0_5, %c0_6] : memref<128x512xf32, #tpu.memory_space<vmem>>, vector<128x512xf32>
    %c0_7 = arith.constant 0 : index
    %c0_8 = arith.constant 0 : index
    %4 = vector.load %arg6[%c0_7, %c0_8] : memref<128x512xf32, #tpu.memory_space<vmem>>, vector<128x512xf32>
    %c0_9 = arith.constant 0 : index
    %c0_10 = arith.constant 0 : index
    %5 = vector.load %arg7[%c0_9, %c0_10] : memref<1x512xf32, #tpu.memory_space<vmem>>, vector<1x512xf32>
    %c0_11 = arith.constant 0 : index
    %c0_12 = arith.constant 0 : index
    %c0_13 = arith.constant 0 : index
    %6 = vector.load %arg1[%c0_11, %c0_12, %c0_13] : memref<8x8x8xf32, #tpu.memory_space<vmem>>, vector<8x8x8xf32>
    %7 = vector.shape_cast %6 : vector<8x8x8xf32> to vector<64x8xf32>
    %cst = arith.constant dense<0.000000e+00> : vector<64x512xf32>
    %8 = tpu.matmul %7, %0, %cst {dimension_numbers = #tpu.dot_dimension_numbers<[1], [0], [0], [1], [0, 0, 1, 1], [], []>} : vector<64x8xf32>, vector<8x512xf32>, vector<64x512xf32> -> vector<64x512xf32>
    %9 = vector.broadcast %2 : vector<1x512xf32> to vector<64x512xf32>
    %10 = arith.addf %8, %9 : vector<64x512xf32>
    %11 = vector.shape_cast %10 : vector<64x512xf32> to vector<8x8x512xf32>
    %cst_14 = arith.constant 0.000000e+00 : f32
    %12 = vector.broadcast %cst_14 : f32 to vector<8x128xf32>
    %cst_15 = arith.constant 0.000000e+00 : f32
    %13 = vector.broadcast %cst_15 : f32 to vector<8x128xf32>
    %14 = vector.extract_strided_slice %11 {offsets = [0, 0, 0], sizes = [1, 8, 512], strides = [1, 1, 1]} : vector<8x8x512xf32> to vector<1x8x512xf32>
    %15 = vector.shape_cast %14 : vector<1x8x512xf32> to vector<8x512xf32>
    %cst_16 = arith.constant dense<0.000000e+00> : vector<8x512xf32>
    %16 = tpu.matmul %12, %1, %cst_16 {dimension_numbers = #tpu.dot_dimension_numbers<[1], [0], [0], [1], [0, 0, 1, 1], [], []>} : vector<8x128xf32>, vector<128x512xf32>, vector<8x512xf32> -> vector<8x512xf32>
    %17 = arith.addf %15, %16 : vector<8x512xf32>
    %18 = vector.extract_strided_slice %17 {offsets = [0, 0], sizes = [8, 128], strides = [1, 1]} : vector<8x512xf32> to vector<8x128xf32>
    %cst_17 = arith.constant 0.000000e+00 : f32
    %19 = vector.broadcast %cst_17 : f32 to vector<8x128xf32>
    %20 = arith.subf %19, %18 : vector<8x128xf32>
    %21 = math.exp %20 : vector<8x128xf32>
    %cst_18 = arith.constant 1.000000e+00 : f32
    %22 = vector.broadcast %cst_18 : f32 to vector<8x128xf32>
    %23 = arith.addf %22, %21 : vector<8x128xf32>
    %cst_19 = arith.constant 1.000000e+00 : f32
    %24 = vector.broadcast %cst_19 : f32 to vector<8x128xf32>
    %25 = arith.divf %24, %23 : vector<8x128xf32>
    %26 = vector.extract_strided_slice %17 {offsets = [0, 128], sizes = [8, 128], strides = [1, 1]} : vector<8x512xf32> to vector<8x128xf32>
    %cst_20 = arith.constant 0.000000e+00 : f32
    %27 = vector.broadcast %cst_20 : f32 to vector<8x128xf32>
    %28 = arith.subf %27, %26 : vector<8x128xf32>
    %29 = math.exp %28 : vector<8x128xf32>
    %cst_21 = arith.constant 1.000000e+00 : f32
    %30 = vector.broadcast %cst_21 : f32 to vector<8x128xf32>
    %31 = arith.addf %30, %29 : vector<8x128xf32>
    %cst_22 = arith.constant 1.000000e+00 : f32
    %32 = vector.broadcast %cst_22 : f32 to vector<8x128xf32>
    %33 = arith.divf %32, %31 : vector<8x128xf32>
    %34 = vector.extract_strided_slice %17 {offsets = [0, 256], sizes = [8, 128], strides = [1, 1]} : vector<8x512xf32> to vector<8x128xf32>
    %35 = math.tanh %34 : vector<8x128xf32>
    %36 = vector.extract_strided_slice %17 {offsets = [0, 384], sizes = [8, 128], strides = [1, 1]} : vector<8x512xf32> to vector<8x128xf32>
    %cst_23 = arith.constant 0.000000e+00 : f32
    %37 = vector.broadcast %cst_23 : f32 to vector<8x128xf32>
    %38 = arith.subf %37, %36 : vector<8x128xf32>
    %39 = math.exp %38 : vector<8x128xf32>
    %cst_24 = arith.constant 1.000000e+00 : f32
    %40 = vector.broadcast %cst_24 : f32 to vector<8x128xf32>
    %41 = arith.addf %40, %39 : vector<8x128xf32>
    %cst_25 = arith.constant 1.000000e+00 : f32
    %42 = vector.broadcast %cst_25 : f32 to vector<8x128xf32>
    %43 = arith.divf %42, %41 : vector<8x128xf32>
    %44 = arith.mulf %33, %13 : vector<8x128xf32>
    %45 = arith.mulf %25, %35 : vector<8x128xf32>
    %46 = arith.addf %44, %45 : vector<8x128xf32>
    %47 = math.tanh %46 : vector<8x128xf32>
    %48 = arith.mulf %43, %47 : vector<8x128xf32>
    %49 = vector.extract_strided_slice %11 {offsets = [1, 0, 0], sizes = [1, 8, 512], strides = [1, 1, 1]} : vector<8x8x512xf32> to vector<1x8x512xf32>
    %50 = vector.shape_cast %49 : vector<1x8x512xf32> to vector<8x512xf32>
    %cst_26 = arith.constant dense<0.000000e+00> : vector<8x512xf32>
    %51 = tpu.matmul %48, %1, %cst_26 {dimension_numbers = #tpu.dot_dimension_numbers<[1], [0], [0], [1], [0, 0, 1, 1], [], []>} : vector<8x128xf32>, vector<128x512xf32>, vector<8x512xf32> -> vector<8x512xf32>
    %52 = arith.addf %50, %51 : vector<8x512xf32>
    %53 = vector.extract_strided_slice %52 {offsets = [0, 0], sizes = [8, 128], strides = [1, 1]} : vector<8x512xf32> to vector<8x128xf32>
    %cst_27 = arith.constant 0.000000e+00 : f32
    %54 = vector.broadcast %cst_27 : f32 to vector<8x128xf32>
    %55 = arith.subf %54, %53 : vector<8x128xf32>
    %56 = math.exp %55 : vector<8x128xf32>
    %cst_28 = arith.constant 1.000000e+00 : f32
    %57 = vector.broadcast %cst_28 : f32 to vector<8x128xf32>
    %58 = arith.addf %57, %56 : vector<8x128xf32>
    %cst_29 = arith.constant 1.000000e+00 : f32
    %59 = vector.broadcast %cst_29 : f32 to vector<8x128xf32>
    %60 = arith.divf %59, %58 : vector<8x128xf32>
    %61 = vector.extract_strided_slice %52 {offsets = [0, 128], sizes = [8, 128], strides = [1, 1]} : vector<8x512xf32> to vector<8x128xf32>
    %cst_30 = arith.constant 0.000000e+00 : f32
    %62 = vector.broadcast %cst_30 : f32 to vector<8x128xf32>
    %63 = arith.subf %62, %61 : vector<8x128xf32>
    %64 = math.exp %63 : vector<8x128xf32>
    %cst_31 = arith.constant 1.000000e+00 : f32
    %65 = vector.broadcast %cst_31 : f32 to vector<8x128xf32>
    %66 = arith.addf %65, %64 : vector<8x128xf32>
    %cst_32 = arith.constant 1.000000e+00 : f32
    %67 = vector.broadcast %cst_32 : f32 to vector<8x128xf32>
    %68 = arith.divf %67, %66 : vector<8x128xf32>
    %69 = vector.extract_strided_slice %52 {offsets = [0, 256], sizes = [8, 128], strides = [1, 1]} : vector<8x512xf32> to vector<8x128xf32>
    %70 = math.tanh %69 : vector<8x128xf32>
    %71 = vector.extract_strided_slice %52 {offsets = [0, 384], sizes = [8, 128], strides = [1, 1]} : vector<8x512xf32> to vector<8x128xf32>
    %cst_33 = arith.constant 0.000000e+00 : f32
    %72 = vector.broadcast %cst_33 : f32 to vector<8x128xf32>
    %73 = arith.subf %72, %71 : vector<8x128xf32>
    %74 = math.exp %73 : vector<8x128xf32>
    %cst_34 = arith.constant 1.000000e+00 : f32
    %75 = vector.broadcast %cst_34 : f32 to vector<8x128xf32>
    %76 = arith.addf %75, %74 : vector<8x128xf32>
    %cst_35 = arith.constant 1.000000e+00 : f32
    %77 = vector.broadcast %cst_35 : f32 to vector<8x128xf32>
    %78 = arith.divf %77, %76 : vector<8x128xf32>
    %79 = arith.mulf %68, %46 : vector<8x128xf32>
    %80 = arith.mulf %60, %70 : vector<8x128xf32>
    %81 = arith.addf %79, %80 : vector<8x128xf32>
    %82 = math.tanh %81 : vector<8x128xf32>
    %83 = arith.mulf %78, %82 : vector<8x128xf32>
    %84 = vector.extract_strided_slice %11 {offsets = [2, 0, 0], sizes = [1, 8, 512], strides = [1, 1, 1]} : vector<8x8x512xf32> to vector<1x8x512xf32>
    %85 = vector.shape_cast %84 : vector<1x8x512xf32> to vector<8x512xf32>
    %cst_36 = arith.constant dense<0.000000e+00> : vector<8x512xf32>
    %86 = tpu.matmul %83, %1, %cst_36 {dimension_numbers = #tpu.dot_dimension_numbers<[1], [0], [0], [1], [0, 0, 1, 1], [], []>} : vector<8x128xf32>, vector<128x512xf32>, vector<8x512xf32> -> vector<8x512xf32>
    %87 = arith.addf %85, %86 : vector<8x512xf32>
    %88 = vector.extract_strided_slice %87 {offsets = [0, 0], sizes = [8, 128], strides = [1, 1]} : vector<8x512xf32> to vector<8x128xf32>
    %cst_37 = arith.constant 0.000000e+00 : f32
    %89 = vector.broadcast %cst_37 : f32 to vector<8x128xf32>
    %90 = arith.subf %89, %88 : vector<8x128xf32>
    %91 = math.exp %90 : vector<8x128xf32>
    %cst_38 = arith.constant 1.000000e+00 : f32
    %92 = vector.broadcast %cst_38 : f32 to vector<8x128xf32>
    %93 = arith.addf %92, %91 : vector<8x128xf32>
    %cst_39 = arith.constant 1.000000e+00 : f32
    %94 = vector.broadcast %cst_39 : f32 to vector<8x128xf32>
    %95 = arith.divf %94, %93 : vector<8x128xf32>
    %96 = vector.extract_strided_slice %87 {offsets = [0, 128], sizes = [8, 128], strides = [1, 1]} : vector<8x512xf32> to vector<8x128xf32>
    %cst_40 = arith.constant 0.000000e+00 : f32
    %97 = vector.broadcast %cst_40 : f32 to vector<8x128xf32>
    %98 = arith.subf %97, %96 : vector<8x128xf32>
    %99 = math.exp %98 : vector<8x128xf32>
    %cst_41 = arith.constant 1.000000e+00 : f32
    %100 = vector.broadcast %cst_41 : f32 to vector<8x128xf32>
    %101 = arith.addf %100, %99 : vector<8x128xf32>
    %cst_42 = arith.constant 1.000000e+00 : f32
    %102 = vector.broadcast %cst_42 : f32 to vector<8x128xf32>
    %103 = arith.divf %102, %101 : vector<8x128xf32>
    %104 = vector.extract_strided_slice %87 {offsets = [0, 256], sizes = [8, 128], strides = [1, 1]} : vector<8x512xf32> to vector<8x128xf32>
    %105 = math.tanh %104 : vector<8x128xf32>
    %106 = vector.extract_strided_slice %87 {offsets = [0, 384], sizes = [8, 128], strides = [1, 1]} : vector<8x512xf32> to vector<8x128xf32>
    %cst_43 = arith.constant 0.000000e+00 : f32
    %107 = vector.broadcast %cst_43 : f32 to vector<8x128xf32>
    %108 = arith.subf %107, %106 : vector<8x128xf32>
    %109 = math.exp %108 : vector<8x128xf32>
    %cst_44 = arith.constant 1.000000e+00 : f32
    %110 = vector.broadcast %cst_44 : f32 to vector<8x128xf32>
    %111 = arith.addf %110, %109 : vector<8x128xf32>
    %cst_45 = arith.constant 1.000000e+00 : f32
    %112 = vector.broadcast %cst_45 : f32 to vector<8x128xf32>
    %113 = arith.divf %112, %111 : vector<8x128xf32>
    %114 = arith.mulf %103, %81 : vector<8x128xf32>
    %115 = arith.mulf %95, %105 : vector<8x128xf32>
    %116 = arith.addf %114, %115 : vector<8x128xf32>
    %117 = math.tanh %116 : vector<8x128xf32>
    %118 = arith.mulf %113, %117 : vector<8x128xf32>
    %119 = vector.extract_strided_slice %11 {offsets = [3, 0, 0], sizes = [1, 8, 512], strides = [1, 1, 1]} : vector<8x8x512xf32> to vector<1x8x512xf32>
    %120 = vector.shape_cast %119 : vector<1x8x512xf32> to vector<8x512xf32>
    %cst_46 = arith.constant dense<0.000000e+00> : vector<8x512xf32>
    %121 = tpu.matmul %118, %1, %cst_46 {dimension_numbers = #tpu.dot_dimension_numbers<[1], [0], [0], [1], [0, 0, 1, 1], [], []>} : vector<8x128xf32>, vector<128x512xf32>, vector<8x512xf32> -> vector<8x512xf32>
    %122 = arith.addf %120, %121 : vector<8x512xf32>
    %123 = vector.extract_strided_slice %122 {offsets = [0, 0], sizes = [8, 128], strides = [1, 1]} : vector<8x512xf32> to vector<8x128xf32>
    %cst_47 = arith.constant 0.000000e+00 : f32
    %124 = vector.broadcast %cst_47 : f32 to vector<8x128xf32>
    %125 = arith.subf %124, %123 : vector<8x128xf32>
    %126 = math.exp %125 : vector<8x128xf32>
    %cst_48 = arith.constant 1.000000e+00 : f32
    %127 = vector.broadcast %cst_48 : f32 to vector<8x128xf32>
    %128 = arith.addf %127, %126 : vector<8x128xf32>
    %cst_49 = arith.constant 1.000000e+00 : f32
    %129 = vector.broadcast %cst_49 : f32 to vector<8x128xf32>
    %130 = arith.divf %129, %128 : vector<8x128xf32>
    %131 = vector.extract_strided_slice %122 {offsets = [0, 128], sizes = [8, 128], strides = [1, 1]} : vector<8x512xf32> to vector<8x128xf32>
    %cst_50 = arith.constant 0.000000e+00 : f32
    %132 = vector.broadcast %cst_50 : f32 to vector<8x128xf32>
    %133 = arith.subf %132, %131 : vector<8x128xf32>
    %134 = math.exp %133 : vector<8x128xf32>
    %cst_51 = arith.constant 1.000000e+00 : f32
    %135 = vector.broadcast %cst_51 : f32 to vector<8x128xf32>
    %136 = arith.addf %135, %134 : vector<8x128xf32>
    %cst_52 = arith.constant 1.000000e+00 : f32
    %137 = vector.broadcast %cst_52 : f32 to vector<8x128xf32>
    %138 = arith.divf %137, %136 : vector<8x128xf32>
    %139 = vector.extract_strided_slice %122 {offsets = [0, 256], sizes = [8, 128], strides = [1, 1]} : vector<8x512xf32> to vector<8x128xf32>
    %140 = math.tanh %139 : vector<8x128xf32>
    %141 = vector.extract_strided_slice %122 {offsets = [0, 384], sizes = [8, 128], strides = [1, 1]} : vector<8x512xf32> to vector<8x128xf32>
    %cst_53 = arith.constant 0.000000e+00 : f32
    %142 = vector.broadcast %cst_53 : f32 to vector<8x128xf32>
    %143 = arith.subf %142, %141 : vector<8x128xf32>
    %144 = math.exp %143 : vector<8x128xf32>
    %cst_54 = arith.constant 1.000000e+00 : f32
    %145 = vector.broadcast %cst_54 : f32 to vector<8x128xf32>
    %146 = arith.addf %145, %144 : vector<8x128xf32>
    %cst_55 = arith.constant 1.000000e+00 : f32
    %147 = vector.broadcast %cst_55 : f32 to vector<8x128xf32>
    %148 = arith.divf %147, %146 : vector<8x128xf32>
    %149 = arith.mulf %138, %116 : vector<8x128xf32>
    %150 = arith.mulf %130, %140 : vector<8x128xf32>
    %151 = arith.addf %149, %150 : vector<8x128xf32>
    %152 = math.tanh %151 : vector<8x128xf32>
    %153 = arith.mulf %148, %152 : vector<8x128xf32>
    %154 = vector.extract_strided_slice %11 {offsets = [4, 0, 0], sizes = [1, 8, 512], strides = [1, 1, 1]} : vector<8x8x512xf32> to vector<1x8x512xf32>
    %155 = vector.shape_cast %154 : vector<1x8x512xf32> to vector<8x512xf32>
    %cst_56 = arith.constant dense<0.000000e+00> : vector<8x512xf32>
    %156 = tpu.matmul %153, %1, %cst_56 {dimension_numbers = #tpu.dot_dimension_numbers<[1], [0], [0], [1], [0, 0, 1, 1], [], []>} : vector<8x128xf32>, vector<128x512xf32>, vector<8x512xf32> -> vector<8x512xf32>
    %157 = arith.addf %155, %156 : vector<8x512xf32>
    %158 = vector.extract_strided_slice %157 {offsets = [0, 0], sizes = [8, 128], strides = [1, 1]} : vector<8x512xf32> to vector<8x128xf32>
    %cst_57 = arith.constant 0.000000e+00 : f32
    %159 = vector.broadcast %cst_57 : f32 to vector<8x128xf32>
    %160 = arith.subf %159, %158 : vector<8x128xf32>
    %161 = math.exp %160 : vector<8x128xf32>
    %cst_58 = arith.constant 1.000000e+00 : f32
    %162 = vector.broadcast %cst_58 : f32 to vector<8x128xf32>
    %163 = arith.addf %162, %161 : vector<8x128xf32>
    %cst_59 = arith.constant 1.000000e+00 : f32
    %164 = vector.broadcast %cst_59 : f32 to vector<8x128xf32>
    %165 = arith.divf %164, %163 : vector<8x128xf32>
    %166 = vector.extract_strided_slice %157 {offsets = [0, 128], sizes = [8, 128], strides = [1, 1]} : vector<8x512xf32> to vector<8x128xf32>
    %cst_60 = arith.constant 0.000000e+00 : f32
    %167 = vector.broadcast %cst_60 : f32 to vector<8x128xf32>
    %168 = arith.subf %167, %166 : vector<8x128xf32>
    %169 = math.exp %168 : vector<8x128xf32>
    %cst_61 = arith.constant 1.000000e+00 : f32
    %170 = vector.broadcast %cst_61 : f32 to vector<8x128xf32>
    %171 = arith.addf %170, %169 : vector<8x128xf32>
    %cst_62 = arith.constant 1.000000e+00 : f32
    %172 = vector.broadcast %cst_62 : f32 to vector<8x128xf32>
    %173 = arith.divf %172, %171 : vector<8x128xf32>
    %174 = vector.extract_strided_slice %157 {offsets = [0, 256], sizes = [8, 128], strides = [1, 1]} : vector<8x512xf32> to vector<8x128xf32>
    %175 = math.tanh %174 : vector<8x128xf32>
    %176 = vector.extract_strided_slice %157 {offsets = [0, 384], sizes = [8, 128], strides = [1, 1]} : vector<8x512xf32> to vector<8x128xf32>
    %cst_63 = arith.constant 0.000000e+00 : f32
    %177 = vector.broadcast %cst_63 : f32 to vector<8x128xf32>
    %178 = arith.subf %177, %176 : vector<8x128xf32>
    %179 = math.exp %178 : vector<8x128xf32>
    %cst_64 = arith.constant 1.000000e+00 : f32
    %180 = vector.broadcast %cst_64 : f32 to vector<8x128xf32>
    %181 = arith.addf %180, %179 : vector<8x128xf32>
    %cst_65 = arith.constant 1.000000e+00 : f32
    %182 = vector.broadcast %cst_65 : f32 to vector<8x128xf32>
    %183 = arith.divf %182, %181 : vector<8x128xf32>
    %184 = arith.mulf %173, %151 : vector<8x128xf32>
    %185 = arith.mulf %165, %175 : vector<8x128xf32>
    %186 = arith.addf %184, %185 : vector<8x128xf32>
    %187 = math.tanh %186 : vector<8x128xf32>
    %188 = arith.mulf %183, %187 : vector<8x128xf32>
    %189 = vector.extract_strided_slice %11 {offsets = [5, 0, 0], sizes = [1, 8, 512], strides = [1, 1, 1]} : vector<8x8x512xf32> to vector<1x8x512xf32>
    %190 = vector.shape_cast %189 : vector<1x8x512xf32> to vector<8x512xf32>
    %cst_66 = arith.constant dense<0.000000e+00> : vector<8x512xf32>
    %191 = tpu.matmul %188, %1, %cst_66 {dimension_numbers = #tpu.dot_dimension_numbers<[1], [0], [0], [1], [0, 0, 1, 1], [], []>} : vector<8x128xf32>, vector<128x512xf32>, vector<8x512xf32> -> vector<8x512xf32>
    %192 = arith.addf %190, %191 : vector<8x512xf32>
    %193 = vector.extract_strided_slice %192 {offsets = [0, 0], sizes = [8, 128], strides = [1, 1]} : vector<8x512xf32> to vector<8x128xf32>
    %cst_67 = arith.constant 0.000000e+00 : f32
    %194 = vector.broadcast %cst_67 : f32 to vector<8x128xf32>
    %195 = arith.subf %194, %193 : vector<8x128xf32>
    %196 = math.exp %195 : vector<8x128xf32>
    %cst_68 = arith.constant 1.000000e+00 : f32
    %197 = vector.broadcast %cst_68 : f32 to vector<8x128xf32>
    %198 = arith.addf %197, %196 : vector<8x128xf32>
    %cst_69 = arith.constant 1.000000e+00 : f32
    %199 = vector.broadcast %cst_69 : f32 to vector<8x128xf32>
    %200 = arith.divf %199, %198 : vector<8x128xf32>
    %201 = vector.extract_strided_slice %192 {offsets = [0, 128], sizes = [8, 128], strides = [1, 1]} : vector<8x512xf32> to vector<8x128xf32>
    %cst_70 = arith.constant 0.000000e+00 : f32
    %202 = vector.broadcast %cst_70 : f32 to vector<8x128xf32>
    %203 = arith.subf %202, %201 : vector<8x128xf32>
    %204 = math.exp %203 : vector<8x128xf32>
    %cst_71 = arith.constant 1.000000e+00 : f32
    %205 = vector.broadcast %cst_71 : f32 to vector<8x128xf32>
    %206 = arith.addf %205, %204 : vector<8x128xf32>
    %cst_72 = arith.constant 1.000000e+00 : f32
    %207 = vector.broadcast %cst_72 : f32 to vector<8x128xf32>
    %208 = arith.divf %207, %206 : vector<8x128xf32>
    %209 = vector.extract_strided_slice %192 {offsets = [0, 256], sizes = [8, 128], strides = [1, 1]} : vector<8x512xf32> to vector<8x128xf32>
    %210 = math.tanh %209 : vector<8x128xf32>
    %211 = vector.extract_strided_slice %192 {offsets = [0, 384], sizes = [8, 128], strides = [1, 1]} : vector<8x512xf32> to vector<8x128xf32>
    %cst_73 = arith.constant 0.000000e+00 : f32
    %212 = vector.broadcast %cst_73 : f32 to vector<8x128xf32>
    %213 = arith.subf %212, %211 : vector<8x128xf32>
    %214 = math.exp %213 : vector<8x128xf32>
    %cst_74 = arith.constant 1.000000e+00 : f32
    %215 = vector.broadcast %cst_74 : f32 to vector<8x128xf32>
    %216 = arith.addf %215, %214 : vector<8x128xf32>
    %cst_75 = arith.constant 1.000000e+00 : f32
    %217 = vector.broadcast %cst_75 : f32 to vector<8x128xf32>
    %218 = arith.divf %217, %216 : vector<8x128xf32>
    %219 = arith.mulf %208, %186 : vector<8x128xf32>
    %220 = arith.mulf %200, %210 : vector<8x128xf32>
    %221 = arith.addf %219, %220 : vector<8x128xf32>
    %222 = math.tanh %221 : vector<8x128xf32>
    %223 = arith.mulf %218, %222 : vector<8x128xf32>
    %224 = vector.extract_strided_slice %11 {offsets = [6, 0, 0], sizes = [1, 8, 512], strides = [1, 1, 1]} : vector<8x8x512xf32> to vector<1x8x512xf32>
    %225 = vector.shape_cast %224 : vector<1x8x512xf32> to vector<8x512xf32>
    %cst_76 = arith.constant dense<0.000000e+00> : vector<8x512xf32>
    %226 = tpu.matmul %223, %1, %cst_76 {dimension_numbers = #tpu.dot_dimension_numbers<[1], [0], [0], [1], [0, 0, 1, 1], [], []>} : vector<8x128xf32>, vector<128x512xf32>, vector<8x512xf32> -> vector<8x512xf32>
    %227 = arith.addf %225, %226 : vector<8x512xf32>
    %228 = vector.extract_strided_slice %227 {offsets = [0, 0], sizes = [8, 128], strides = [1, 1]} : vector<8x512xf32> to vector<8x128xf32>
    %cst_77 = arith.constant 0.000000e+00 : f32
    %229 = vector.broadcast %cst_77 : f32 to vector<8x128xf32>
    %230 = arith.subf %229, %228 : vector<8x128xf32>
    %231 = math.exp %230 : vector<8x128xf32>
    %cst_78 = arith.constant 1.000000e+00 : f32
    %232 = vector.broadcast %cst_78 : f32 to vector<8x128xf32>
    %233 = arith.addf %232, %231 : vector<8x128xf32>
    %cst_79 = arith.constant 1.000000e+00 : f32
    %234 = vector.broadcast %cst_79 : f32 to vector<8x128xf32>
    %235 = arith.divf %234, %233 : vector<8x128xf32>
    %236 = vector.extract_strided_slice %227 {offsets = [0, 128], sizes = [8, 128], strides = [1, 1]} : vector<8x512xf32> to vector<8x128xf32>
    %cst_80 = arith.constant 0.000000e+00 : f32
    %237 = vector.broadcast %cst_80 : f32 to vector<8x128xf32>
    %238 = arith.subf %237, %236 : vector<8x128xf32>
    %239 = math.exp %238 : vector<8x128xf32>
    %cst_81 = arith.constant 1.000000e+00 : f32
    %240 = vector.broadcast %cst_81 : f32 to vector<8x128xf32>
    %241 = arith.addf %240, %239 : vector<8x128xf32>
    %cst_82 = arith.constant 1.000000e+00 : f32
    %242 = vector.broadcast %cst_82 : f32 to vector<8x128xf32>
    %243 = arith.divf %242, %241 : vector<8x128xf32>
    %244 = vector.extract_strided_slice %227 {offsets = [0, 256], sizes = [8, 128], strides = [1, 1]} : vector<8x512xf32> to vector<8x128xf32>
    %245 = math.tanh %244 : vector<8x128xf32>
    %246 = vector.extract_strided_slice %227 {offsets = [0, 384], sizes = [8, 128], strides = [1, 1]} : vector<8x512xf32> to vector<8x128xf32>
    %cst_83 = arith.constant 0.000000e+00 : f32
    %247 = vector.broadcast %cst_83 : f32 to vector<8x128xf32>
    %248 = arith.subf %247, %246 : vector<8x128xf32>
    %249 = math.exp %248 : vector<8x128xf32>
    %cst_84 = arith.constant 1.000000e+00 : f32
    %250 = vector.broadcast %cst_84 : f32 to vector<8x128xf32>
    %251 = arith.addf %250, %249 : vector<8x128xf32>
    %cst_85 = arith.constant 1.000000e+00 : f32
    %252 = vector.broadcast %cst_85 : f32 to vector<8x128xf32>
    %253 = arith.divf %252, %251 : vector<8x128xf32>
    %254 = arith.mulf %243, %221 : vector<8x128xf32>
    %255 = arith.mulf %235, %245 : vector<8x128xf32>
    %256 = arith.addf %254, %255 : vector<8x128xf32>
    %257 = math.tanh %256 : vector<8x128xf32>
    %258 = arith.mulf %253, %257 : vector<8x128xf32>
    %259 = vector.extract_strided_slice %11 {offsets = [7, 0, 0], sizes = [1, 8, 512], strides = [1, 1, 1]} : vector<8x8x512xf32> to vector<1x8x512xf32>
    %260 = vector.shape_cast %259 : vector<1x8x512xf32> to vector<8x512xf32>
    %cst_86 = arith.constant dense<0.000000e+00> : vector<8x512xf32>
    %261 = tpu.matmul %258, %1, %cst_86 {dimension_numbers = #tpu.dot_dimension_numbers<[1], [0], [0], [1], [0, 0, 1, 1], [], []>} : vector<8x128xf32>, vector<128x512xf32>, vector<8x512xf32> -> vector<8x512xf32>
    %262 = arith.addf %260, %261 : vector<8x512xf32>
    %263 = vector.extract_strided_slice %262 {offsets = [0, 0], sizes = [8, 128], strides = [1, 1]} : vector<8x512xf32> to vector<8x128xf32>
    %cst_87 = arith.constant 0.000000e+00 : f32
    %264 = vector.broadcast %cst_87 : f32 to vector<8x128xf32>
    %265 = arith.subf %264, %263 : vector<8x128xf32>
    %266 = math.exp %265 : vector<8x128xf32>
    %cst_88 = arith.constant 1.000000e+00 : f32
    %267 = vector.broadcast %cst_88 : f32 to vector<8x128xf32>
    %268 = arith.addf %267, %266 : vector<8x128xf32>
    %cst_89 = arith.constant 1.000000e+00 : f32
    %269 = vector.broadcast %cst_89 : f32 to vector<8x128xf32>
    %270 = arith.divf %269, %268 : vector<8x128xf32>
    %271 = vector.extract_strided_slice %262 {offsets = [0, 128], sizes = [8, 128], strides = [1, 1]} : vector<8x512xf32> to vector<8x128xf32>
    %cst_90 = arith.constant 0.000000e+00 : f32
    %272 = vector.broadcast %cst_90 : f32 to vector<8x128xf32>
    %273 = arith.subf %272, %271 : vector<8x128xf32>
    %274 = math.exp %273 : vector<8x128xf32>
    %cst_91 = arith.constant 1.000000e+00 : f32
    %275 = vector.broadcast %cst_91 : f32 to vector<8x128xf32>
    %276 = arith.addf %275, %274 : vector<8x128xf32>
    %cst_92 = arith.constant 1.000000e+00 : f32
    %277 = vector.broadcast %cst_92 : f32 to vector<8x128xf32>
    %278 = arith.divf %277, %276 : vector<8x128xf32>
    %279 = vector.extract_strided_slice %262 {offsets = [0, 256], sizes = [8, 128], strides = [1, 1]} : vector<8x512xf32> to vector<8x128xf32>
    %280 = math.tanh %279 : vector<8x128xf32>
    %281 = vector.extract_strided_slice %262 {offsets = [0, 384], sizes = [8, 128], strides = [1, 1]} : vector<8x512xf32> to vector<8x128xf32>
    %cst_93 = arith.constant 0.000000e+00 : f32
    %282 = vector.broadcast %cst_93 : f32 to vector<8x128xf32>
    %283 = arith.subf %282, %281 : vector<8x128xf32>
    %284 = math.exp %283 : vector<8x128xf32>
    %cst_94 = arith.constant 1.000000e+00 : f32
    %285 = vector.broadcast %cst_94 : f32 to vector<8x128xf32>
    %286 = arith.addf %285, %284 : vector<8x128xf32>
    %cst_95 = arith.constant 1.000000e+00 : f32
    %287 = vector.broadcast %cst_95 : f32 to vector<8x128xf32>
    %288 = arith.divf %287, %286 : vector<8x128xf32>
    %289 = arith.mulf %278, %256 : vector<8x128xf32>
    %290 = arith.mulf %270, %280 : vector<8x128xf32>
    %291 = arith.addf %289, %290 : vector<8x128xf32>
    %292 = math.tanh %291 : vector<8x128xf32>
    %293 = arith.mulf %288, %292 : vector<8x128xf32>
    %cst_96 = arith.constant dense<0.000000e+00> : vector<8x512xf32>
    %294 = tpu.matmul %293, %3, %cst_96 {dimension_numbers = #tpu.dot_dimension_numbers<[1], [0], [0], [1], [0, 0, 1, 1], [], []>} : vector<8x128xf32>, vector<128x512xf32>, vector<8x512xf32> -> vector<8x512xf32>
    %295 = vector.broadcast %5 : vector<1x512xf32> to vector<8x512xf32>
    %296 = arith.addf %294, %295 : vector<8x512xf32>
    %cst_97 = arith.constant 0.000000e+00 : f32
    %297 = vector.broadcast %cst_97 : f32 to vector<8x128xf32>
    %cst_98 = arith.constant 0.000000e+00 : f32
    %298 = vector.broadcast %cst_98 : f32 to vector<8x128xf32>
    %cst_99 = arith.constant dense<0.000000e+00> : vector<8x512xf32>
    %299 = tpu.matmul %297, %4, %cst_99 {dimension_numbers = #tpu.dot_dimension_numbers<[1], [0], [0], [1], [0, 0, 1, 1], [], []>} : vector<8x128xf32>, vector<128x512xf32>, vector<8x512xf32> -> vector<8x512xf32>
    %300 = arith.addf %296, %299 : vector<8x512xf32>
    %301 = vector.extract_strided_slice %300 {offsets = [0, 0], sizes = [8, 128], strides = [1, 1]} : vector<8x512xf32> to vector<8x128xf32>
    %cst_100 = arith.constant 0.000000e+00 : f32
    %302 = vector.broadcast %cst_100 : f32 to vector<8x128xf32>
    %303 = arith.subf %302, %301 : vector<8x128xf32>
    %304 = math.exp %303 : vector<8x128xf32>
    %cst_101 = arith.constant 1.000000e+00 : f32
    %305 = vector.broadcast %cst_101 : f32 to vector<8x128xf32>
    %306 = arith.addf %305, %304 : vector<8x128xf32>
    %cst_102 = arith.constant 1.000000e+00 : f32
    %307 = vector.broadcast %cst_102 : f32 to vector<8x128xf32>
    %308 = arith.divf %307, %306 : vector<8x128xf32>
    %309 = vector.extract_strided_slice %300 {offsets = [0, 128], sizes = [8, 128], strides = [1, 1]} : vector<8x512xf32> to vector<8x128xf32>
    %cst_103 = arith.constant 0.000000e+00 : f32
    %310 = vector.broadcast %cst_103 : f32 to vector<8x128xf32>
    %311 = arith.subf %310, %309 : vector<8x128xf32>
    %312 = math.exp %311 : vector<8x128xf32>
    %cst_104 = arith.constant 1.000000e+00 : f32
    %313 = vector.broadcast %cst_104 : f32 to vector<8x128xf32>
    %314 = arith.addf %313, %312 : vector<8x128xf32>
    %cst_105 = arith.constant 1.000000e+00 : f32
    %315 = vector.broadcast %cst_105 : f32 to vector<8x128xf32>
    %316 = arith.divf %315, %314 : vector<8x128xf32>
    %317 = vector.extract_strided_slice %300 {offsets = [0, 256], sizes = [8, 128], strides = [1, 1]} : vector<8x512xf32> to vector<8x128xf32>
    %318 = math.tanh %317 : vector<8x128xf32>
    %319 = vector.extract_strided_slice %300 {offsets = [0, 384], sizes = [8, 128], strides = [1, 1]} : vector<8x512xf32> to vector<8x128xf32>
    %cst_106 = arith.constant 0.000000e+00 : f32
    %320 = vector.broadcast %cst_106 : f32 to vector<8x128xf32>
    %321 = arith.subf %320, %319 : vector<8x128xf32>
    %322 = math.exp %321 : vector<8x128xf32>
    %cst_107 = arith.constant 1.000000e+00 : f32
    %323 = vector.broadcast %cst_107 : f32 to vector<8x128xf32>
    %324 = arith.addf %323, %322 : vector<8x128xf32>
    %cst_108 = arith.constant 1.000000e+00 : f32
    %325 = vector.broadcast %cst_108 : f32 to vector<8x128xf32>
    %326 = arith.divf %325, %324 : vector<8x128xf32>
    %327 = arith.mulf %316, %298 : vector<8x128xf32>
    %328 = arith.mulf %308, %318 : vector<8x128xf32>
    %329 = arith.addf %327, %328 : vector<8x128xf32>
    %330 = math.tanh %329 : vector<8x128xf32>
    %331 = arith.mulf %326, %330 : vector<8x128xf32>
    %cst_109 = arith.constant dense<0.000000e+00> : vector<8x512xf32>
    %332 = tpu.matmul %331, %4, %cst_109 {dimension_numbers = #tpu.dot_dimension_numbers<[1], [0], [0], [1], [0, 0, 1, 1], [], []>} : vector<8x128xf32>, vector<128x512xf32>, vector<8x512xf32> -> vector<8x512xf32>
    %333 = arith.addf %296, %332 : vector<8x512xf32>
    %334 = vector.extract_strided_slice %333 {offsets = [0, 0], sizes = [8, 128], strides = [1, 1]} : vector<8x512xf32> to vector<8x128xf32>
    %cst_110 = arith.constant 0.000000e+00 : f32
    %335 = vector.broadcast %cst_110 : f32 to vector<8x128xf32>
    %336 = arith.subf %335, %334 : vector<8x128xf32>
    %337 = math.exp %336 : vector<8x128xf32>
    %cst_111 = arith.constant 1.000000e+00 : f32
    %338 = vector.broadcast %cst_111 : f32 to vector<8x128xf32>
    %339 = arith.addf %338, %337 : vector<8x128xf32>
    %cst_112 = arith.constant 1.000000e+00 : f32
    %340 = vector.broadcast %cst_112 : f32 to vector<8x128xf32>
    %341 = arith.divf %340, %339 : vector<8x128xf32>
    %342 = vector.extract_strided_slice %333 {offsets = [0, 128], sizes = [8, 128], strides = [1, 1]} : vector<8x512xf32> to vector<8x128xf32>
    %cst_113 = arith.constant 0.000000e+00 : f32
    %343 = vector.broadcast %cst_113 : f32 to vector<8x128xf32>
    %344 = arith.subf %343, %342 : vector<8x128xf32>
    %345 = math.exp %344 : vector<8x128xf32>
    %cst_114 = arith.constant 1.000000e+00 : f32
    %346 = vector.broadcast %cst_114 : f32 to vector<8x128xf32>
    %347 = arith.addf %346, %345 : vector<8x128xf32>
    %cst_115 = arith.constant 1.000000e+00 : f32
    %348 = vector.broadcast %cst_115 : f32 to vector<8x128xf32>
    %349 = arith.divf %348, %347 : vector<8x128xf32>
    %350 = vector.extract_strided_slice %333 {offsets = [0, 256], sizes = [8, 128], strides = [1, 1]} : vector<8x512xf32> to vector<8x128xf32>
    %351 = math.tanh %350 : vector<8x128xf32>
    %352 = vector.extract_strided_slice %333 {offsets = [0, 384], sizes = [8, 128], strides = [1, 1]} : vector<8x512xf32> to vector<8x128xf32>
    %cst_116 = arith.constant 0.000000e+00 : f32
    %353 = vector.broadcast %cst_116 : f32 to vector<8x128xf32>
    %354 = arith.subf %353, %352 : vector<8x128xf32>
    %355 = math.exp %354 : vector<8x128xf32>
    %cst_117 = arith.constant 1.000000e+00 : f32
    %356 = vector.broadcast %cst_117 : f32 to vector<8x128xf32>
    %357 = arith.addf %356, %355 : vector<8x128xf32>
    %cst_118 = arith.constant 1.000000e+00 : f32
    %358 = vector.broadcast %cst_118 : f32 to vector<8x128xf32>
    %359 = arith.divf %358, %357 : vector<8x128xf32>
    %360 = arith.mulf %349, %329 : vector<8x128xf32>
    %361 = arith.mulf %341, %351 : vector<8x128xf32>
    %362 = arith.addf %360, %361 : vector<8x128xf32>
    %363 = math.tanh %362 : vector<8x128xf32>
    %364 = arith.mulf %359, %363 : vector<8x128xf32>
    %cst_119 = arith.constant dense<0.000000e+00> : vector<8x512xf32>
    %365 = tpu.matmul %364, %4, %cst_119 {dimension_numbers = #tpu.dot_dimension_numbers<[1], [0], [0], [1], [0, 0, 1, 1], [], []>} : vector<8x128xf32>, vector<128x512xf32>, vector<8x512xf32> -> vector<8x512xf32>
    %366 = arith.addf %296, %365 : vector<8x512xf32>
    %367 = vector.extract_strided_slice %366 {offsets = [0, 0], sizes = [8, 128], strides = [1, 1]} : vector<8x512xf32> to vector<8x128xf32>
    %cst_120 = arith.constant 0.000000e+00 : f32
    %368 = vector.broadcast %cst_120 : f32 to vector<8x128xf32>
    %369 = arith.subf %368, %367 : vector<8x128xf32>
    %370 = math.exp %369 : vector<8x128xf32>
    %cst_121 = arith.constant 1.000000e+00 : f32
    %371 = vector.broadcast %cst_121 : f32 to vector<8x128xf32>
    %372 = arith.addf %371, %370 : vector<8x128xf32>
    %cst_122 = arith.constant 1.000000e+00 : f32
    %373 = vector.broadcast %cst_122 : f32 to vector<8x128xf32>
    %374 = arith.divf %373, %372 : vector<8x128xf32>
    %375 = vector.extract_strided_slice %366 {offsets = [0, 128], sizes = [8, 128], strides = [1, 1]} : vector<8x512xf32> to vector<8x128xf32>
    %cst_123 = arith.constant 0.000000e+00 : f32
    %376 = vector.broadcast %cst_123 : f32 to vector<8x128xf32>
    %377 = arith.subf %376, %375 : vector<8x128xf32>
    %378 = math.exp %377 : vector<8x128xf32>
    %cst_124 = arith.constant 1.000000e+00 : f32
    %379 = vector.broadcast %cst_124 : f32 to vector<8x128xf32>
    %380 = arith.addf %379, %378 : vector<8x128xf32>
    %cst_125 = arith.constant 1.000000e+00 : f32
    %381 = vector.broadcast %cst_125 : f32 to vector<8x128xf32>
    %382 = arith.divf %381, %380 : vector<8x128xf32>
    %383 = vector.extract_strided_slice %366 {offsets = [0, 256], sizes = [8, 128], strides = [1, 1]} : vector<8x512xf32> to vector<8x128xf32>
    %384 = math.tanh %383 : vector<8x128xf32>
    %385 = vector.extract_strided_slice %366 {offsets = [0, 384], sizes = [8, 128], strides = [1, 1]} : vector<8x512xf32> to vector<8x128xf32>
    %cst_126 = arith.constant 0.000000e+00 : f32
    %386 = vector.broadcast %cst_126 : f32 to vector<8x128xf32>
    %387 = arith.subf %386, %385 : vector<8x128xf32>
    %388 = math.exp %387 : vector<8x128xf32>
    %cst_127 = arith.constant 1.000000e+00 : f32
    %389 = vector.broadcast %cst_127 : f32 to vector<8x128xf32>
    %390 = arith.addf %389, %388 : vector<8x128xf32>
    %cst_128 = arith.constant 1.000000e+00 : f32
    %391 = vector.broadcast %cst_128 : f32 to vector<8x128xf32>
    %392 = arith.divf %391, %390 : vector<8x128xf32>
    %393 = arith.mulf %382, %362 : vector<8x128xf32>
    %394 = arith.mulf %374, %384 : vector<8x128xf32>
    %395 = arith.addf %393, %394 : vector<8x128xf32>
    %396 = math.tanh %395 : vector<8x128xf32>
    %397 = arith.mulf %392, %396 : vector<8x128xf32>
    %cst_129 = arith.constant dense<0.000000e+00> : vector<8x512xf32>
    %398 = tpu.matmul %397, %4, %cst_129 {dimension_numbers = #tpu.dot_dimension_numbers<[1], [0], [0], [1], [0, 0, 1, 1], [], []>} : vector<8x128xf32>, vector<128x512xf32>, vector<8x512xf32> -> vector<8x512xf32>
    %399 = arith.addf %296, %398 : vector<8x512xf32>
    %400 = vector.extract_strided_slice %399 {offsets = [0, 0], sizes = [8, 128], strides = [1, 1]} : vector<8x512xf32> to vector<8x128xf32>
    %cst_130 = arith.constant 0.000000e+00 : f32
    %401 = vector.broadcast %cst_130 : f32 to vector<8x128xf32>
    %402 = arith.subf %401, %400 : vector<8x128xf32>
    %403 = math.exp %402 : vector<8x128xf32>
    %cst_131 = arith.constant 1.000000e+00 : f32
    %404 = vector.broadcast %cst_131 : f32 to vector<8x128xf32>
    %405 = arith.addf %404, %403 : vector<8x128xf32>
    %cst_132 = arith.constant 1.000000e+00 : f32
    %406 = vector.broadcast %cst_132 : f32 to vector<8x128xf32>
    %407 = arith.divf %406, %405 : vector<8x128xf32>
    %408 = vector.extract_strided_slice %399 {offsets = [0, 128], sizes = [8, 128], strides = [1, 1]} : vector<8x512xf32> to vector<8x128xf32>
    %cst_133 = arith.constant 0.000000e+00 : f32
    %409 = vector.broadcast %cst_133 : f32 to vector<8x128xf32>
    %410 = arith.subf %409, %408 : vector<8x128xf32>
    %411 = math.exp %410 : vector<8x128xf32>
    %cst_134 = arith.constant 1.000000e+00 : f32
    %412 = vector.broadcast %cst_134 : f32 to vector<8x128xf32>
    %413 = arith.addf %412, %411 : vector<8x128xf32>
    %cst_135 = arith.constant 1.000000e+00 : f32
    %414 = vector.broadcast %cst_135 : f32 to vector<8x128xf32>
    %415 = arith.divf %414, %413 : vector<8x128xf32>
    %416 = vector.extract_strided_slice %399 {offsets = [0, 256], sizes = [8, 128], strides = [1, 1]} : vector<8x512xf32> to vector<8x128xf32>
    %417 = math.tanh %416 : vector<8x128xf32>
    %418 = vector.extract_strided_slice %399 {offsets = [0, 384], sizes = [8, 128], strides = [1, 1]} : vector<8x512xf32> to vector<8x128xf32>
    %cst_136 = arith.constant 0.000000e+00 : f32
    %419 = vector.broadcast %cst_136 : f32 to vector<8x128xf32>
    %420 = arith.subf %419, %418 : vector<8x128xf32>
    %421 = math.exp %420 : vector<8x128xf32>
    %cst_137 = arith.constant 1.000000e+00 : f32
    %422 = vector.broadcast %cst_137 : f32 to vector<8x128xf32>
    %423 = arith.addf %422, %421 : vector<8x128xf32>
    %cst_138 = arith.constant 1.000000e+00 : f32
    %424 = vector.broadcast %cst_138 : f32 to vector<8x128xf32>
    %425 = arith.divf %424, %423 : vector<8x128xf32>
    %426 = arith.mulf %415, %395 : vector<8x128xf32>
    %427 = arith.mulf %407, %417 : vector<8x128xf32>
    %428 = arith.addf %426, %427 : vector<8x128xf32>
    %429 = math.tanh %428 : vector<8x128xf32>
    %430 = arith.mulf %425, %429 : vector<8x128xf32>
    %cst_139 = arith.constant dense<0.000000e+00> : vector<8x512xf32>
    %431 = tpu.matmul %430, %4, %cst_139 {dimension_numbers = #tpu.dot_dimension_numbers<[1], [0], [0], [1], [0, 0, 1, 1], [], []>} : vector<8x128xf32>, vector<128x512xf32>, vector<8x512xf32> -> vector<8x512xf32>
    %432 = arith.addf %296, %431 : vector<8x512xf32>
    %433 = vector.extract_strided_slice %432 {offsets = [0, 0], sizes = [8, 128], strides = [1, 1]} : vector<8x512xf32> to vector<8x128xf32>
    %cst_140 = arith.constant 0.000000e+00 : f32
    %434 = vector.broadcast %cst_140 : f32 to vector<8x128xf32>
    %435 = arith.subf %434, %433 : vector<8x128xf32>
    %436 = math.exp %435 : vector<8x128xf32>
    %cst_141 = arith.constant 1.000000e+00 : f32
    %437 = vector.broadcast %cst_141 : f32 to vector<8x128xf32>
    %438 = arith.addf %437, %436 : vector<8x128xf32>
    %cst_142 = arith.constant 1.000000e+00 : f32
    %439 = vector.broadcast %cst_142 : f32 to vector<8x128xf32>
    %440 = arith.divf %439, %438 : vector<8x128xf32>
    %441 = vector.extract_strided_slice %432 {offsets = [0, 128], sizes = [8, 128], strides = [1, 1]} : vector<8x512xf32> to vector<8x128xf32>
    %cst_143 = arith.constant 0.000000e+00 : f32
    %442 = vector.broadcast %cst_143 : f32 to vector<8x128xf32>
    %443 = arith.subf %442, %441 : vector<8x128xf32>
    %444 = math.exp %443 : vector<8x128xf32>
    %cst_144 = arith.constant 1.000000e+00 : f32
    %445 = vector.broadcast %cst_144 : f32 to vector<8x128xf32>
    %446 = arith.addf %445, %444 : vector<8x128xf32>
    %cst_145 = arith.constant 1.000000e+00 : f32
    %447 = vector.broadcast %cst_145 : f32 to vector<8x128xf32>
    %448 = arith.divf %447, %446 : vector<8x128xf32>
    %449 = vector.extract_strided_slice %432 {offsets = [0, 256], sizes = [8, 128], strides = [1, 1]} : vector<8x512xf32> to vector<8x128xf32>
    %450 = math.tanh %449 : vector<8x128xf32>
    %451 = vector.extract_strided_slice %432 {offsets = [0, 384], sizes = [8, 128], strides = [1, 1]} : vector<8x512xf32> to vector<8x128xf32>
    %cst_146 = arith.constant 0.000000e+00 : f32
    %452 = vector.broadcast %cst_146 : f32 to vector<8x128xf32>
    %453 = arith.subf %452, %451 : vector<8x128xf32>
    %454 = math.exp %453 : vector<8x128xf32>
    %cst_147 = arith.constant 1.000000e+00 : f32
    %455 = vector.broadcast %cst_147 : f32 to vector<8x128xf32>
    %456 = arith.addf %455, %454 : vector<8x128xf32>
    %cst_148 = arith.constant 1.000000e+00 : f32
    %457 = vector.broadcast %cst_148 : f32 to vector<8x128xf32>
    %458 = arith.divf %457, %456 : vector<8x128xf32>
    %459 = arith.mulf %448, %428 : vector<8x128xf32>
    %460 = arith.mulf %440, %450 : vector<8x128xf32>
    %461 = arith.addf %459, %460 : vector<8x128xf32>
    %462 = math.tanh %461 : vector<8x128xf32>
    %463 = arith.mulf %458, %462 : vector<8x128xf32>
    %cst_149 = arith.constant dense<0.000000e+00> : vector<8x512xf32>
    %464 = tpu.matmul %463, %4, %cst_149 {dimension_numbers = #tpu.dot_dimension_numbers<[1], [0], [0], [1], [0, 0, 1, 1], [], []>} : vector<8x128xf32>, vector<128x512xf32>, vector<8x512xf32> -> vector<8x512xf32>
    %465 = arith.addf %296, %464 : vector<8x512xf32>
    %466 = vector.extract_strided_slice %465 {offsets = [0, 0], sizes = [8, 128], strides = [1, 1]} : vector<8x512xf32> to vector<8x128xf32>
    %cst_150 = arith.constant 0.000000e+00 : f32
    %467 = vector.broadcast %cst_150 : f32 to vector<8x128xf32>
    %468 = arith.subf %467, %466 : vector<8x128xf32>
    %469 = math.exp %468 : vector<8x128xf32>
    %cst_151 = arith.constant 1.000000e+00 : f32
    %470 = vector.broadcast %cst_151 : f32 to vector<8x128xf32>
    %471 = arith.addf %470, %469 : vector<8x128xf32>
    %cst_152 = arith.constant 1.000000e+00 : f32
    %472 = vector.broadcast %cst_152 : f32 to vector<8x128xf32>
    %473 = arith.divf %472, %471 : vector<8x128xf32>
    %474 = vector.extract_strided_slice %465 {offsets = [0, 128], sizes = [8, 128], strides = [1, 1]} : vector<8x512xf32> to vector<8x128xf32>
    %cst_153 = arith.constant 0.000000e+00 : f32
    %475 = vector.broadcast %cst_153 : f32 to vector<8x128xf32>
    %476 = arith.subf %475, %474 : vector<8x128xf32>
    %477 = math.exp %476 : vector<8x128xf32>
    %cst_154 = arith.constant 1.000000e+00 : f32
    %478 = vector.broadcast %cst_154 : f32 to vector<8x128xf32>
    %479 = arith.addf %478, %477 : vector<8x128xf32>
    %cst_155 = arith.constant 1.000000e+00 : f32
    %480 = vector.broadcast %cst_155 : f32 to vector<8x128xf32>
    %481 = arith.divf %480, %479 : vector<8x128xf32>
    %482 = vector.extract_strided_slice %465 {offsets = [0, 256], sizes = [8, 128], strides = [1, 1]} : vector<8x512xf32> to vector<8x128xf32>
    %483 = math.tanh %482 : vector<8x128xf32>
    %484 = vector.extract_strided_slice %465 {offsets = [0, 384], sizes = [8, 128], strides = [1, 1]} : vector<8x512xf32> to vector<8x128xf32>
    %cst_156 = arith.constant 0.000000e+00 : f32
    %485 = vector.broadcast %cst_156 : f32 to vector<8x128xf32>
    %486 = arith.subf %485, %484 : vector<8x128xf32>
    %487 = math.exp %486 : vector<8x128xf32>
    %cst_157 = arith.constant 1.000000e+00 : f32
    %488 = vector.broadcast %cst_157 : f32 to vector<8x128xf32>
    %489 = arith.addf %488, %487 : vector<8x128xf32>
    %cst_158 = arith.constant 1.000000e+00 : f32
    %490 = vector.broadcast %cst_158 : f32 to vector<8x128xf32>
    %491 = arith.divf %490, %489 : vector<8x128xf32>
    %492 = arith.mulf %481, %461 : vector<8x128xf32>
    %493 = arith.mulf %473, %483 : vector<8x128xf32>
    %494 = arith.addf %492, %493 : vector<8x128xf32>
    %495 = math.tanh %494 : vector<8x128xf32>
    %496 = arith.mulf %491, %495 : vector<8x128xf32>
    %cst_159 = arith.constant dense<0.000000e+00> : vector<8x512xf32>
    %497 = tpu.matmul %496, %4, %cst_159 {dimension_numbers = #tpu.dot_dimension_numbers<[1], [0], [0], [1], [0, 0, 1, 1], [], []>} : vector<8x128xf32>, vector<128x512xf32>, vector<8x512xf32> -> vector<8x512xf32>
    %498 = arith.addf %296, %497 : vector<8x512xf32>
    %499 = vector.extract_strided_slice %498 {offsets = [0, 0], sizes = [8, 128], strides = [1, 1]} : vector<8x512xf32> to vector<8x128xf32>
    %cst_160 = arith.constant 0.000000e+00 : f32
    %500 = vector.broadcast %cst_160 : f32 to vector<8x128xf32>
    %501 = arith.subf %500, %499 : vector<8x128xf32>
    %502 = math.exp %501 : vector<8x128xf32>
    %cst_161 = arith.constant 1.000000e+00 : f32
    %503 = vector.broadcast %cst_161 : f32 to vector<8x128xf32>
    %504 = arith.addf %503, %502 : vector<8x128xf32>
    %cst_162 = arith.constant 1.000000e+00 : f32
    %505 = vector.broadcast %cst_162 : f32 to vector<8x128xf32>
    %506 = arith.divf %505, %504 : vector<8x128xf32>
    %507 = vector.extract_strided_slice %498 {offsets = [0, 128], sizes = [8, 128], strides = [1, 1]} : vector<8x512xf32> to vector<8x128xf32>
    %cst_163 = arith.constant 0.000000e+00 : f32
    %508 = vector.broadcast %cst_163 : f32 to vector<8x128xf32>
    %509 = arith.subf %508, %507 : vector<8x128xf32>
    %510 = math.exp %509 : vector<8x128xf32>
    %cst_164 = arith.constant 1.000000e+00 : f32
    %511 = vector.broadcast %cst_164 : f32 to vector<8x128xf32>
    %512 = arith.addf %511, %510 : vector<8x128xf32>
    %cst_165 = arith.constant 1.000000e+00 : f32
    %513 = vector.broadcast %cst_165 : f32 to vector<8x128xf32>
    %514 = arith.divf %513, %512 : vector<8x128xf32>
    %515 = vector.extract_strided_slice %498 {offsets = [0, 256], sizes = [8, 128], strides = [1, 1]} : vector<8x512xf32> to vector<8x128xf32>
    %516 = math.tanh %515 : vector<8x128xf32>
    %517 = vector.extract_strided_slice %498 {offsets = [0, 384], sizes = [8, 128], strides = [1, 1]} : vector<8x512xf32> to vector<8x128xf32>
    %cst_166 = arith.constant 0.000000e+00 : f32
    %518 = vector.broadcast %cst_166 : f32 to vector<8x128xf32>
    %519 = arith.subf %518, %517 : vector<8x128xf32>
    %520 = math.exp %519 : vector<8x128xf32>
    %cst_167 = arith.constant 1.000000e+00 : f32
    %521 = vector.broadcast %cst_167 : f32 to vector<8x128xf32>
    %522 = arith.addf %521, %520 : vector<8x128xf32>
    %cst_168 = arith.constant 1.000000e+00 : f32
    %523 = vector.broadcast %cst_168 : f32 to vector<8x128xf32>
    %524 = arith.divf %523, %522 : vector<8x128xf32>
    %525 = arith.mulf %514, %494 : vector<8x128xf32>
    %526 = arith.mulf %506, %516 : vector<8x128xf32>
    %527 = arith.addf %525, %526 : vector<8x128xf32>
    %528 = math.tanh %527 : vector<8x128xf32>
    %529 = arith.mulf %524, %528 : vector<8x128xf32>
    %cst_169 = arith.constant dense<0.000000e+00> : vector<8x512xf32>
    %530 = tpu.matmul %529, %4, %cst_169 {dimension_numbers = #tpu.dot_dimension_numbers<[1], [0], [0], [1], [0, 0, 1, 1], [], []>} : vector<8x128xf32>, vector<128x512xf32>, vector<8x512xf32> -> vector<8x512xf32>
    %531 = arith.addf %296, %530 : vector<8x512xf32>
    %532 = vector.extract_strided_slice %531 {offsets = [0, 0], sizes = [8, 128], strides = [1, 1]} : vector<8x512xf32> to vector<8x128xf32>
    %cst_170 = arith.constant 0.000000e+00 : f32
    %533 = vector.broadcast %cst_170 : f32 to vector<8x128xf32>
    %534 = arith.subf %533, %532 : vector<8x128xf32>
    %535 = math.exp %534 : vector<8x128xf32>
    %cst_171 = arith.constant 1.000000e+00 : f32
    %536 = vector.broadcast %cst_171 : f32 to vector<8x128xf32>
    %537 = arith.addf %536, %535 : vector<8x128xf32>
    %cst_172 = arith.constant 1.000000e+00 : f32
    %538 = vector.broadcast %cst_172 : f32 to vector<8x128xf32>
    %539 = arith.divf %538, %537 : vector<8x128xf32>
    %540 = vector.extract_strided_slice %531 {offsets = [0, 128], sizes = [8, 128], strides = [1, 1]} : vector<8x512xf32> to vector<8x128xf32>
    %cst_173 = arith.constant 0.000000e+00 : f32
    %541 = vector.broadcast %cst_173 : f32 to vector<8x128xf32>
    %542 = arith.subf %541, %540 : vector<8x128xf32>
    %543 = math.exp %542 : vector<8x128xf32>
    %cst_174 = arith.constant 1.000000e+00 : f32
    %544 = vector.broadcast %cst_174 : f32 to vector<8x128xf32>
    %545 = arith.addf %544, %543 : vector<8x128xf32>
    %cst_175 = arith.constant 1.000000e+00 : f32
    %546 = vector.broadcast %cst_175 : f32 to vector<8x128xf32>
    %547 = arith.divf %546, %545 : vector<8x128xf32>
    %548 = vector.extract_strided_slice %531 {offsets = [0, 256], sizes = [8, 128], strides = [1, 1]} : vector<8x512xf32> to vector<8x128xf32>
    %549 = math.tanh %548 : vector<8x128xf32>
    %550 = vector.extract_strided_slice %531 {offsets = [0, 384], sizes = [8, 128], strides = [1, 1]} : vector<8x512xf32> to vector<8x128xf32>
    %cst_176 = arith.constant 0.000000e+00 : f32
    %551 = vector.broadcast %cst_176 : f32 to vector<8x128xf32>
    %552 = arith.subf %551, %550 : vector<8x128xf32>
    %553 = math.exp %552 : vector<8x128xf32>
    %cst_177 = arith.constant 1.000000e+00 : f32
    %554 = vector.broadcast %cst_177 : f32 to vector<8x128xf32>
    %555 = arith.addf %554, %553 : vector<8x128xf32>
    %cst_178 = arith.constant 1.000000e+00 : f32
    %556 = vector.broadcast %cst_178 : f32 to vector<8x128xf32>
    %557 = arith.divf %556, %555 : vector<8x128xf32>
    %558 = arith.mulf %547, %527 : vector<8x128xf32>
    %559 = arith.mulf %539, %549 : vector<8x128xf32>
    %560 = arith.addf %558, %559 : vector<8x128xf32>
    %561 = math.tanh %560 : vector<8x128xf32>
    %562 = arith.mulf %557, %561 : vector<8x128xf32>
    %563 = tpu.concatenate %331, %364, %397, %430, %463, %496, %529, %562 in 1 : vector<8x128xf32>, vector<8x128xf32>, vector<8x128xf32>, vector<8x128xf32>, vector<8x128xf32>, vector<8x128xf32>, vector<8x128xf32>, vector<8x128xf32> -> vector<8x1024xf32>
    %c0_179 = arith.constant 0 : index
    %c0_180 = arith.constant 0 : index
    %564 = vector.load %arg8[%c0_179, %c0_180] : memref<8x1024xf32, #tpu.memory_space<vmem>>, vector<8x1024xf32>
    tpu.vector_store %arg8[%c0_179, %c0_180], %563 {strides = array<i32>} : memref<8x1024xf32, #tpu.memory_space<vmem>>, vector<8x1024xf32>,
    return
  }
  func.func @transform_0(%arg0: i32) -> (i32, i32, i32) {
    %c0_i32 = arith.constant 0 : i32
    %c0_i32_0 = arith.constant 0 : i32
    %c0_i32_1 = arith.constant 0 : i32
    return %c0_i32, %arg0, %c0_i32_0 : i32, i32, i32
  }
  func.func @transform_1(%arg0: i32) -> (i32, i32) {
    %c0_i32 = arith.constant 0 : i32
    %c0_i32_0 = arith.constant 0 : i32
    %c0_i32_1 = arith.constant 0 : i32
    return %c0_i32, %c0_i32_0 : i32, i32
  }
  func.func @transform_2(%arg0: i32) -> (i32, i32) {
    %c0_i32 = arith.constant 0 : i32
    %c0_i32_0 = arith.constant 0 : i32
    %c0_i32_1 = arith.constant 0 : i32
    return %c0_i32, %c0_i32_0 : i32, i32
  }
  func.func @transform_3(%arg0: i32) -> (i32, i32) {
    %c0_i32 = arith.constant 0 : i32
    %c0_i32_0 = arith.constant 0 : i32
    %c0_i32_1 = arith.constant 0 : i32
    return %c0_i32, %c0_i32_0 : i32, i32
  }
  func.func @transform_4(%arg0: i32) -> (i32, i32) {
    %c0_i32 = arith.constant 0 : i32
    %c0_i32_0 = arith.constant 0 : i32
    %c0_i32_1 = arith.constant 0 : i32
    return %c0_i32, %c0_i32_0 : i32, i32
  }
  func.func @transform_5(%arg0: i32) -> (i32, i32) {
    %c0_i32 = arith.constant 0 : i32
    %c0_i32_0 = arith.constant 0 : i32
    %c0_i32_1 = arith.constant 0 : i32
    return %c0_i32, %c0_i32_0 : i32, i32
  }
  func.func @transform_6(%arg0: i32) -> (i32, i32) {
    %c0_i32 = arith.constant 0 : i32
    %c0_i32_0 = arith.constant 0 : i32
    %c0_i32_1 = arith.constant 0 : i32
    return %c0_i32, %c0_i32_0 : i32, i32
  }
  func.func @transform_7(%arg0: i32) -> (i32, i32) {
    %c0_i32 = arith.constant 0 : i32
    %c0_i32_0 = arith.constant 0 : i32
    return %arg0, %c0_i32 : i32, i32
  }
}

</mosaic_0001>

<bundles_post_ra>
// kernel: tpu_custom_call.1
= control target key start
LH: loop header
LB: loop body
LE: loop exit
PB: predicated region body
PF: predicated region fallthrough
CT: control target
= control target key end

     0   :  { %12 = vsyncpa [#allocation3], 0  ;;  %s6056_s0 = inlined_call_operand.hbm [shape: f32[8,8,8], index: 0, kind: input, shape index: {}]   ;;  %s6057_s1 = inlined_call_operand.hbm [shape: f32[8,512], index: 1, kind: input, shape index: {}]   ;;  %s6058_s2 = inlined_call_operand.hbm [shape: f32[128,512], index: 2, kind: input, shape index: {}]   ;;  %s6059_s3 = inlined_call_operand.vmem [shape: f32[1,512], index: 3, kind: input, shape index: {}]   ;;  %s6060_s4 = inlined_call_operand.hbm [shape: f32[128,512], index: 4, kind: input, shape index: {}]   ;;  %s6061_s5 = inlined_call_operand.hbm [shape: f32[128,512], index: 5, kind: input, shape index: {}]   ;;  %s6062_s6 = inlined_call_operand.vmem [shape: f32[1,512], index: 6, kind: input, shape index: {}]   ;;  %s6063_s7 = inlined_call_operand.hbm [shape: f32[8,1024], index: 7, kind: output, shape index: {}]  }
   0x1   :  { %13 = vsyncpa [#allocation6], 0 }
   0x2   :  { %14 = vsyncpa [#allocation9], 0 }
   0x3   :  { %15 = vsyncpa [#allocation4], 0  ;;  %s5054_s24 = smov [#allocation5]   ;;  %s4914_s28 = scalar_lea.hbm %s6057_s1, 512 }
   0x4   :  { %s34_s25 = sshll.u32 %s5054_s24, 4  ;;  %p4915_p0 = scmp.ne.s32.totalorder %s6057_s1, %s4914_s28  ;;  %s35_s25 = int_to_ptr.vmem [resolvable:$true] %s34_s25 }
   0x5   :  { %p4918_p1 = scmp.lt.u32.totalorder %s4914_s28, %s6057_s1 }
   0x7   :  { %p4920_p2 = pnand %p4918_p1, %p4915_p0 }
   0x9   :  { %4923 = shalt.err (!%p4920_p2)
}
   0xa   :  { %s4924_s10 = scalar_lea.vmem %s35_s25, 512  ;;  %p4929_p4 = scmp.lt.s32.totalorder %s35_s25, %s35_s25 }
   0xb   :  { %p4925_p3 = scmp.ne.s32.totalorder %s35_s25, %s4924_s10  ;;  %p4930_p5 = scmp.lt.s32.totalorder %s4924_s10, %s4924_s10 }
   0xd   :  { %p4931_p6 = por %p4930_p5, %p4929_p4 }
   0xf   :  { %p4932_p7 = pnand %p4931_p6, %p4925_p3 }
  0x11   :  { %4935 = shalt.err (!%p4932_p7)
}
  0x12   :  { %37 = dma.hbm_to_vmem [thread:$0]  %s6057_s1, 512, %s35_s25, [#allocation6]  }
  0x13   :  { %s5055_s13 = smov [#allocation8]   ;;  %s5056_s15 = smov [#allocation2]  }
  0x14   :  { %s57_s14 = sshll.u32 %s5055_s13, 4  ;;  %s21_s16 = sshll.u32 %s5056_s15, 4  ;;  %s58_s14 = int_to_ptr.vmem [resolvable:$true] %s57_s14  ;;  %s22_s16 = int_to_ptr.vmem [resolvable:$true] %s21_s16 }
  0x15   :  { %s4936_s19 = scalar_lea.hbm %s6060_s4, 8192 }
  0x16   :  { %p4937_p8 = scmp.ne.s32.totalorder %s6060_s4, %s4936_s19  ;;  %p4940_p9 = scmp.lt.u32.totalorder %s4936_s19, %s6060_s4 }
  0x18   :  { %p4942_p10 = pnand %p4940_p9, %p4937_p8 }
  0x1a   :  { %4945 = shalt.err (!%p4942_p10)
}
  0x1b   :  { %s4946_s1 = scalar_lea.vmem %s58_s14, 8192  ;;  %p4951_p12 = scmp.lt.s32.totalorder %s58_s14, %s58_s14 }
  0x1c   :  { %p4947_p11 = scmp.ne.s32.totalorder %s58_s14, %s4946_s1  ;;  %p4952_p13 = scmp.lt.s32.totalorder %s4946_s1, %s4946_s1 }
  0x1e   :  { %p4953_p0 = por %p4952_p13, %p4951_p12 }
  0x20   :  { %p4954_p1 = pnand %p4953_p0, %p4947_p11 }
  0x22   :  { %4957 = shalt.err (!%p4954_p1)
}
  0x23   :  { %s5057_s24 = smov 512   ;;  %s5058_s25 = smov 32  }
  0x24   :  { %63 = dma.hbm_to_vmem [thread:$0]  %s6060_s4, 8192, %s58_s14, [#allocation9], %s5057_s24, %s5057_s24, %s5058_s25  }
  0x25   :  { %s4958_s30 = scalar_lea.hbm %s6056_s0, 1024 }
  0x26   :  { %p4959_p2 = scmp.ne.s32.totalorder %s6056_s0, %s4958_s30  ;;  %p4962_p3 = scmp.lt.u32.totalorder %s4958_s30, %s6056_s0 }
  0x28   :  { %p4964_p4 = pnand %p4962_p3, %p4959_p2 }
  0x2a   :  { %4967 = shalt.err (!%p4964_p4)
}
  0x2b   :  { %s4968_s12 = scalar_lea.vmem %s22_s16, 1024  ;;  %p4973_p6 = scmp.lt.s32.totalorder %s22_s16, %s22_s16 }
  0x2c   :  { %p4969_p5 = scmp.ne.s32.totalorder %s22_s16, %s4968_s12  ;;  %p4974_p7 = scmp.lt.s32.totalorder %s4968_s12, %s4968_s12 }
  0x2e   :  { %p4975_p8 = por %p4974_p7, %p4973_p6 }
  0x30   :  { %p4976_p9 = pnand %p4975_p8, %p4969_p5 }
  0x32   :  { %4979 = shalt.err (!%p4976_p9)
}
  0x33   :  { %s5059_s4 = smov 128   ;;  %s5060_s13 = smov 8  }
  0x34   :  { %27 = dma.hbm_to_vmem [thread:$0]  %s6056_s0, 1024, %s22_s16, [#allocation3], %s5059_s4, %s5059_s4, %s5060_s13  }
  0x35   :  { %s5061_s17 = smov [#allocation7]   ;;  %s5062_s19 = smov [#allocation10]  }
  0x36   :  { %s43_s18 = sshll.u32 %s5061_s17, 4  ;;  %s69_s20 = sshll.u32 %s5062_s19, 4  ;;  %s44_s18 = int_to_ptr.vmem [resolvable:$true] %s43_s18  ;;  %s70_s20 = int_to_ptr.vmem [resolvable:$true] %s69_s20 }
  0x37   :  { %s4980_s23 = scalar_lea.hbm %s6058_s2, 8192 }
  0x38   :  { %p4981_p10 = scmp.ne.s32.totalorder %s6058_s2, %s4980_s23  ;;  %p4984_p11 = scmp.lt.u32.totalorder %s4980_s23, %s6058_s2 }
  0x3a   :  { %p4986_p12 = pnand %p4984_p11, %p4981_p10 }
  0x3c   :  { %4989 = shalt.err (!%p4986_p12)
}
  0x3d   :  { %s4990_s0 = scalar_lea.vmem %s44_s18, 8192  ;;  %p4995_p0 = scmp.lt.s32.totalorder %s44_s18, %s44_s18 }
  0x3e   :  { %p4991_p13 = scmp.ne.s32.totalorder %s44_s18, %s4990_s0  ;;  %p4996_p1 = scmp.lt.s32.totalorder %s4990_s0, %s4990_s0 }
  0x40   :  { %p4997_p2 = por %p4996_p1, %p4995_p0 }
  0x42   :  { %p4998_p3 = pnand %p4997_p2, %p4991_p13 }
  0x44   :  { %5001 = shalt.err (!%p4998_p3)
}
  0x45   :  { %49 = dma.hbm_to_vmem [thread:$0]  %s6058_s2, 8192, %s44_s18, [#allocation6], %s5057_s24, %s5057_s24, %s5058_s25  }
  0x46   :  { %s5002_s9 = scalar_lea.hbm %s6061_s5, 8192 }
  0x47   :  { %p5003_p4 = scmp.ne.s32.totalorder %s6061_s5, %s5002_s9  ;;  %p5006_p5 = scmp.lt.u32.totalorder %s5002_s9, %s6061_s5 }
  0x49   :  { %p5008_p6 = pnand %p5006_p5, %p5003_p4 }
  0x4b   :  { %5011 = shalt.err (!%p5008_p6)
}
  0x4c   :  { %s5012_s13 = scalar_lea.vmem %s70_s20, 8192  ;;  %p5017_p8 = scmp.lt.s32.totalorder %s70_s20, %s70_s20 }
  0x4d   :  { %p5013_p7 = scmp.ne.s32.totalorder %s70_s20, %s5012_s13  ;;  %p5018_p9 = scmp.lt.s32.totalorder %s5012_s13, %s5012_s13 }
  0x4f   :  { %p5019_p10 = por %p5018_p9, %p5017_p8 }
  0x51   :  { %p5020_p11 = pnand %p5019_p10, %p5013_p7 }
  0x53   :  { %5023 = shalt.err (!%p5020_p11)
}
  0x54   :  { %75 = dma.hbm_to_vmem [thread:$0]  %s6061_s5, 8192, %s70_s20, [#allocation9], %s5057_s24, %s5057_s24, %s5058_s25  }
  0x55   :  { %5046 = dma.done.wait [#allocation3], 1024  }
  0x56   :  { %5047 = vsyncadd [#allocation3], 4294966272 }
  0x57   :  { %5048 = dma.done.wait [#allocation6], 8704  }
  0x58   :  { %5049 = vsyncadd [#allocation6], 4294958592 }
  0x59   :  { %5050 = dma.done.wait [#allocation9], 16384  }
  0x5a   :  { %5051 = vsyncadd [#allocation9], 4294950912  ;;  %v5063_v0 = vmov 0.0   ;;  %v94_v1 = vld [vmem:[#allocation5 + $0x8] sm:$0xff]  ;;  %v96_v2 = vld [vmem:[#allocation5 + $0x18] sm:$0xff]  ;;  %vm320_vm0 = vcmask 64512  }
  0x5b   :  { %409 = vmatprep.mubr.f32.mxu0 %v5063_v0  ;;  %522 = vmatprep.mubr.f32.mxu1 %v5063_v0  ;;  %v93_v3 = vld [vmem:[#allocation5] sm:$0xff]  ;;  %v95_v4 = vld [vmem:[#allocation5 + $0x10] sm:$0xff]  ;;  %v98_v6 = vld [vmem:[#allocation7 + $0x8] sm:$0xff] }
  0x5c   :  { %345 = vmatprep.subr.mxu0 %v94_v1  ;;  %458 = vmatprep.subr.mxu1 %v96_v2  ;;  %v291_v5 = vld [vmem:[#allocation2] sm:$0xff]  ;;  %v102_v7 = vld [vmem:[#allocation7 + $0x28] sm:$0xff]  ;;  %v100_v8 = vld [vmem:[#allocation7 + $0x18] sm:$0xff] }
  0x5d   :  { %346 = vmatpush1.msra.mxu0 %v93_v3  ;;  %459 = vmatpush1.msra.mxu1 %v95_v4  ;;  %v104_v9 = vld [vmem:[#allocation7 + $0x38] sm:$0xff]  ;;  %v5178_v10 = vpack.c.bf16 %v102_v7, %v98_v6  ;;  %v97_v12 = vld [vmem:[#allocation7] sm:$0xff]  ;;  %v99_v14 = vld [vmem:[#allocation7 + $0x10] sm:$0xff] }
  0x5e   :  { %3479 = vmatmul.mubr.msk.f32.vlgmr.msra.gmra.mrb[0].mxu0 %vm320_vm0, %v291_v5  ;;  %3487 = vmatmul.mubr.msk.f32.vlgmr.msra.gmra.mrb[0].mxu1 %vm320_vm0, %v291_v5  ;;  %v5180_v11 = vpack.c.bf16 %v104_v9, %v100_v8  ;;  %v101_v13 = vld [vmem:[#allocation7 + $0x20] sm:$0xff]  ;;  %v103_v16 = vld [vmem:[#allocation7 + $0x30] sm:$0xff]  ;;  %v292_v17 = vld [vmem:[#allocation2 + $0x8] sm:$0xff] }
  0x5f   :  { %v5182_v15 = vpack.c.bf16 %v101_v13, %v97_v12  ;;  %415 = vmatprep.mubr.f32.mxu0 %v5063_v0  ;;  %528 = vmatprep.mubr.f32.mxu1 %v5063_v0  ;;  %v106_v18 = vld [vmem:[#allocation7 + $0x48] sm:$0xff]  ;;  %v5188_v19 = vpack.c.bf16 %v103_v16, %v99_v14  ;;  %v108_v21 = vld [vmem:[#allocation7 + $0x58] sm:$0xff]  ;;  %v105_v25 = vld [vmem:[#allocation7 + $0x40] sm:$0xff] }
  0x60   :  { %3496 = vmatprep.subr.bf16.mxu0 %v5178_v10  ;;  %3528 = vmatprep.subr.bf16.mxu1 %v5180_v11  ;;  %v110_v20 = vld [vmem:[#allocation7 + $0x68] sm:$0xff]  ;;  %v112_v22 = vld [vmem:[#allocation7 + $0x78] sm:$0xff]  ;;  %v109_v26 = vld [vmem:[#allocation7 + $0x60] sm:$0xff] }
  0x61   :  { %3498 = vmatpush1.bf16.msra.mxu0 %v5182_v15  ;;  %v5191_v23 = vpack.c.bf16 %v110_v20, %v106_v18  ;;  %v5193_v24 = vpack.c.bf16 %v112_v22, %v108_v21  ;;  %v107_v27 = vld [vmem:[#allocation7 + $0x50] sm:$0xff]  ;;  %3530 = vmatpush1.bf16.msra.mxu1 %v5188_v19  ;;  %v5197_v28 = vpack.c.bf16 %v109_v26, %v105_v25  ;;  %v114_v31 = vld [vmem:[#allocation7 + $0x88] sm:$0xff]  ;;  %v116_v34 = vld [vmem:[#allocation7 + $0x98] sm:$0xff] }
  0x62   :  { %3480 = vmatmul.mubr.msk.f32.gmra.mrb[2].mxu0 %vm320_vm0, %v292_v17  ;;  %v111_v29 = vld [vmem:[#allocation7 + $0x70] sm:$0xff]  ;;  %3488 = vmatmul.mubr.msk.f32.gmra.mrb[2].mxu1 %vm320_vm0, %v292_v17  ;;  %v118_v33 = vld [vmem:[#allocation7 + $0xa8] sm:$0xff]  ;;  %v120_v35 = vld [vmem:[#allocation7 + $0xb8] sm:$0xff] }
  0x63   :  { %v293_v30 = vld [vmem:[#allocation2 + $0x10] sm:$0xff]  ;;  %3500 = vmatprep.subr.bf16.mxu0 %v5191_v23  ;;  %v5201_v32 = vpack.c.bf16 %v111_v29, %v107_v27  ;;  %3532 = vmatprep.subr.bf16.mxu1 %v5193_v24  ;;  %v5205_v36 = vpack.c.bf16 %v118_v33, %v114_v31  ;;  %v5207_v37 = vpack.c.bf16 %v120_v35, %v116_v34  ;;  %v113_v38 = vld [vmem:[#allocation7 + $0x80] sm:$0xff]  ;;  %v294_v43 = vld [vmem:[#allocation2 + $0x18] sm:$0xff] }
  0x64   :  { %421 = vmatprep.mubr.f32.mxu0 %v5063_v0  ;;  %v117_v39 = vld [vmem:[#allocation7 + $0xa0] sm:$0xff]  ;;  %v115_v40 = vld [vmem:[#allocation7 + $0x90] sm:$0xff]  ;;  %534 = vmatprep.mubr.f32.mxu1 %v5063_v0  ;;  %v122_v44 = vld [vmem:[#allocation7 + $0xc8] sm:$0xff] }
  0x65   :  { %3502 = vmatpush1.bf16.msra.mxu0 %v5197_v28  ;;  %v5211_v41 = vpack.c.bf16 %v117_v39, %v113_v38  ;;  %v119_v42 = vld [vmem:[#allocation7 + $0xb0] sm:$0xff]  ;;  %3534 = vmatpush1.bf16.msra.mxu1 %v5201_v32  ;;  %v126_v46 = vld [vmem:[#allocation7 + $0xe8] sm:$0xff]  ;;  %v124_v47 = vld [vmem:[#allocation7 + $0xd8] sm:$0xff] }
  0x66   :  { %3481 = vmatmul.mubr.msk.f32.gmra.mrb[4].mxu0 %vm320_vm0, %v293_v30  ;;  %v5215_v45 = vpack.c.bf16 %v119_v42, %v115_v40  ;;  %v128_v48 = vld [vmem:[#allocation7 + $0xf8] sm:$0xff]  ;;  %3489 = vmatmul.mubr.msk.f32.gmra.mrb[4].mxu1 %vm320_vm0, %v293_v30  ;;  %v5219_v49 = vpack.c.bf16 %v126_v46, %v122_v44  ;;  %v121_v50 = vld [vmem:[#allocation7 + $0xc0] sm:$0xff]  ;;  %v123_v52 = vld [vmem:[#allocation7 + $0xd0] sm:$0xff] }
  0x67   :  { %3504 = vmatprep.subr.bf16.mxu0 %v5205_v36  ;;  %v125_v51 = vld [vmem:[#allocation7 + $0xe0] sm:$0xff]  ;;  %3536 = vmatprep.subr.bf16.mxu1 %v5207_v37  ;;  %v5223_v53 = vpack.c.bf16 %v128_v48, %v124_v47  ;;  %v127_v54 = vld [vmem:[#allocation7 + $0xf0] sm:$0xff]  ;;  %v130_v55 = vld [vmem:[#allocation7 + $0x108] sm:$0xff] }
  0x68   :  { %427 = vmatprep.mubr.f32.mxu0 %v5063_v0  ;;  %540 = vmatprep.mubr.f32.mxu1 %v5063_v0  ;;  %v5227_v56 = vpack.c.bf16 %v125_v51, %v121_v50  ;;  %v134_v57 = vld [vmem:[#allocation7 + $0x128] sm:$0xff]  ;;  %v132_v58 = vld [vmem:[#allocation7 + $0x118] sm:$0xff]  ;;  %v5231_v60 = vpack.c.bf16 %v127_v54, %v123_v52  ;;  %v129_v61 = vld [vmem:[#allocation7 + $0x100] sm:$0xff] }
  0x69   :  { %3506 = vmatpush1.bf16.msra.mxu0 %v5211_v41  ;;  %v136_v59 = vld [vmem:[#allocation7 + $0x138] sm:$0xff]  ;;  %3538 = vmatpush1.bf16.msra.mxu1 %v5215_v45  ;;  %v133_v62 = vld [vmem:[#allocation7 + $0x120] sm:$0xff]  ;;  %v5235_v1 = vpack.c.bf16 %v134_v57, %v130_v55  ;;  %v131_v2 = vld [vmem:[#allocation7 + $0x110] sm:$0xff] }
  0x6a   :  { %3482 = vmatmul.mubr.msk.f32.gmra.mrb[6].mxu0 %vm320_vm0, %v294_v43  ;;  %3490 = vmatmul.mubr.msk.f32.gmra.mrb[6].mxu1 %vm320_vm0, %v294_v43  ;;  %v295_v63 = vld [vmem:[#allocation2 + $0x20] sm:$0xff]  ;;  %v135_v3 = vld [vmem:[#allocation7 + $0x130] sm:$0xff]  ;;  %v5239_v4 = vpack.c.bf16 %v136_v59, %v132_v58  ;;  %v138_v5 = vld [vmem:[#allocation7 + $0x148] sm:$0xff]  ;;  %v5243_v7 = vpack.c.bf16 %v133_v62, %v129_v61  ;;  %v300_v62 = vlaneseq }
  0x6b   :  { %3508 = vmatprep.subr.bf16.mxu0 %v5219_v49  ;;  %3540 = vmatprep.subr.bf16.mxu1 %v5223_v53  ;;  %v142_v6 = vld [vmem:[#allocation7 + $0x168] sm:$0xff]  ;;  %v140_v8 = vld [vmem:[#allocation7 + $0x158] sm:$0xff]  ;;  %v5247_v12 = vpack.c.bf16 %v135_v3, %v131_v2  ;;  %v137_v13 = vld [vmem:[#allocation7 + $0x140] sm:$0xff] }
  0x6c   :  { %433 = vmatprep.mubr.f32.mxu0 %v5063_v0  ;;  %546 = vmatprep.mubr.f32.mxu1 %v5063_v0  ;;  %v144_v9 = vld [vmem:[#allocation7 + $0x178] sm:$0xff]  ;;  %v141_v14 = vld [vmem:[#allocation7 + $0x160] sm:$0xff]  ;;  %v296_v16 = vld [vmem:[#allocation2 + $0x28] sm:$0xff]  ;;  %v5251_v17 = vpack.c.bf16 %v142_v6, %v138_v5 }
  0x6d   :  { %3510 = vmatpush1.bf16.msra.mxu0 %v5227_v56  ;;  %3542 = vmatpush1.bf16.msra.mxu1 %v5231_v60  ;;  %v139_v18 = vld [vmem:[#allocation7 + $0x150] sm:$0xff]  ;;  %v5255_v21 = vpack.c.bf16 %v144_v9, %v140_v8  ;;  %v146_v22 = vld [vmem:[#allocation7 + $0x188] sm:$0xff]  ;;  %v5259_v26 = vpack.c.bf16 %v141_v14, %v137_v13  ;;  %v148_v27 = vld [vmem:[#allocation7 + $0x198] sm:$0xff] }
  0x6e   :  { %3483 = vmatmul.mubr.msk.f32.gmra.mrb[8].mxu0 %vm320_vm0, %v295_v63  ;;  %3491 = vmatmul.mubr.msk.f32.gmra.mrb[8].mxu1 %vm320_vm0, %v295_v63  ;;  %v143_v20 = vld [vmem:[#allocation7 + $0x170] sm:$0xff]  ;;  %v150_v25 = vld [vmem:[#allocation7 + $0x1a8] sm:$0xff]  ;;  %v152_v29 = vld [vmem:[#allocation7 + $0x1b8] sm:$0xff]  ;;  %v5342_v63 = vshrl.u32 %v300_v62, 7 }
  0x6f   :  { %3512 = vmatprep.subr.bf16.mxu0 %v5235_v1  ;;  %3544 = vmatprep.subr.bf16.mxu1 %v5239_v4  ;;  %v5263_v30 = vpack.c.bf16 %v143_v20, %v139_v18  ;;  %v145_v31 = vld [vmem:[#allocation7 + $0x180] sm:$0xff]  ;;  %v297_v34 = vld [vmem:[#allocation2 + $0x30] sm:$0xff]  ;;  %v5267_v35 = vpack.c.bf16 %v150_v25, %v146_v22  ;;  %v5271_v40 = vpack.c.bf16 %v152_v29, %v148_v27  ;;  %v154_v42 = vld [vmem:[#allocation7 + $0x1c8] sm:$0xff] }
  0x70   :  { %439 = vmatprep.mubr.f32.mxu0 %v5063_v0  ;;  %552 = vmatprep.mubr.f32.mxu1 %v5063_v0  ;;  %v149_v33 = vld [vmem:[#allocation7 + $0x1a0] sm:$0xff]  ;;  %v147_v38 = vld [vmem:[#allocation7 + $0x190] sm:$0xff]  ;;  %v158_v43 = vld [vmem:[#allocation7 + $0x1e8] sm:$0xff]  ;;  %v302_v2 = vsub.s32 0, %v5342_v63  ;;  %v306_v5 = vsub.s32 1, %v5342_v63  ;;  %v314_v9 = vsub.s32 3, %v5342_v63 }
  0x71   :  { %3514 = vmatpush1.bf16.msra.mxu0 %v5243_v7  ;;  %3546 = vmatpush1.bf16.msra.mxu1 %v5247_v12  ;;  %v151_v39 = vld [vmem:[#allocation7 + $0x1b0] sm:$0xff]  ;;  %v5275_v44 = vpack.c.bf16 %v149_v33, %v145_v31  ;;  %v156_v46 = vld [vmem:[#allocation7 + $0x1d8] sm:$0xff]  ;;  %v153_v50 = vld [vmem:[#allocation7 + $0x1c0] sm:$0xff]  ;;  %v5283_v54 = vpack.c.bf16 %v158_v43, %v154_v42 }
  0x72   :  { %3484 = vmatmul.mubr.msk.f32.gmra.mrb[10].mxu0 %vm320_vm0, %v296_v16  ;;  %3492 = vmatmul.mubr.msk.f32.gmra.mrb[10].mxu1 %vm320_vm0, %v296_v16  ;;  %v160_v47 = vld [vmem:[#allocation7 + $0x1f8] sm:$0xff]  ;;  %v5279_v48 = vpack.c.bf16 %v151_v39, %v147_v38  ;;  %v157_v51 = vld [vmem:[#allocation7 + $0x1e0] sm:$0xff]  ;;  %v155_v55 = vld [vmem:[#allocation7 + $0x1d0] sm:$0xff]  ;;  %v310_v38 = vsub.s32 2, %v5342_v63 }
  0x73   :  { %3516 = vmatprep.subr.bf16.mxu0 %v5251_v17  ;;  %3548 = vmatprep.subr.bf16.mxu1 %v5255_v21  ;;  %v298_v52 = vld [vmem:[#allocation2 + $0x38] sm:$0xff]  ;;  %v159_v57 = vld [vmem:[#allocation7 + $0x1f0] sm:$0xff]  ;;  %v5287_v58 = vpack.c.bf16 %v160_v47, %v156_v46  ;;  %v5291_v59 = vpack.c.bf16 %v157_v51, %v153_v50  ;;  %v161_v3 = vld [vmem:[%s6059_s3] sm:$0xf] }
  0x74   :  { %445 = vmatprep.mubr.f32.mxu0 %v5063_v0  ;;  %558 = vmatprep.mubr.f32.mxu1 %v5063_v0  ;;  %v5295_v61 = vpack.c.bf16 %v159_v57, %v155_v55  ;;  %v5351_v6 = vrot.slane %v161_v3, %v302_v2  ;;  %v5355_v8 = vrot.slane %v161_v3, %v306_v5 }
  0x75   :  { %3518 = vmatpush1.bf16.msra.mxu0 %v5259_v26  ;;  %3550 = vmatpush1.bf16.msra.mxu1 %v5263_v30  ;;  %v5362_v22 = vrot.slane %v161_v3, %v314_v9  ;;  %v5368_v42 = vrot.slane %v161_v3, %v310_v38 }
  0x76   :  { %3485 = vmatmul.mubr.msk.f32.gmra.mrb[12].mxu0 %vm320_vm0, %v297_v34  ;;  %3493 = vmatmul.mubr.msk.f32.gmra.mrb[12].mxu1 %vm320_vm0, %v297_v34 }
  0x77   :  { %3520 = vmatprep.subr.bf16.mxu0 %v5267_v35  ;;  %3552 = vmatprep.subr.bf16.mxu1 %v5271_v40 }
  0x78   :  { %451 = vmatprep.mubr.f32.mxu0 %v5063_v0  ;;  %564 = vmatprep.mubr.f32.mxu1 %v5063_v0 }
  0x79   :  { %3522 = vmatpush1.bf16.msra.mxu0 %v5275_v44  ;;  %3554 = vmatpush1.bf16.msra.mxu1 %v5279_v48 }
  0x7a   :  { %3486 = vmatmul.mubr.msk.f32.gmra.mrb[14].mxu0 %vm320_vm0, %v298_v52  ;;  %3494 = vmatmul.mubr.msk.f32.gmra.mrb[14].mxu1 %vm320_vm0, %v298_v52 }
  0x7b   :  { %3524 = vmatprep.subr.bf16.mxu0 %v5283_v54  ;;  %3556 = vmatprep.subr.bf16.mxu1 %v5287_v58 }
  0x7c   :  { %635 = vmatprep.mubr.f32.mxu0 %v5063_v0  ;;  %706 = vmatprep.mubr.f32.mxu1 %v5063_v0 }
  0x7d   :  { %3526 = vmatpush1.bf16.msra.mxu0 %v5291_v59  ;;  %3558 = vmatpush1.bf16.msra.mxu1 %v5295_v61 }
  0x7e   :  { %3560 = vmatprep.subr.bf16.mxu0 %v5178_v10  ;;  %3592 = vmatprep.subr.bf16.mxu1 %v5180_v11 }
  0x80   :  { %636 = vmatmul.mubr.f32.vlgmr.msra.gmra.mrb[0].mxu0 %v5063_v0  ;;  %707 = vmatmul.mubr.f32.vlgmr.msra.gmra.mrb[0].mxu1 %v5063_v0 }
  0x81   :  { %3562 = vmatpush1.bf16.msra.mxu0 %v5182_v15  ;;  %3594 = vmatpush1.bf16.msra.mxu1 %v5188_v19 }
  0x82   :  { %3564 = vmatprep.subr.bf16.mxu0 %v5191_v23  ;;  %3596 = vmatprep.subr.bf16.mxu1 %v5193_v24 }
  0x83   :  { %805 = vmatprep.mubr.f32.mxu0 %v5063_v0  ;;  %876 = vmatprep.mubr.f32.mxu1 %v5063_v0 }
  0x85   :  { %3566 = vmatpush1.bf16.msra.mxu0 %v5197_v28  ;;  %3598 = vmatpush1.bf16.msra.mxu1 %v5201_v32 }
  0x86   :  { %3568 = vmatprep.subr.bf16.mxu0 %v5205_v36  ;;  %3600 = vmatprep.subr.bf16.mxu1 %v5207_v37 }
  0x89   :  { %3570 = vmatpush1.bf16.msra.mxu0 %v5211_v41  ;;  %3602 = vmatpush1.bf16.msra.mxu1 %v5215_v45 }
  0x8a   :  { %3572 = vmatprep.subr.bf16.mxu0 %v5219_v49  ;;  %3604 = vmatprep.subr.bf16.mxu1 %v5223_v53 }
  0x8d   :  { %3574 = vmatpush1.bf16.msra.mxu0 %v5227_v56  ;;  %3606 = vmatpush1.bf16.msra.mxu1 %v5231_v60 }
  0x8e   :  { %3576 = vmatprep.subr.bf16.mxu0 %v5235_v1  ;;  %3608 = vmatprep.subr.bf16.mxu1 %v5239_v4 }
  0x91   :  { %3578 = vmatpush1.bf16.msra.mxu0 %v5243_v7  ;;  %3610 = vmatpush1.bf16.msra.mxu1 %v5247_v12 }
  0x92   :  { %3580 = vmatprep.subr.bf16.mxu0 %v5251_v17  ;;  %3612 = vmatprep.subr.bf16.mxu1 %v5255_v21 }
  0x95   :  { %3582 = vmatpush1.bf16.msra.mxu0 %v5259_v26  ;;  %3614 = vmatpush1.bf16.msra.mxu1 %v5263_v30 }
  0x96   :  { %3584 = vmatprep.subr.bf16.mxu0 %v5267_v35  ;;  %3616 = vmatprep.subr.bf16.mxu1 %v5271_v40 }
  0x99   :  { %3586 = vmatpush1.bf16.msra.mxu0 %v5275_v44  ;;  %3618 = vmatpush1.bf16.msra.mxu1 %v5279_v48 }
  0x9a   :  { %3588 = vmatprep.subr.bf16.mxu0 %v5283_v54  ;;  %3620 = vmatprep.subr.bf16.mxu1 %v5287_v58 }
  0x9d   :  { %3590 = vmatpush1.bf16.msra.mxu0 %v5291_v59  ;;  %3622 = vmatpush1.bf16.msra.mxu1 %v5295_v61 }
  0x9e   :  { %3624 = vmatprep.subr.bf16.mxu0 %v5178_v10  ;;  %3656 = vmatprep.subr.bf16.mxu1 %v5180_v11 }
 0x153   :  { %v637_v13 = vpop.f32.mrb[0].mxu0  ;;  %v708_v16 = vpop.f32.mrb[0].mxu1 }
 0x154   :  { %v4583_v14 = vadd.f32 %v637_v13, %v5351_v6  ;;  %v639_v18 = vpop.f32.mrb[1].mxu0  ;;  %v710_v25 = vpop.f32.mrb[1].mxu1  ;;  %v4599_v46 = vadd.f32 %v708_v16, %v5368_v42 }
 0x155   :  { %v4584_v20 = vadd.f32 %v639_v18, %v5355_v8  ;;  %v4600_v34 = vadd.f32 %v710_v25, %v5362_v22 }
 0x156   :  { %v717_v27 = vsub.f32 0.0, %v4583_v14 }
 0x157   :  { %v723_v29 = vsub.f32 0.0, %v4584_v20  ;;  %v730_v39 = vsub.f32 0.0, %v4600_v34 }
 0x158   :  { %v718_v31 = vmul.f32 1.442695, %v717_v27 }
 0x159   :  { %v724_v33 = vmul.f32 1.442695, %v723_v29  ;;  %v731_v43 = vmul.f32 1.442695, %v730_v39 }
 0x15a   :  { %4658 = vpow2.f32 %v718_v31 }
 0x15b   :  { %4660 = vpow2.f32 %v724_v33 }
 0x15c   :  { %4662 = vpow2.f32 %v731_v43 }
 0x15d   :  { %4664 = vtanh.f32 %v4599_v46 }
 0x164   :  { %v4659_v47 = vpop.eup %4658 }
 0x165   :  { %v4661_v50 = vpop.eup %4660  ;;  %v720_v51 = vadd.f32 1.0, %v4659_v47 }
 0x166   :  { %v726_v52 = vadd.f32 1.0, %v4661_v50  ;;  %v4663_v55 = vpop.eup %4662 }
 0x167   :  { %4666 = vrcp.f32 %v720_v51  ;;  %v4665_v57 = vpop.eup %4664  ;;  %v733_v18 = vadd.f32 1.0, %v4663_v55 }
 0x168   :  { %4668 = vrcp.f32 %v726_v52 }
 0x169   :  { %4670 = vrcp.f32 %v733_v18 }
 0x171   :  { %v4667_v62 = vpop.eup %4666 }
 0x172   :  { %v4669_v13 = vpop.eup %4668  ;;  %v737_v14 = vmul.f32 %v4667_v62, %v4665_v57 }
 0x173   :  { %v736_v20 = vmul.f32 0.0, %v4669_v13  ;;  %v4671_v16 = vpop.eup %4670 }
 0x175   :  { %v5371_v3 = vadd.f32 %v737_v14, %v736_v20 }
 0x177   :  { %4672 = vtanh.f32 %v5371_v3 }
 0x181   :  { %v4673_v25 = vpop.eup %4672 }
 0x182   :  { %v740_v27 = vmul.f32 %v4673_v25, %v4671_v16 }
 0x184   :  { %806 = vmatmul.mubr.f32.vlgmr.msra.gmra.mrb[2].mxu0 %v740_v27  ;;  %877 = vmatmul.mubr.f32.vlgmr.msra.gmra.mrb[2].mxu1 %v740_v27 }
 0x185   :  { %3626 = vmatpush1.bf16.msra.mxu0 %v5182_v15  ;;  %3658 = vmatpush1.bf16.msra.mxu1 %v5188_v19 }
 0x186   :  { %3628 = vmatprep.subr.bf16.mxu0 %v5191_v23  ;;  %3660 = vmatprep.subr.bf16.mxu1 %v5193_v24 }
 0x187   :  { %975 = vmatprep.mubr.f32.mxu0 %v5063_v0  ;;  %1046 = vmatprep.mubr.f32.mxu1 %v5063_v0 }
 0x189   :  { %3630 = vmatpush1.bf16.msra.mxu0 %v5197_v28  ;;  %3662 = vmatpush1.bf16.msra.mxu1 %v5201_v32 }
 0x18a   :  { %3632 = vmatprep.subr.bf16.mxu0 %v5205_v36  ;;  %3664 = vmatprep.subr.bf16.mxu1 %v5207_v37 }
 0x18d   :  { %3634 = vmatpush1.bf16.msra.mxu0 %v5211_v41  ;;  %3666 = vmatpush1.bf16.msra.mxu1 %v5215_v45 }
 0x18e   :  { %3636 = vmatprep.subr.bf16.mxu0 %v5219_v49  ;;  %3668 = vmatprep.subr.bf16.mxu1 %v5223_v53 }
 0x191   :  { %3638 = vmatpush1.bf16.msra.mxu0 %v5227_v56  ;;  %3670 = vmatpush1.bf16.msra.mxu1 %v5231_v60 }
 0x192   :  { %3640 = vmatprep.subr.bf16.mxu0 %v5235_v1  ;;  %3672 = vmatprep.subr.bf16.mxu1 %v5239_v4 }
 0x195   :  { %3642 = vmatpush1.bf16.msra.mxu0 %v5243_v7  ;;  %3674 = vmatpush1.bf16.msra.mxu1 %v5247_v12 }
 0x196   :  { %3644 = vmatprep.subr.bf16.mxu0 %v5251_v17  ;;  %3676 = vmatprep.subr.bf16.mxu1 %v5255_v21 }
 0x199   :  { %3646 = vmatpush1.bf16.msra.mxu0 %v5259_v26  ;;  %3678 = vmatpush1.bf16.msra.mxu1 %v5263_v30 }
 0x19a   :  { %3648 = vmatprep.subr.bf16.mxu0 %v5267_v35  ;;  %3680 = vmatprep.subr.bf16.mxu1 %v5271_v40 }
 0x19d   :  { %3650 = vmatpush1.bf16.msra.mxu0 %v5275_v44  ;;  %3682 = vmatpush1.bf16.msra.mxu1 %v5279_v48 }
 0x19e   :  { %3652 = vmatprep.subr.bf16.mxu0 %v5283_v54  ;;  %3684 = vmatprep.subr.bf16.mxu1 %v5287_v58 }
 0x1a1   :  { %3654 = vmatpush1.bf16.msra.mxu0 %v5291_v59  ;;  %3686 = vmatpush1.bf16.msra.mxu1 %v5295_v61 }
 0x1a2   :  { %3688 = vmatprep.subr.bf16.mxu0 %v5178_v10  ;;  %3720 = vmatprep.subr.bf16.mxu1 %v5180_v11 }
 0x257   :  { %v807_v29 = vpop.f32.mrb[2].mxu0  ;;  %v878_v31 = vpop.f32.mrb[2].mxu1 }
 0x258   :  { %v4585_v33 = vadd.f32 %v807_v29, %v5351_v6  ;;  %v809_v34 = vpop.f32.mrb[3].mxu0  ;;  %v880_v39 = vpop.f32.mrb[3].mxu1  ;;  %v4601_v62 = vadd.f32 %v878_v31, %v5368_v42 }
 0x259   :  { %v4586_v43 = vadd.f32 %v809_v34, %v5355_v8  ;;  %v4602_v52 = vadd.f32 %v880_v39, %v5362_v22 }
 0x25a   :  { %v887_v46 = vsub.f32 0.0, %v4585_v33 }
 0x25b   :  { %v893_v47 = vsub.f32 0.0, %v4586_v43  ;;  %v900_v55 = vsub.f32 0.0, %v4602_v52 }
 0x25c   :  { %v888_v50 = vmul.f32 1.442695, %v887_v46 }
 0x25d   :  { %v894_v51 = vmul.f32 1.442695, %v893_v47  ;;  %v901_v57 = vmul.f32 1.442695, %v900_v55 }
 0x25e   :  { %4674 = vpow2.f32 %v888_v50 }
 0x25f   :  { %4676 = vpow2.f32 %v894_v51 }
 0x260   :  { %4678 = vpow2.f32 %v901_v57 }
 0x261   :  { %4680 = vtanh.f32 %v4601_v62 }
 0x268   :  { %v4675_v13 = vpop.eup %4674 }
 0x269   :  { %v4677_v14 = vpop.eup %4676  ;;  %v890_v18 = vadd.f32 1.0, %v4675_v13 }
 0x26a   :  { %v896_v20 = vadd.f32 1.0, %v4677_v14  ;;  %v4679_v16 = vpop.eup %4678 }
 0x26b   :  { %4682 = vrcp.f32 %v890_v18  ;;  %v4681_v25 = vpop.eup %4680  ;;  %v903_v34 = vadd.f32 1.0, %v4679_v16 }
 0x26c   :  { %4684 = vrcp.f32 %v896_v20 }
 0x26d   :  { %4686 = vrcp.f32 %v903_v34 }
 0x275   :  { %v4683_v27 = vpop.eup %4682 }
 0x276   :  { %v4685_v29 = vpop.eup %4684  ;;  %v907_v33 = vmul.f32 %v4683_v27, %v4681_v25 }
 0x277   :  { %v906_v39 = vmul.f32 %v4685_v29, %v5371_v3  ;;  %v4687_v31 = vpop.eup %4686 }
 0x279   :  { %v5413_v43 = vadd.f32 %v907_v33, %v906_v39 }
 0x27b   :  { %4688 = vtanh.f32 %v5413_v43 }
 0x285   :  { %v4689_v46 = vpop.eup %4688 }
 0x286   :  { %v910_v47 = vmul.f32 %v4689_v46, %v4687_v31 }
 0x288   :  { %976 = vmatmul.mubr.f32.vlgmr.msra.gmra.mrb[4].mxu0 %v910_v47  ;;  %1047 = vmatmul.mubr.f32.vlgmr.msra.gmra.mrb[4].mxu1 %v910_v47 }
 0x289   :  { %3690 = vmatpush1.bf16.msra.mxu0 %v5182_v15  ;;  %3722 = vmatpush1.bf16.msra.mxu1 %v5188_v19 }
 0x28a   :  { %3692 = vmatprep.subr.bf16.mxu0 %v5191_v23  ;;  %3724 = vmatprep.subr.bf16.mxu1 %v5193_v24 }
 0x28b   :  { %1145 = vmatprep.mubr.f32.mxu0 %v5063_v0  ;;  %1216 = vmatprep.mubr.f32.mxu1 %v5063_v0 }
 0x28d   :  { %3694 = vmatpush1.bf16.msra.mxu0 %v5197_v28  ;;  %3726 = vmatpush1.bf16.msra.mxu1 %v5201_v32 }
 0x28e   :  { %3696 = vmatprep.subr.bf16.mxu0 %v5205_v36  ;;  %3728 = vmatprep.subr.bf16.mxu1 %v5207_v37 }
 0x291   :  { %3698 = vmatpush1.bf16.msra.mxu0 %v5211_v41  ;;  %3730 = vmatpush1.bf16.msra.mxu1 %v5215_v45 }
 0x292   :  { %3700 = vmatprep.subr.bf16.mxu0 %v5219_v49  ;;  %3732 = vmatprep.subr.bf16.mxu1 %v5223_v53 }
 0x295   :  { %3702 = vmatpush1.bf16.msra.mxu0 %v5227_v56  ;;  %3734 = vmatpush1.bf16.msra.mxu1 %v5231_v60 }
 0x296   :  { %3704 = vmatprep.subr.bf16.mxu0 %v5235_v1  ;;  %3736 = vmatprep.subr.bf16.mxu1 %v5239_v4 }
 0x299   :  { %3706 = vmatpush1.bf16.msra.mxu0 %v5243_v7  ;;  %3738 = vmatpush1.bf16.msra.mxu1 %v5247_v12 }
 0x29a   :  { %3708 = vmatprep.subr.bf16.mxu0 %v5251_v17  ;;  %3740 = vmatprep.subr.bf16.mxu1 %v5255_v21 }
 0x29d   :  { %3710 = vmatpush1.bf16.msra.mxu0 %v5259_v26  ;;  %3742 = vmatpush1.bf16.msra.mxu1 %v5263_v30 }
 0x29e   :  { %3712 = vmatprep.subr.bf16.mxu0 %v5267_v35  ;;  %3744 = vmatprep.subr.bf16.mxu1 %v5271_v40 }
 0x2a1   :  { %3714 = vmatpush1.bf16.msra.mxu0 %v5275_v44  ;;  %3746 = vmatpush1.bf16.msra.mxu1 %v5279_v48 }
 0x2a2   :  { %3716 = vmatprep.subr.bf16.mxu0 %v5283_v54  ;;  %3748 = vmatprep.subr.bf16.mxu1 %v5287_v58 }
 0x2a5   :  { %3718 = vmatpush1.bf16.msra.mxu0 %v5291_v59  ;;  %3750 = vmatpush1.bf16.msra.mxu1 %v5295_v61 }
 0x2a6   :  { %3752 = vmatprep.subr.bf16.mxu0 %v5178_v10  ;;  %3784 = vmatprep.subr.bf16.mxu1 %v5180_v11 }
 0x35b   :  { %v977_v3 = vpop.f32.mrb[4].mxu0  ;;  %v1048_v50 = vpop.f32.mrb[4].mxu1 }
 0x35c   :  { %v4587_v51 = vadd.f32 %v977_v3, %v5351_v6  ;;  %v979_v52 = vpop.f32.mrb[5].mxu0  ;;  %v1050_v55 = vpop.f32.mrb[5].mxu1  ;;  %v4603_v27 = vadd.f32 %v1048_v50, %v5368_v42 }
 0x35d   :  { %v4588_v57 = vadd.f32 %v979_v52, %v5355_v8  ;;  %v4604_v20 = vadd.f32 %v1050_v55, %v5362_v22 }
 0x35e   :  { %v1057_v62 = vsub.f32 0.0, %v4587_v51 }
 0x35f   :  { %v1063_v13 = vsub.f32 0.0, %v4588_v57  ;;  %v1070_v16 = vsub.f32 0.0, %v4604_v20 }
 0x360   :  { %v1058_v14 = vmul.f32 1.442695, %v1057_v62 }
 0x361   :  { %v1064_v18 = vmul.f32 1.442695, %v1063_v13  ;;  %v1071_v25 = vmul.f32 1.442695, %v1070_v16 }
 0x362   :  { %4690 = vpow2.f32 %v1058_v14 }
 0x363   :  { %4692 = vpow2.f32 %v1064_v18 }
 0x364   :  { %4694 = vpow2.f32 %v1071_v25 }
 0x365   :  { %4696 = vtanh.f32 %v4603_v27 }
 0x36c   :  { %v4691_v29 = vpop.eup %4690 }
 0x36d   :  { %v4693_v33 = vpop.eup %4692  ;;  %v1060_v34 = vadd.f32 1.0, %v4691_v29 }
 0x36e   :  { %v1066_v39 = vadd.f32 1.0, %v4693_v33  ;;  %v4695_v31 = vpop.eup %4694 }
 0x36f   :  { %4698 = vrcp.f32 %v1060_v34  ;;  %v4697_v46 = vpop.eup %4696  ;;  %v1073_v52 = vadd.f32 1.0, %v4695_v31 }
 0x370   :  { %4700 = vrcp.f32 %v1066_v39 }
 0x371   :  { %4702 = vrcp.f32 %v1073_v52 }
 0x379   :  { %v4699_v47 = vpop.eup %4698 }
 0x37a   :  { %v4701_v3 = vpop.eup %4700  ;;  %v1077_v51 = vmul.f32 %v4699_v47, %v4697_v46 }
 0x37b   :  { %v1076_v55 = vmul.f32 %v4701_v3, %v5413_v43  ;;  %v4703_v50 = vpop.eup %4702 }
 0x37d   :  { %v5455_v57 = vadd.f32 %v1077_v51, %v1076_v55 }
 0x37f   :  { %4704 = vtanh.f32 %v5455_v57 }
 0x389   :  { %v4705_v62 = vpop.eup %4704 }
 0x38a   :  { %v1080_v13 = vmul.f32 %v4705_v62, %v4703_v50 }
 0x38c   :  { %1146 = vmatmul.mubr.f32.vlgmr.msra.gmra.mrb[6].mxu0 %v1080_v13  ;;  %1217 = vmatmul.mubr.f32.vlgmr.msra.gmra.mrb[6].mxu1 %v1080_v13 }
 0x38d   :  { %3754 = vmatpush1.bf16.msra.mxu0 %v5182_v15  ;;  %3786 = vmatpush1.bf16.msra.mxu1 %v5188_v19 }
 0x38e   :  { %3756 = vmatprep.subr.bf16.mxu0 %v5191_v23  ;;  %3788 = vmatprep.subr.bf16.mxu1 %v5193_v24 }
 0x38f   :  { %1315 = vmatprep.mubr.f32.mxu0 %v5063_v0  ;;  %1386 = vmatprep.mubr.f32.mxu1 %v5063_v0 }
 0x391   :  { %3758 = vmatpush1.bf16.msra.mxu0 %v5197_v28  ;;  %3790 = vmatpush1.bf16.msra.mxu1 %v5201_v32 }
 0x392   :  { %3760 = vmatprep.subr.bf16.mxu0 %v5205_v36  ;;  %3792 = vmatprep.subr.bf16.mxu1 %v5207_v37 }
 0x395   :  { %3762 = vmatpush1.bf16.msra.mxu0 %v5211_v41  ;;  %3794 = vmatpush1.bf16.msra.mxu1 %v5215_v45 }
 0x396   :  { %3764 = vmatprep.subr.bf16.mxu0 %v5219_v49  ;;  %3796 = vmatprep.subr.bf16.mxu1 %v5223_v53 }
 0x399   :  { %3766 = vmatpush1.bf16.msra.mxu0 %v5227_v56  ;;  %3798 = vmatpush1.bf16.msra.mxu1 %v5231_v60 }
 0x39a   :  { %3768 = vmatprep.subr.bf16.mxu0 %v5235_v1  ;;  %3800 = vmatprep.subr.bf16.mxu1 %v5239_v4 }
 0x39d   :  { %3770 = vmatpush1.bf16.msra.mxu0 %v5243_v7  ;;  %3802 = vmatpush1.bf16.msra.mxu1 %v5247_v12 }
 0x39e   :  { %3772 = vmatprep.subr.bf16.mxu0 %v5251_v17  ;;  %3804 = vmatprep.subr.bf16.mxu1 %v5255_v21 }
 0x3a1   :  { %3774 = vmatpush1.bf16.msra.mxu0 %v5259_v26  ;;  %3806 = vmatpush1.bf16.msra.mxu1 %v5263_v30 }
 0x3a2   :  { %3776 = vmatprep.subr.bf16.mxu0 %v5267_v35  ;;  %3808 = vmatprep.subr.bf16.mxu1 %v5271_v40 }
 0x3a5   :  { %3778 = vmatpush1.bf16.msra.mxu0 %v5275_v44  ;;  %3810 = vmatpush1.bf16.msra.mxu1 %v5279_v48 }
 0x3a6   :  { %3780 = vmatprep.subr.bf16.mxu0 %v5283_v54  ;;  %3812 = vmatprep.subr.bf16.mxu1 %v5287_v58 }
 0x3a9   :  { %3782 = vmatpush1.bf16.msra.mxu0 %v5291_v59  ;;  %3814 = vmatpush1.bf16.msra.mxu1 %v5295_v61 }
 0x3aa   :  { %3816 = vmatprep.subr.bf16.mxu0 %v5178_v10  ;;  %3848 = vmatprep.subr.bf16.mxu1 %v5180_v11 }
 0x45f   :  { %v1147_v43 = vpop.f32.mrb[6].mxu0  ;;  %v1218_v14 = vpop.f32.mrb[6].mxu1 }
 0x460   :  { %v4589_v18 = vadd.f32 %v1147_v43, %v5351_v6  ;;  %v1149_v20 = vpop.f32.mrb[7].mxu0  ;;  %v1220_v16 = vpop.f32.mrb[7].mxu1  ;;  %v4605_v47 = vadd.f32 %v1218_v14, %v5368_v42 }
 0x461   :  { %v4590_v25 = vadd.f32 %v1149_v20, %v5355_v8  ;;  %v4606_v39 = vadd.f32 %v1220_v16, %v5362_v22 }
 0x462   :  { %v1227_v27 = vsub.f32 0.0, %v4589_v18 }
 0x463   :  { %v1233_v29 = vsub.f32 0.0, %v4590_v25  ;;  %v1240_v31 = vsub.f32 0.0, %v4606_v39 }
 0x464   :  { %v1228_v33 = vmul.f32 1.442695, %v1227_v27 }
 0x465   :  { %v1234_v34 = vmul.f32 1.442695, %v1233_v29  ;;  %v1241_v46 = vmul.f32 1.442695, %v1240_v31 }
 0x466   :  { %4706 = vpow2.f32 %v1228_v33 }
 0x467   :  { %4708 = vpow2.f32 %v1234_v34 }
 0x468   :  { %4710 = vpow2.f32 %v1241_v46 }
 0x469   :  { %4712 = vtanh.f32 %v4605_v47 }
 0x470   :  { %v4707_v3 = vpop.eup %4706 }
 0x471   :  { %v4709_v51 = vpop.eup %4708  ;;  %v1230_v52 = vadd.f32 1.0, %v4707_v3 }
 0x472   :  { %v1236_v55 = vadd.f32 1.0, %v4709_v51  ;;  %v4711_v50 = vpop.eup %4710 }
 0x473   :  { %4714 = vrcp.f32 %v1230_v52  ;;  %v4713_v62 = vpop.eup %4712  ;;  %v1243_v20 = vadd.f32 1.0, %v4711_v50 }
 0x474   :  { %4716 = vrcp.f32 %v1236_v55 }
 0x475   :  { %4718 = vrcp.f32 %v1243_v20 }
 0x47d   :  { %v4715_v13 = vpop.eup %4714 }
 0x47e   :  { %v4717_v43 = vpop.eup %4716  ;;  %v1247_v18 = vmul.f32 %v4715_v13, %v4713_v62 }
 0x47f   :  { %v1246_v16 = vmul.f32 %v4717_v43, %v5455_v57  ;;  %v4719_v14 = vpop.eup %4718 }
 0x481   :  { %v5497_v25 = vadd.f32 %v1247_v18, %v1246_v16 }
 0x483   :  { %4720 = vtanh.f32 %v5497_v25 }
 0x48d   :  { %v4721_v27 = vpop.eup %4720 }
 0x48e   :  { %v1250_v29 = vmul.f32 %v4721_v27, %v4719_v14 }
 0x490   :  { %1316 = vmatmul.mubr.f32.vlgmr.msra.gmra.mrb[8].mxu0 %v1250_v29  ;;  %1387 = vmatmul.mubr.f32.vlgmr.msra.gmra.mrb[8].mxu1 %v1250_v29 }
 0x491   :  { %3818 = vmatpush1.bf16.msra.mxu0 %v5182_v15  ;;  %3850 = vmatpush1.bf16.msra.mxu1 %v5188_v19 }
 0x492   :  { %3820 = vmatprep.subr.bf16.mxu0 %v5191_v23  ;;  %3852 = vmatprep.subr.bf16.mxu1 %v5193_v24 }
 0x493   :  { %1485 = vmatprep.mubr.f32.mxu0 %v5063_v0  ;;  %1556 = vmatprep.mubr.f32.mxu1 %v5063_v0 }
 0x495   :  { %3822 = vmatpush1.bf16.msra.mxu0 %v5197_v28  ;;  %3854 = vmatpush1.bf16.msra.mxu1 %v5201_v32 }
 0x496   :  { %3824 = vmatprep.subr.bf16.mxu0 %v5205_v36  ;;  %3856 = vmatprep.subr.bf16.mxu1 %v5207_v37 }
 0x499   :  { %3826 = vmatpush1.bf16.msra.mxu0 %v5211_v41  ;;  %3858 = vmatpush1.bf16.msra.mxu1 %v5215_v45 }
 0x49a   :  { %3828 = vmatprep.subr.bf16.mxu0 %v5219_v49  ;;  %3860 = vmatprep.subr.bf16.mxu1 %v5223_v53 }
 0x49d   :  { %3830 = vmatpush1.bf16.msra.mxu0 %v5227_v56  ;;  %3862 = vmatpush1.bf16.msra.mxu1 %v5231_v60 }
 0x49e   :  { %3832 = vmatprep.subr.bf16.mxu0 %v5235_v1  ;;  %3864 = vmatprep.subr.bf16.mxu1 %v5239_v4 }
 0x4a1   :  { %3834 = vmatpush1.bf16.msra.mxu0 %v5243_v7  ;;  %3866 = vmatpush1.bf16.msra.mxu1 %v5247_v12 }
 0x4a2   :  { %3836 = vmatprep.subr.bf16.mxu0 %v5251_v17  ;;  %3868 = vmatprep.subr.bf16.mxu1 %v5255_v21 }
 0x4a5   :  { %3838 = vmatpush1.bf16.msra.mxu0 %v5259_v26  ;;  %3870 = vmatpush1.bf16.msra.mxu1 %v5263_v30 }
 0x4a6   :  { %3840 = vmatprep.subr.bf16.mxu0 %v5267_v35  ;;  %3872 = vmatprep.subr.bf16.mxu1 %v5271_v40 }
 0x4a9   :  { %3842 = vmatpush1.bf16.msra.mxu0 %v5275_v44  ;;  %3874 = vmatpush1.bf16.msra.mxu1 %v5279_v48 }
 0x4aa   :  { %3844 = vmatprep.subr.bf16.mxu0 %v5283_v54  ;;  %3876 = vmatprep.subr.bf16.mxu1 %v5287_v58 }
 0x4ad   :  { %3846 = vmatpush1.bf16.msra.mxu0 %v5291_v59  ;;  %3878 = vmatpush1.bf16.msra.mxu1 %v5295_v61 }
 0x4ae   :  { %3880 = vmatprep.subr.bf16.mxu0 %v5178_v10  ;;  %3912 = vmatprep.subr.bf16.mxu1 %v5180_v11 }
 0x563   :  { %v1317_v57 = vpop.f32.mrb[8].mxu0  ;;  %v1388_v33 = vpop.f32.mrb[8].mxu1 }
 0x564   :  { %v4591_v34 = vadd.f32 %v1317_v57, %v5351_v6  ;;  %v1319_v39 = vpop.f32.mrb[9].mxu0  ;;  %v1390_v31 = vpop.f32.mrb[9].mxu1  ;;  %v4607_v13 = vadd.f32 %v1388_v33, %v5368_v42 }
 0x565   :  { %v4592_v46 = vadd.f32 %v1319_v39, %v5355_v8  ;;  %v4608_v55 = vadd.f32 %v1390_v31, %v5362_v22 }
 0x566   :  { %v1397_v47 = vsub.f32 0.0, %v4591_v34 }
 0x567   :  { %v1403_v3 = vsub.f32 0.0, %v4592_v46  ;;  %v1410_v50 = vsub.f32 0.0, %v4608_v55 }
 0x568   :  { %v1398_v51 = vmul.f32 1.442695, %v1397_v47 }
 0x569   :  { %v1404_v52 = vmul.f32 1.442695, %v1403_v3  ;;  %v1411_v62 = vmul.f32 1.442695, %v1410_v50 }
 0x56a   :  { %4722 = vpow2.f32 %v1398_v51 }
 0x56b   :  { %4724 = vpow2.f32 %v1404_v52 }
 0x56c   :  { %4726 = vpow2.f32 %v1411_v62 }
 0x56d   :  { %4728 = vtanh.f32 %v4607_v13 }
 0x574   :  { %v4723_v43 = vpop.eup %4722 }
 0x575   :  { %v4725_v18 = vpop.eup %4724  ;;  %v1400_v20 = vadd.f32 1.0, %v4723_v43 }
 0x576   :  { %v1406_v16 = vadd.f32 1.0, %v4725_v18  ;;  %v4727_v14 = vpop.eup %4726 }
 0x577   :  { %4730 = vrcp.f32 %v1400_v20  ;;  %v4729_v27 = vpop.eup %4728  ;;  %v1413_v39 = vadd.f32 1.0, %v4727_v14 }
 0x578   :  { %4732 = vrcp.f32 %v1406_v16 }
 0x579   :  { %4734 = vrcp.f32 %v1413_v39 }
 0x581   :  { %v4731_v29 = vpop.eup %4730 }
 0x582   :  { %v4733_v57 = vpop.eup %4732  ;;  %v1417_v34 = vmul.f32 %v4731_v29, %v4729_v27 }
 0x583   :  { %v1416_v31 = vmul.f32 %v4733_v57, %v5497_v25  ;;  %v4735_v33 = vpop.eup %4734 }
 0x585   :  { %v5539_v46 = vadd.f32 %v1417_v34, %v1416_v31 }
 0x587   :  { %4736 = vtanh.f32 %v5539_v46 }
 0x591   :  { %v4737_v47 = vpop.eup %4736 }
 0x592   :  { %v1420_v3 = vmul.f32 %v4737_v47, %v4735_v33 }
 0x594   :  { %1486 = vmatmul.mubr.f32.vlgmr.msra.gmra.mrb[10].mxu0 %v1420_v3  ;;  %1557 = vmatmul.mubr.f32.vlgmr.msra.gmra.mrb[10].mxu1 %v1420_v3 }
 0x595   :  { %3882 = vmatpush1.bf16.msra.mxu0 %v5182_v15  ;;  %3914 = vmatpush1.bf16.msra.mxu1 %v5188_v19 }
 0x596   :  { %3884 = vmatprep.subr.bf16.mxu0 %v5191_v23  ;;  %3916 = vmatprep.subr.bf16.mxu1 %v5193_v24 }
 0x597   :  { %1655 = vmatprep.mubr.f32.mxu0 %v5063_v0  ;;  %1726 = vmatprep.mubr.f32.mxu1 %v5063_v0 }
 0x599   :  { %3886 = vmatpush1.bf16.msra.mxu0 %v5197_v28  ;;  %3918 = vmatpush1.bf16.msra.mxu1 %v5201_v32 }
 0x59a   :  { %3888 = vmatprep.subr.bf16.mxu0 %v5205_v36  ;;  %3920 = vmatprep.subr.bf16.mxu1 %v5207_v37 }
 0x59d   :  { %3890 = vmatpush1.bf16.msra.mxu0 %v5211_v41  ;;  %3922 = vmatpush1.bf16.msra.mxu1 %v5215_v45 }
 0x59e   :  { %3892 = vmatprep.subr.bf16.mxu0 %v5219_v49  ;;  %3924 = vmatprep.subr.bf16.mxu1 %v5223_v53 }
 0x5a1   :  { %3894 = vmatpush1.bf16.msra.mxu0 %v5227_v56  ;;  %3926 = vmatpush1.bf16.msra.mxu1 %v5231_v60 }
 0x5a2   :  { %3896 = vmatprep.subr.bf16.mxu0 %v5235_v1  ;;  %3928 = vmatprep.subr.bf16.mxu1 %v5239_v4 }
 0x5a5   :  { %3898 = vmatpush1.bf16.msra.mxu0 %v5243_v7  ;;  %3930 = vmatpush1.bf16.msra.mxu1 %v5247_v12 }
 0x5a6   :  { %3900 = vmatprep.subr.bf16.mxu0 %v5251_v17  ;;  %3932 = vmatprep.subr.bf16.mxu1 %v5255_v21 }
 0x5a9   :  { %3902 = vmatpush1.bf16.msra.mxu0 %v5259_v26  ;;  %3934 = vmatpush1.bf16.msra.mxu1 %v5263_v30 }
 0x5aa   :  { %3904 = vmatprep.subr.bf16.mxu0 %v5267_v35  ;;  %3936 = vmatprep.subr.bf16.mxu1 %v5271_v40 }
 0x5ad   :  { %3906 = vmatpush1.bf16.msra.mxu0 %v5275_v44  ;;  %3938 = vmatpush1.bf16.msra.mxu1 %v5279_v48 }
 0x5ae   :  { %3908 = vmatprep.subr.bf16.mxu0 %v5283_v54  ;;  %3940 = vmatprep.subr.bf16.mxu1 %v5287_v58 }
 0x5b1   :  { %3910 = vmatpush1.bf16.msra.mxu0 %v5291_v59  ;;  %3942 = vmatpush1.bf16.msra.mxu1 %v5295_v61 }
 0x5b2   :  { %3944 = vmatprep.subr.bf16.mxu0 %v5178_v10  ;;  %3976 = vmatprep.subr.bf16.mxu1 %v5180_v11 }
 0x667   :  { %v1487_v25 = vpop.f32.mrb[10].mxu0  ;;  %v1558_v51 = vpop.f32.mrb[10].mxu1 }
 0x668   :  { %v4593_v52 = vadd.f32 %v1487_v25, %v5351_v6  ;;  %v1489_v55 = vpop.f32.mrb[11].mxu0  ;;  %v1560_v50 = vpop.f32.mrb[11].mxu1  ;;  %v4609_v11 = vadd.f32 %v1558_v51, %v5368_v42 }
 0x669   :  { %v4594_v62 = vadd.f32 %v1489_v55, %v5355_v8  ;;  %v4610_v16 = vadd.f32 %v1560_v50, %v5362_v22 }
 0x66a   :  { %v1567_v13 = vsub.f32 0.0, %v4593_v52 }
 0x66b   :  { %v1573_v43 = vsub.f32 0.0, %v4594_v62  ;;  %v1580_v14 = vsub.f32 0.0, %v4610_v16  ;;  %v166_v16 = vld [vmem:[#allocation8 + $0x20] sm:$0xff] }
 0x66c   :  { %v1568_v18 = vmul.f32 1.442695, %v1567_v13  ;;  %v165_v13 = vld [vmem:[#allocation8 + $0x18] sm:$0xff] }
 0x66d   :  { %v1574_v20 = vmul.f32 1.442695, %v1573_v43  ;;  %v1581_v10 = vmul.f32 1.442695, %v1580_v14 }
 0x66e   :  { %4738 = vpow2.f32 %v1568_v18  ;;  %v169_v18 = vld [vmem:[#allocation8 + $0x38] sm:$0xff] }
 0x66f   :  { %4740 = vpow2.f32 %v1574_v20  ;;  %v162_v20 = vld [vmem:[#allocation8] sm:$0xff]  ;;  %v4039_v14 = vpack.c.bf16 %v169_v18, %v165_v13  ;;  %v196_v18 = vld [vmem:[#allocation8 + $0x110] sm:$0xff] }
 0x670   :  { %4742 = vpow2.f32 %v1581_v10  ;;  %v4009_v10 = vpack.c.bf16 %v166_v16, %v162_v20  ;;  %v200_v20 = vld [vmem:[#allocation8 + $0x130] sm:$0xff] }
 0x671   :  { %4744 = vtanh.f32 %v4609_v11  ;;  %v164_v11 = vld [vmem:[#allocation8 + $0x10] sm:$0xff]  ;;  %v4057_v16 = vpack.c.bf16 %v200_v20, %v196_v18 }
 0x678   :  { %v4739_v27 = vpop.eup %4738 }
 0x679   :  { %v4741_v29 = vpop.eup %4740  ;;  %v1570_v57 = vadd.f32 1.0, %v4739_v27  ;;  %v168_v27 = vld [vmem:[#allocation8 + $0x30] sm:$0xff] }
 0x67a   :  { %v1576_v34 = vadd.f32 1.0, %v4741_v29  ;;  %v4743_v39 = vpop.eup %4742  ;;  %v4041_v29 = vpack.c.bf16 %v168_v27, %v164_v11  ;;  %v205_v11 = vld [vmem:[#allocation8 + $0x158] sm:$0xff] }
 0x67b   :  { %4746 = vrcp.f32 %v1570_v57  ;;  %v4745_v31 = vpop.eup %4744  ;;  %v1583_v25 = vadd.f32 1.0, %v4743_v39  ;;  %v171_v57 = vld [vmem:[#allocation8 + $0x48] sm:$0xff]  ;;  %v173_v39 = vld [vmem:[#allocation8 + $0x58] sm:$0xff] }
 0x67c   :  { %4748 = vrcp.f32 %v1576_v34  ;;  %v175_v34 = vld [vmem:[#allocation8 + $0x68] sm:$0xff] }
 0x67d   :  { %4750 = vrcp.f32 %v1583_v25 }
 0x685   :  { %v4747_v33 = vpop.eup %4746 }
 0x686   :  { %v4749_v47 = vpop.eup %4748  ;;  %v1587_v3 = vmul.f32 %v4747_v33, %v4745_v31  ;;  %v4011_v31 = vpack.c.bf16 %v175_v34, %v171_v57  ;;  %v177_v33 = vld [vmem:[#allocation8 + $0x78] sm:$0xff]  ;;  %v202_v57 = vld [vmem:[#allocation8 + $0x140] sm:$0xff] }
 0x687   :  { %v1586_v52 = vmul.f32 %v4749_v47, %v5539_v46  ;;  %v4751_v51 = vpop.eup %4750  ;;  %v167_v46 = vld [vmem:[#allocation8 + $0x28] sm:$0xff]  ;;  %v170_v47 = vld [vmem:[#allocation8 + $0x40] sm:$0xff]  ;;  %v4043_v25 = vpack.c.bf16 %v177_v33, %v173_v39  ;;  %v204_v33 = vld [vmem:[#allocation8 + $0x150] sm:$0xff] }
 0x688   :  { %v206_v34 = vld [vmem:[#allocation8 + $0x160] sm:$0xff] }
 0x689   :  { %v5581_v55 = vadd.f32 %v1587_v3, %v1586_v52  ;;  %v174_v3 = vld [vmem:[#allocation8 + $0x60] sm:$0xff] }
 0x68a   :  { %v4013_v52 = vpack.c.bf16 %v174_v3, %v170_v47  ;;  %v208_v47 = vld [vmem:[#allocation8 + $0x170] sm:$0xff]  ;;  %v211_v3 = vld [vmem:[#allocation8 + $0x188] sm:$0xff] }
 0x68b   :  { %4752 = vtanh.f32 %v5581_v55 }
 0x695   :  { %v4753_v50 = vpop.eup %4752 }
 0x696   :  { %v1590_v62 = vmul.f32 %v4753_v50, %v4751_v51  ;;  %v176_v51 = vld [vmem:[#allocation8 + $0x70] sm:$0xff] }
 0x698   :  { %1656 = vmatmul.mubr.f32.vlgmr.msra.gmra.mrb[12].mxu0 %v1590_v62  ;;  %1727 = vmatmul.mubr.f32.vlgmr.msra.gmra.mrb[12].mxu1 %v1590_v62  ;;  %v179_v62 = vld [vmem:[#allocation8 + $0x88] sm:$0xff] }
 0x699   :  { %3946 = vmatpush1.bf16.msra.mxu0 %v5182_v15  ;;  %3978 = vmatpush1.bf16.msra.mxu1 %v5188_v19 }
 0x69a   :  { %3948 = vmatprep.subr.bf16.mxu0 %v5191_v23  ;;  %3980 = vmatprep.subr.bf16.mxu1 %v5193_v24 }
 0x69b   :  { %1825 = vmatprep.mubr.f32.mxu0 %v5063_v0  ;;  %1896 = vmatprep.mubr.f32.mxu1 %v5063_v0 }
 0x69d   :  { %3950 = vmatpush1.bf16.msra.mxu0 %v5197_v28  ;;  %3982 = vmatpush1.bf16.msra.mxu1 %v5201_v32 }
 0x69e   :  { %3952 = vmatprep.subr.bf16.mxu0 %v5205_v36  ;;  %3984 = vmatprep.subr.bf16.mxu1 %v5207_v37 }
 0x6a1   :  { %3954 = vmatpush1.bf16.msra.mxu0 %v5211_v41  ;;  %3986 = vmatpush1.bf16.msra.mxu1 %v5215_v45 }
 0x6a2   :  { %3956 = vmatprep.subr.bf16.mxu0 %v5219_v49  ;;  %3988 = vmatprep.subr.bf16.mxu1 %v5223_v53 }
 0x6a5   :  { %3958 = vmatpush1.bf16.msra.mxu0 %v5227_v56  ;;  %3990 = vmatpush1.bf16.msra.mxu1 %v5231_v60 }
 0x6a6   :  { %3960 = vmatprep.subr.bf16.mxu0 %v5235_v1  ;;  %3992 = vmatprep.subr.bf16.mxu1 %v5239_v4 }
 0x6a9   :  { %3962 = vmatpush1.bf16.msra.mxu0 %v5243_v7  ;;  %3994 = vmatpush1.bf16.msra.mxu1 %v5247_v12 }
 0x6aa   :  { %3964 = vmatprep.subr.bf16.mxu0 %v5251_v17  ;;  %3996 = vmatprep.subr.bf16.mxu1 %v5255_v21 }
 0x6ad   :  { %3966 = vmatpush1.bf16.msra.mxu0 %v5259_v26  ;;  %3998 = vmatpush1.bf16.msra.mxu1 %v5263_v30 }
 0x6ae   :  { %3968 = vmatprep.subr.bf16.mxu0 %v5267_v35  ;;  %4000 = vmatprep.subr.bf16.mxu1 %v5271_v40 }
 0x6b1   :  { %3970 = vmatpush1.bf16.msra.mxu0 %v5275_v44  ;;  %4002 = vmatpush1.bf16.msra.mxu1 %v5279_v48 }
 0x6b2   :  { %3972 = vmatprep.subr.bf16.mxu0 %v5283_v54  ;;  %4004 = vmatprep.subr.bf16.mxu1 %v5287_v58 }
 0x6b5   :  { %3974 = vmatpush1.bf16.msra.mxu0 %v5291_v59  ;;  %4006 = vmatpush1.bf16.msra.mxu1 %v5295_v61  ;;  %v163_v61 = vld [vmem:[#allocation8 + $0x8] sm:$0xff] }
 0x6b6   :  { %v4007_v43 = vpack.c.bf16 %v167_v46, %v163_v61  ;;  %4040 = vmatprep.subr.bf16.mxu1 %v4039_v14  ;;  %v194_v61 = vld [vmem:[#allocation8 + $0x100] sm:$0xff]  ;;  %v203_v14 = vld [vmem:[#allocation8 + $0x148] sm:$0xff] }
 0x6b7   :  { %v198_v46 = vld [vmem:[#allocation8 + $0x120] sm:$0xff] }
 0x6b8   :  { %4008 = vmatprep.subr.bf16.mxu0 %v4007_v43  ;;  %v4025_v43 = vpack.c.bf16 %v198_v46, %v194_v61 }
 0x76b   :  { %v1657_v15 = vpop.f32.mrb[12].mxu0  ;;  %v1728_v19 = vpop.f32.mrb[12].mxu1 }
 0x76c   :  { %v4595_v23 = vadd.f32 %v1657_v15, %v5351_v6  ;;  %v1659_v24 = vpop.f32.mrb[13].mxu0  ;;  %v1730_v28 = vpop.f32.mrb[13].mxu1  ;;  %v4611_v60 = vadd.f32 %v1728_v19, %v5368_v42  ;;  %v183_v15 = vld [vmem:[#allocation8 + $0xa8] sm:$0xff]  ;;  %v181_v19 = vld [vmem:[#allocation8 + $0x98] sm:$0xff] }
 0x76d   :  { %v4596_v32 = vadd.f32 %v1659_v24, %v5355_v8  ;;  %v4612_v49 = vadd.f32 %v1730_v28, %v5362_v22  ;;  %v185_v24 = vld [vmem:[#allocation8 + $0xb8] sm:$0xff]  ;;  %v178_v28 = vld [vmem:[#allocation8 + $0x80] sm:$0xff] }
 0x76e   :  { %v1737_v36 = vsub.f32 0.0, %v4595_v23  ;;  %v4015_v23 = vpack.c.bf16 %v183_v15, %v179_v62  ;;  %v210_v15 = vld [vmem:[#allocation8 + $0x180] sm:$0xff] }
 0x76f   :  { %v1743_v37 = vsub.f32 0.0, %v4596_v32  ;;  %v1750_v53 = vsub.f32 0.0, %v4612_v49  ;;  %v182_v32 = vld [vmem:[#allocation8 + $0xa0] sm:$0xff] }
 0x770   :  { %v1738_v41 = vmul.f32 1.442695, %v1737_v36  ;;  %v4047_v36 = vpack.c.bf16 %v185_v24, %v181_v19  ;;  %v214_v19 = vld [vmem:[#allocation8 + $0x1a0] sm:$0xff] }
 0x771   :  { %v1744_v45 = vmul.f32 1.442695, %v1743_v37  ;;  %v1751_v56 = vmul.f32 1.442695, %v1750_v53  ;;  %v4017_v37 = vpack.c.bf16 %v182_v32, %v178_v28  ;;  %v187_v53 = vld [vmem:[#allocation8 + $0xc8] sm:$0xff]  ;;  %v4033_v24 = vpack.c.bf16 %v214_v19, %v210_v15  ;;  %v216_v28 = vld [vmem:[#allocation8 + $0x1b0] sm:$0xff] }
 0x772   :  { %4754 = vpow2.f32 %v1738_v41  ;;  %v180_v41 = vld [vmem:[#allocation8 + $0x90] sm:$0xff]  ;;  %v219_v32 = vld [vmem:[#allocation8 + $0x1c8] sm:$0xff]  ;;  %v241_v15 = vld [vmem:[#allocation10 + $0x78] sm:$0xff] }
 0x773   :  { %4756 = vpow2.f32 %v1744_v45  ;;  %v184_v45 = vld [vmem:[#allocation8 + $0xb0] sm:$0xff] }
 0x774   :  { %4758 = vpow2.f32 %v1751_v56  ;;  %v4049_v49 = vpack.c.bf16 %v184_v45, %v180_v41  ;;  %v191_v56 = vld [vmem:[#allocation8 + $0xe8] sm:$0xff]  ;;  %v221_v45 = vld [vmem:[#allocation8 + $0x1d8] sm:$0xff] }
 0x775   :  { %4760 = vtanh.f32 %v4611_v60  ;;  %v189_v60 = vld [vmem:[#allocation8 + $0xd8] sm:$0xff] }
 0x77c   :  { %v4755_v1 = vpop.eup %4754 }
 0x77d   :  { %v4757_v4 = vpop.eup %4756  ;;  %v1740_v7 = vadd.f32 1.0, %v4755_v1  ;;  %v4019_v1 = vpack.c.bf16 %v191_v56, %v187_v53  ;;  %v218_v53 = vld [vmem:[#allocation8 + $0x1c0] sm:$0xff] }
 0x77e   :  { %v1746_v12 = vadd.f32 1.0, %v4757_v4  ;;  %v4759_v17 = vpop.eup %4758  ;;  %v193_v4 = vld [vmem:[#allocation8 + $0xf8] sm:$0xff] }
 0x77f   :  { %4762 = vrcp.f32 %v1740_v7  ;;  %v4761_v21 = vpop.eup %4760  ;;  %v1753_v40 = vadd.f32 1.0, %v4759_v17  ;;  %v186_v7 = vld [vmem:[#allocation8 + $0xc0] sm:$0xff]  ;;  %v4051_v17 = vpack.c.bf16 %v193_v4, %v189_v60  ;;  %v224_v4 = vld [vmem:[#allocation8 + $0x1f0] sm:$0xff] }
 0x780   :  { %4764 = vrcp.f32 %v1746_v12  ;;  %v190_v12 = vld [vmem:[#allocation8 + $0xe0] sm:$0xff] }
 0x781   :  { %4766 = vrcp.f32 %v1753_v40  ;;  %v195_v40 = vld [vmem:[#allocation8 + $0x108] sm:$0xff]  ;;  %v222_v60 = vld [vmem:[#allocation8 + $0x1e0] sm:$0xff] }
 0x789   :  { %v4763_v26 = vpop.eup %4762 }
 0x78a   :  { %v4765_v30 = vpop.eup %4764  ;;  %v1757_v35 = vmul.f32 %v4763_v26, %v4761_v21  ;;  %v4021_v21 = vpack.c.bf16 %v190_v12, %v186_v7  ;;  %v188_v26 = vld [vmem:[#allocation8 + $0xd0] sm:$0xff]  ;;  %v4037_v7 = vpack.c.bf16 %v222_v60, %v218_v53  ;;  %v227_v12 = vld [vmem:[#allocation10 + $0x8] sm:$0xff]  ;;  %v245_v60 = vld [vmem:[#allocation10 + $0x98] sm:$0xff] }
 0x78b   :  { %v1756_v44 = vmul.f32 %v4765_v30, %v5581_v55  ;;  %v4767_v54 = vpop.eup %4766  ;;  %v172_v55 = vld [vmem:[#allocation8 + $0x50] sm:$0xff]  ;;  %v243_v53 = vld [vmem:[#allocation10 + $0x88] sm:$0xff] }
 0x78c   :  { %v4045_v50 = vpack.c.bf16 %v176_v51, %v172_v55  ;;  %v192_v30 = vld [vmem:[#allocation8 + $0xf0] sm:$0xff]  ;;  %v213_v55 = vld [vmem:[#allocation8 + $0x198] sm:$0xff] }
 0x78d   :  { %v5621_v48 = vadd.f32 %v1757_v35, %v1756_v44  ;;  %v4053_v35 = vpack.c.bf16 %v192_v30, %v188_v26  ;;  %v199_v44 = vld [vmem:[#allocation8 + $0x128] sm:$0xff]  ;;  %v217_v51 = vld [vmem:[#allocation8 + $0x1b8] sm:$0xff] }
 0x78e   :  { %v4063_v62 = vpack.c.bf16 %v217_v51, %v213_v55  ;;  %v232_v55 = vld [vmem:[#allocation10 + $0x30] sm:$0xff]  ;;  %v235_v51 = vld [vmem:[#allocation10 + $0x48] sm:$0xff] }
 0x78f   :  { %4768 = vtanh.f32 %v5621_v48 }
 0x799   :  { %v4769_v58 = vpop.eup %4768 }
 0x79a   :  { %v1760_v59 = vmul.f32 %v4769_v58, %v4767_v54  ;;  %v197_v54 = vld [vmem:[#allocation8 + $0x118] sm:$0xff]  ;;  %v4023_v58 = vpack.c.bf16 %v199_v44, %v195_v40 }
 0x79c   :  { %1826 = vmatmul.mubr.f32.vlgmr.msra.gmra.mrb[14].mxu0 %v1760_v59  ;;  %1897 = vmatmul.mubr.f32.vlgmr.msra.gmra.mrb[14].mxu1 %v1760_v59  ;;  %v201_v59 = vld [vmem:[#allocation8 + $0x138] sm:$0xff] }
 0x79d   :  { %2016 = vmatprep.mubr.f32.mxu0 %v5063_v0  ;;  %2087 = vmatprep.mubr.f32.mxu1 %v5063_v0  ;;  %v4055_v13 = vpack.c.bf16 %v201_v59, %v197_v54 }
 0x79e   :  { %4010 = vmatpush1.bf16.msra.mxu0 %v4009_v10  ;;  %4042 = vmatpush1.bf16.msra.mxu1 %v4041_v29  ;;  %v207_v10 = vld [vmem:[#allocation8 + $0x168] sm:$0xff]  ;;  %v209_v29 = vld [vmem:[#allocation8 + $0x178] sm:$0xff] }
 0x79f   :  { %4012 = vmatprep.subr.bf16.mxu0 %v4011_v31  ;;  %4044 = vmatprep.subr.bf16.mxu1 %v4043_v25  ;;  %v4027_v27 = vpack.c.bf16 %v207_v10, %v203_v14  ;;  %v4059_v39 = vpack.c.bf16 %v209_v29, %v205_v11  ;;  %v4029_v31 = vpack.c.bf16 %v206_v34, %v202_v57 }
 0x7a0   :  { %v4061_v25 = vpack.c.bf16 %v208_v47, %v204_v33 }
 0x7a2   :  { %4014 = vmatpush1.bf16.msra.mxu0 %v4013_v52  ;;  %4046 = vmatpush1.bf16.msra.mxu1 %v4045_v50  ;;  %v215_v52 = vld [vmem:[#allocation8 + $0x1a8] sm:$0xff] }
 0x7a3   :  { %4016 = vmatprep.subr.bf16.mxu0 %v4015_v23  ;;  %4048 = vmatprep.subr.bf16.mxu1 %v4047_v36  ;;  %v4031_v50 = vpack.c.bf16 %v215_v52, %v211_v3  ;;  %v212_v23 = vld [vmem:[#allocation8 + $0x190] sm:$0xff]  ;;  %v223_v36 = vld [vmem:[#allocation8 + $0x1e8] sm:$0xff] }
 0x7a4   :  { %v4035_v41 = vpack.c.bf16 %v223_v36, %v219_v32  ;;  %v228_v52 = vld [vmem:[#allocation10 + $0x10] sm:$0xff]  ;;  %v234_v32 = vld [vmem:[#allocation10 + $0x40] sm:$0xff] }
 0x7a5   :  { %v238_v36 = vld [vmem:[#allocation10 + $0x60] sm:$0xff] }
 0x7a6   :  { %4018 = vmatpush1.bf16.msra.mxu0 %v4017_v37  ;;  %4050 = vmatpush1.bf16.msra.mxu1 %v4049_v49  ;;  %v4065_v37 = vpack.c.bf16 %v216_v28, %v212_v23  ;;  %v225_v49 = vld [vmem:[#allocation8 + $0x1f8] sm:$0xff]  ;;  %v5639_v28 = vpack.c.bf16 %v232_v55, %v228_v52 }
 0x7a7   :  { %4020 = vmatprep.subr.bf16.mxu0 %v4019_v1  ;;  %4052 = vmatprep.subr.bf16.mxu1 %v4051_v17  ;;  %v4067_v56 = vpack.c.bf16 %v225_v49, %v221_v45  ;;  %v220_v1 = vld [vmem:[#allocation8 + $0x1d0] sm:$0xff]  ;;  %v231_v17 = vld [vmem:[#allocation10 + $0x28] sm:$0xff]  ;;  %v273_v52 = vld [vmem:[#allocation10 + $0x178] sm:$0xff] }
 0x7a8   :  { %v4069_v26 = vpack.c.bf16 %v224_v4, %v220_v1  ;;  %v5626_v30 = vpack.c.bf16 %v231_v17, %v227_v12  ;;  %v236_v45 = vld [vmem:[#allocation10 + $0x50] sm:$0xff]  ;;  %v249_v1 = vld [vmem:[#allocation10 + $0xb8] sm:$0xff]  ;;  %v5647_v4 = vpack.c.bf16 %v238_v36, %v234_v32  ;;  %v242_v12 = vld [vmem:[#allocation10 + $0x80] sm:$0xff] }
 0x7a9   :  { %v240_v49 = vld [vmem:[#allocation10 + $0x70] sm:$0xff]  ;;  %v246_v17 = vld [vmem:[#allocation10 + $0xa0] sm:$0xff]  ;;  %v275_v36 = vld [vmem:[#allocation10 + $0x188] sm:$0xff] }
 0x7aa   :  { %4022 = vmatpush1.bf16.msra.mxu0 %v4021_v21  ;;  %4054 = vmatpush1.bf16.msra.mxu1 %v4053_v35  ;;  %v229_v21 = vld [vmem:[#allocation10 + $0x18] sm:$0xff]  ;;  %v272_v32 = vld [vmem:[#allocation10 + $0x170] sm:$0xff] }
 0x7ab   :  { %4024 = vmatprep.subr.bf16.mxu0 %v4023_v58  ;;  %4056 = vmatprep.subr.bf16.mxu1 %v4055_v13  ;;  %v233_v35 = vld [vmem:[#allocation10 + $0x38] sm:$0xff] }
 0x7ac   :  { %v5628_v40 = vpack.c.bf16 %v233_v35, %v229_v21  ;;  %v244_v35 = vld [vmem:[#allocation10 + $0x90] sm:$0xff] }
 0x7ae   :  { %4026 = vmatpush1.bf16.msra.mxu0 %v4025_v43  ;;  %4058 = vmatpush1.bf16.msra.mxu1 %v4057_v16 }
 0x7af   :  { %4028 = vmatprep.subr.bf16.mxu0 %v4027_v27  ;;  %4060 = vmatprep.subr.bf16.mxu1 %v4059_v39 }
 0x7b2   :  { %4030 = vmatpush1.bf16.msra.mxu0 %v4029_v31  ;;  %4062 = vmatpush1.bf16.msra.mxu1 %v4061_v25  ;;  %v230_v25 = vld [vmem:[#allocation10 + $0x20] sm:$0xff] }
 0x7b3   :  { %4032 = vmatprep.subr.bf16.mxu0 %v4031_v50  ;;  %4064 = vmatprep.subr.bf16.mxu1 %v4063_v62  ;;  %v239_v50 = vld [vmem:[#allocation10 + $0x68] sm:$0xff]  ;;  %v237_v62 = vld [vmem:[#allocation10 + $0x58] sm:$0xff] }
 0x7b6   :  { %4034 = vmatpush1.bf16.msra.mxu0 %v4033_v24  ;;  %4066 = vmatpush1.bf16.msra.mxu1 %v4065_v37  ;;  %v5641_v37 = vpack.c.bf16 %v239_v50, %v235_v51  ;;  %v266_v50 = vld [vmem:[#allocation10 + $0x140] sm:$0xff] }
 0x7b7   :  { %4036 = vmatprep.subr.bf16.mxu0 %v4035_v41  ;;  %4068 = vmatprep.subr.bf16.mxu1 %v4067_v56  ;;  %v5643_v41 = vpack.c.bf16 %v241_v15, %v237_v62  ;;  %v247_v56 = vld [vmem:[#allocation10 + $0xa8] sm:$0xff]  ;;  %v270_v62 = vld [vmem:[#allocation10 + $0x160] sm:$0xff] }
 0x7b8   :  { %v5653_v21 = vpack.c.bf16 %v247_v56, %v243_v53  ;;  %v5697_v53 = vpack.c.bf16 %v270_v62, %v266_v50 }
 0x7ba   :  { %4038 = vmatpush1.bf16.msra.mxu0 %v4037_v7  ;;  %4070 = vmatpush1.bf16.msra.mxu1 %v4069_v26  ;;  %v5649_v7 = vpack.c.bf16 %v240_v49, %v236_v45  ;;  %v5655_v26 = vpack.c.bf16 %v249_v1, %v245_v60  ;;  %v277_v45 = vld [vmem:[#allocation10 + $0x198] sm:$0xff]  ;;  %v274_v60 = vld [vmem:[#allocation10 + $0x180] sm:$0xff] }
 0x7bb   :  { %4072 = vmatprep.subr.bf16.mxu0 %v5626_v30  ;;  %4104 = vmatprep.subr.bf16.mxu1 %v5628_v40  ;;  %v281_v49 = vld [vmem:[#allocation10 + $0x1b8] sm:$0xff]  ;;  %v278_v1 = vld [vmem:[#allocation10 + $0x1a0] sm:$0xff] }
 0x86f   :  { %v1827_v44 = vpop.f32.mrb[14].mxu0  ;;  %v1898_v54 = vpop.f32.mrb[14].mxu1 }
 0x870   :  { %v4597_v58 = vadd.f32 %v1827_v44, %v5351_v6  ;;  %v1829_v59 = vpop.f32.mrb[15].mxu0  ;;  %v1900_v61 = vpop.f32.mrb[15].mxu1  ;;  %v4613_v11 = vadd.f32 %v1898_v54, %v5368_v42  ;;  %v226_v42 = vld [vmem:[#allocation10] sm:$0xff]  ;;  %v248_v44 = vld [vmem:[#allocation10 + $0xb0] sm:$0xff]  ;;  %v251_v54 = vld [vmem:[#allocation10 + $0xc8] sm:$0xff] }
 0x871   :  { %v4598_v46 = vadd.f32 %v1829_v59, %v5355_v8  ;;  %v4614_v16 = vadd.f32 %v1900_v61, %v5362_v22  ;;  %v5637_v24 = vpack.c.bf16 %v230_v25, %v226_v42  ;;  %v253_v59 = vld [vmem:[#allocation10 + $0xd8] sm:$0xff]  ;;  %v271_v42 = vld [vmem:[#allocation10 + $0x168] sm:$0xff] }
 0x872   :  { %v1907_v13 = vsub.f32 0.0, %v4597_v58  ;;  %v255_v58 = vld [vmem:[#allocation10 + $0xe8] sm:$0xff]  ;;  %v257_v61 = vld [vmem:[#allocation10 + $0xf8] sm:$0xff] }
 0x873   :  { %v1913_v43 = vsub.f32 0.0, %v4598_v46  ;;  %v1920_v14 = vsub.f32 0.0, %v4614_v16  ;;  %v5661_v46 = vpack.c.bf16 %v246_v17, %v242_v12  ;;  %v5669_v16 = vpack.c.bf16 %v257_v61, %v253_v59  ;;  %v269_v25 = vld [vmem:[#allocation10 + $0x158] sm:$0xff] }
 0x874   :  { %v1908_v18 = vmul.f32 1.442695, %v1907_v13  ;;  %v5663_v13 = vpack.c.bf16 %v248_v44, %v244_v35  ;;  %v5705_v17 = vpack.c.bf16 %v281_v49, %v277_v45  ;;  %v276_v35 = vld [vmem:[#allocation10 + $0x190] sm:$0xff]  ;;  %v285_v59 = vld [vmem:[#allocation10 + $0x1d8] sm:$0xff] }
 0x875   :  { %v1914_v20 = vmul.f32 1.442695, %v1913_v43  ;;  %v1921_v10 = vmul.f32 1.442695, %v1920_v14  ;;  %v250_v43 = vld [vmem:[#allocation10 + $0xc0] sm:$0xff]  ;;  %v252_v14 = vld [vmem:[#allocation10 + $0xd0] sm:$0xff] }
 0x876   :  { %4770 = vpow2.f32 %v1908_v18  ;;  %v254_v18 = vld [vmem:[#allocation10 + $0xe0] sm:$0xff]  ;;  %v280_v44 = vld [vmem:[#allocation10 + $0x1b0] sm:$0xff]  ;;  %v289_v61 = vld [vmem:[#allocation10 + $0x1f8] sm:$0xff] }
 0x877   :  { %4772 = vpow2.f32 %v1914_v20  ;;  %v5667_v20 = vpack.c.bf16 %v255_v58, %v251_v54  ;;  %v283_v54 = vld [vmem:[#allocation10 + $0x1c8] sm:$0xff] }
 0x878   :  { %4774 = vpow2.f32 %v1921_v10  ;;  %v256_v10 = vld [vmem:[#allocation10 + $0xf0] sm:$0xff]  ;;  %v287_v58 = vld [vmem:[#allocation10 + $0x1e8] sm:$0xff] }
 0x879   :  { %4776 = vtanh.f32 %v4613_v11  ;;  %v259_v11 = vld [vmem:[#allocation10 + $0x108] sm:$0xff] }
 0x880   :  { %v4771_v27 = vpop.eup %4770 }
 0x881   :  { %v4773_v29 = vpop.eup %4772  ;;  %v1910_v57 = vadd.f32 1.0, %v4771_v27  ;;  %v263_v27 = vld [vmem:[#allocation10 + $0x128] sm:$0xff] }
 0x882   :  { %v1916_v6 = vadd.f32 1.0, %v4773_v29  ;;  %v4775_v8 = vpop.eup %4774  ;;  %v261_v29 = vld [vmem:[#allocation10 + $0x118] sm:$0xff] }
 0x883   :  { %4778 = vrcp.f32 %v1910_v57  ;;  %v4777_v34 = vpop.eup %4776  ;;  %v1923_v22 = vadd.f32 1.0, %v4775_v8  ;;  %v265_v57 = vld [vmem:[#allocation10 + $0x138] sm:$0xff]  ;;  %v5675_v8 = vpack.c.bf16 %v256_v10, %v252_v14  ;;  %v282_v14 = vld [vmem:[#allocation10 + $0x1c0] sm:$0xff]  ;;  %v5715_v10 = vpack.c.bf16 %v287_v58, %v283_v54 }
 0x884   :  { %4780 = vrcp.f32 %v1916_v6  ;;  %v5673_v6 = vpack.c.bf16 %v254_v18, %v250_v43  ;;  %v5709_v43 = vpack.c.bf16 %v278_v1, %v274_v60  ;;  %v5711_v18 = vpack.c.bf16 %v280_v44, %v276_v35 }
 0x885   :  { %4782 = vrcp.f32 %v1923_v22  ;;  %v260_v22 = vld [vmem:[#allocation10 + $0x110] sm:$0xff] }
 0x88d   :  { %v4779_v39 = vpop.eup %4778 }
 0x88e   :  { %v4781_v31 = vpop.eup %4780  ;;  %v1927_v33 = vmul.f32 %v4779_v39, %v4777_v34  ;;  %v258_v34 = vld [vmem:[#allocation10 + $0x100] sm:$0xff] }
 0x88f   :  { %v1926_v47 = vmul.f32 %v4781_v31, %v5621_v48  ;;  %v4783_v19 = vpop.eup %4782  ;;  %v262_v39 = vld [vmem:[#allocation10 + $0x120] sm:$0xff]  ;;  %v5679_v31 = vpack.c.bf16 %v263_v27, %v259_v11  ;;  %v5717_v11 = vpack.c.bf16 %v289_v61, %v285_v59 }
 0x890   :  { %v5685_v55 = vpack.c.bf16 %v262_v39, %v258_v34  ;;  %v286_v27 = vld [vmem:[#allocation10 + $0x1e0] sm:$0xff] }
 0x891   :  { %v1928_v3 = vadd.f32 %v1927_v33, %v1926_v47  ;;  %v5681_v33 = vpack.c.bf16 %v265_v57, %v261_v29  ;;  %v264_v47 = vld [vmem:[#allocation10 + $0x130] sm:$0xff]  ;;  %v5721_v34 = vpack.c.bf16 %v286_v27, %v282_v14 }
 0x892   :  { %v5687_v51 = vpack.c.bf16 %v264_v47, %v260_v22  ;;  %v284_v29 = vld [vmem:[#allocation10 + $0x1d0] sm:$0xff] }
 0x893   :  { %4784 = vtanh.f32 %v1928_v3  ;;  %v267_v3 = vld [vmem:[#allocation10 + $0x148] sm:$0xff]  ;;  %v288_v57 = vld [vmem:[#allocation10 + $0x1f0] sm:$0xff] }
 0x894   :  { %v5691_v15 = vpack.c.bf16 %v271_v42, %v267_v3  ;;  %v5723_v39 = vpack.c.bf16 %v288_v57, %v284_v29 }
 0x89d   :  { %v4785_v23 = vpop.eup %4784 }
 0x89e   :  { %v1930_v48 = vmul.f32 %v4785_v23, %v4783_v19  ;;  %v5693_v19 = vpack.c.bf16 %v273_v52, %v269_v25  ;;  %v268_v23 = vld [vmem:[#allocation10 + $0x150] sm:$0xff]  ;;  %v290_v25 = vld [vmem:[%s6062_s6] sm:$0xf]  ;;  %s5064_s6 = smov [#allocation11]  }
 0x89f   :  { %v5699_v56 = vpack.c.bf16 %v272_v32, %v268_v23  ;;  %v1935_v52 = vrot.slane %v290_v25, %v302_v2  ;;  %v1939_v50 = vrot.slane %v290_v25, %v306_v5  ;;  %v1947_v32 = vrot.slane %v290_v25, %v314_v9  ;;  %s3468_s15 = sshll.u32 %s5064_s6, 4  ;;  %s3469_s15 = int_to_ptr.vmem [resolvable:$true] %s3468_s15 }
 0x8a0   :  { %2017 = vmatmul.mubr.f32.vlgmr.msra.gmra.mrb[16].mxu0 %v1930_v48  ;;  %2088 = vmatmul.mubr.f32.vlgmr.msra.gmra.mrb[16].mxu1 %v1930_v48  ;;  %v279_v48 = vld [vmem:[#allocation10 + $0x1a8] sm:$0xff]  ;;  %v1943_v9 = vrot.slane %v290_v25, %v310_v38  ;;  %s5024_s17 = scalar_lea.vmem %s3469_s15, 1024  ;;  %p5029_p13 = scmp.lt.s32.totalorder %s3469_s15, %s3469_s15 }
 0x8a1   :  { %4074 = vmatpush1.bf16.msra.mxu0 %v5637_v24  ;;  %4106 = vmatpush1.bf16.msra.mxu1 %v5639_v28  ;;  %v5703_v12 = vpack.c.bf16 %v279_v48, %v275_v36  ;;  %p5025_p12 = scmp.ne.s32.totalorder %s3469_s15, %s5024_s17  ;;  %p5030_p0 = scmp.lt.s32.totalorder %s5024_s17, %s5024_s17 }
 0x8a2   :  { %4076 = vmatprep.subr.bf16.mxu0 %v5641_v37  ;;  %4108 = vmatprep.subr.bf16.mxu1 %v5643_v41 }
 0x8a3   :  { %2158 = vmatprep.mubr.f32.mxu0 %v5063_v0  ;;  %2229 = vmatprep.mubr.f32.mxu1 %v5063_v0  ;;  %p5031_p1 = por %p5030_p0, %p5029_p13 }
 0x8a5   :  { %4078 = vmatpush1.bf16.msra.mxu0 %v5647_v4  ;;  %4110 = vmatpush1.bf16.msra.mxu1 %v5649_v7  ;;  %p5032_p2 = pnand %p5031_p1, %p5025_p12 }
 0x8a6   :  { %4080 = vmatprep.subr.bf16.mxu0 %v5653_v21  ;;  %4112 = vmatprep.subr.bf16.mxu1 %v5655_v26 }
 0x8a9   :  { %4082 = vmatpush1.bf16.msra.mxu0 %v5661_v46  ;;  %4114 = vmatpush1.bf16.msra.mxu1 %v5663_v13 }
 0x8aa   :  { %4084 = vmatprep.subr.bf16.mxu0 %v5667_v20  ;;  %4116 = vmatprep.subr.bf16.mxu1 %v5669_v16 }
 0x8ad   :  { %4086 = vmatpush1.bf16.msra.mxu0 %v5673_v6  ;;  %4118 = vmatpush1.bf16.msra.mxu1 %v5675_v8 }
 0x8ae   :  { %4088 = vmatprep.subr.bf16.mxu0 %v5679_v31  ;;  %4120 = vmatprep.subr.bf16.mxu1 %v5681_v33 }
 0x8b1   :  { %4090 = vmatpush1.bf16.msra.mxu0 %v5685_v55  ;;  %4122 = vmatpush1.bf16.msra.mxu1 %v5687_v51 }
 0x8b2   :  { %4092 = vmatprep.subr.bf16.mxu0 %v5691_v15  ;;  %4124 = vmatprep.subr.bf16.mxu1 %v5693_v19 }
 0x8b5   :  { %4094 = vmatpush1.bf16.msra.mxu0 %v5697_v53  ;;  %4126 = vmatpush1.bf16.msra.mxu1 %v5699_v56 }
 0x8b6   :  { %4096 = vmatprep.subr.bf16.mxu0 %v5703_v12  ;;  %4128 = vmatprep.subr.bf16.mxu1 %v5705_v17 }
 0x8b9   :  { %4098 = vmatpush1.bf16.msra.mxu0 %v5709_v43  ;;  %4130 = vmatpush1.bf16.msra.mxu1 %v5711_v18 }
 0x8ba   :  { %4100 = vmatprep.subr.bf16.mxu0 %v5715_v10  ;;  %4132 = vmatprep.subr.bf16.mxu1 %v5717_v11 }
 0x8bd   :  { %4102 = vmatpush1.bf16.msra.mxu0 %v5721_v34  ;;  %4134 = vmatpush1.bf16.msra.mxu1 %v5723_v39 }
 0x8be   :  { %4136 = vmatprep.subr.bf16.mxu0 %v5626_v30  ;;  %4168 = vmatprep.subr.bf16.mxu1 %v5628_v40 }
 0x8c0   :  { %2159 = vmatmul.mubr.f32.vlgmr.msra.gmra.mrb[18].mxu0 %v5063_v0  ;;  %2230 = vmatmul.mubr.f32.vlgmr.msra.gmra.mrb[18].mxu1 %v5063_v0 }
 0x8c1   :  { %4138 = vmatpush1.bf16.msra.mxu0 %v5637_v24  ;;  %4170 = vmatpush1.bf16.msra.mxu1 %v5639_v28 }
 0x8c2   :  { %4140 = vmatprep.subr.bf16.mxu0 %v5641_v37  ;;  %4172 = vmatprep.subr.bf16.mxu1 %v5643_v41 }
 0x8c3   :  { %2328 = vmatprep.mubr.f32.mxu0 %v5063_v0  ;;  %2399 = vmatprep.mubr.f32.mxu1 %v5063_v0 }
 0x8c5   :  { %4142 = vmatpush1.bf16.msra.mxu0 %v5647_v4  ;;  %4174 = vmatpush1.bf16.msra.mxu1 %v5649_v7 }
 0x8c6   :  { %4144 = vmatprep.subr.bf16.mxu0 %v5653_v21  ;;  %4176 = vmatprep.subr.bf16.mxu1 %v5655_v26 }
 0x8c9   :  { %4146 = vmatpush1.bf16.msra.mxu0 %v5661_v46  ;;  %4178 = vmatpush1.bf16.msra.mxu1 %v5663_v13 }
 0x8ca   :  { %4148 = vmatprep.subr.bf16.mxu0 %v5667_v20  ;;  %4180 = vmatprep.subr.bf16.mxu1 %v5669_v16 }
 0x8cd   :  { %4150 = vmatpush1.bf16.msra.mxu0 %v5673_v6  ;;  %4182 = vmatpush1.bf16.msra.mxu1 %v5675_v8 }
 0x8ce   :  { %4152 = vmatprep.subr.bf16.mxu0 %v5679_v31  ;;  %4184 = vmatprep.subr.bf16.mxu1 %v5681_v33 }
 0x8d1   :  { %4154 = vmatpush1.bf16.msra.mxu0 %v5685_v55  ;;  %4186 = vmatpush1.bf16.msra.mxu1 %v5687_v51 }
 0x8d2   :  { %4156 = vmatprep.subr.bf16.mxu0 %v5691_v15  ;;  %4188 = vmatprep.subr.bf16.mxu1 %v5693_v19 }
 0x8d5   :  { %4158 = vmatpush1.bf16.msra.mxu0 %v5697_v53  ;;  %4190 = vmatpush1.bf16.msra.mxu1 %v5699_v56 }
 0x8d6   :  { %4160 = vmatprep.subr.bf16.mxu0 %v5703_v12  ;;  %4192 = vmatprep.subr.bf16.mxu1 %v5705_v17 }
 0x8d9   :  { %4162 = vmatpush1.bf16.msra.mxu0 %v5709_v43  ;;  %4194 = vmatpush1.bf16.msra.mxu1 %v5711_v18 }
 0x8da   :  { %4164 = vmatprep.subr.bf16.mxu0 %v5715_v10  ;;  %4196 = vmatprep.subr.bf16.mxu1 %v5717_v11 }
 0x8dd   :  { %4166 = vmatpush1.bf16.msra.mxu0 %v5721_v34  ;;  %4198 = vmatpush1.bf16.msra.mxu1 %v5723_v39 }
 0x8de   :  { %4200 = vmatprep.subr.bf16.mxu0 %v5626_v30  ;;  %4232 = vmatprep.subr.bf16.mxu1 %v5628_v40 }
 0x973   :  { %v2018_v22 = vpop.f32.mrb[16].mxu0  ;;  %v2089_v47 = vpop.f32.mrb[16].mxu1 }
 0x974   :  { %v2020_v3 = vpop.f32.mrb[17].mxu0  ;;  %v2091_v42 = vpop.f32.mrb[17].mxu1  ;;  %v5774_v62 = vadd.f32 %v2018_v22, %v1935_v52  ;;  %v5787_v61 = vadd.f32 %v2089_v47, %v1943_v9 }
 0x975   :  { %v5776_v23 = vadd.f32 %v2020_v3, %v1939_v50  ;;  %v5782_v2 = vadd.f32 %v2091_v42, %v1947_v32 }
 0x993   :  { %v2160_v36 = vpop.f32.mrb[18].mxu0  ;;  %v2231_v48 = vpop.f32.mrb[18].mxu1 }
 0x994   :  { %v2236_v45 = vadd.f32 %v2160_v36, %v5774_v62  ;;  %v2162_v49 = vpop.f32.mrb[19].mxu0  ;;  %v2233_v60 = vpop.f32.mrb[19].mxu1  ;;  %v2238_v27 = vadd.f32 %v2231_v48, %v5787_v61 }
 0x995   :  { %v2237_v1 = vadd.f32 %v2162_v49, %v5776_v23  ;;  %v2239_v58 = vadd.f32 %v2233_v60, %v5782_v2 }
 0x996   :  { %v2240_v35 = vsub.f32 0.0, %v2236_v45 }
 0x997   :  { %v2246_v44 = vsub.f32 0.0, %v2237_v1  ;;  %v2253_v59 = vsub.f32 0.0, %v2239_v58 }
 0x998   :  { %v2241_v5 = vmul.f32 1.442695, %v2240_v35 }
 0x999   :  { %v2247_v54 = vmul.f32 1.442695, %v2246_v44  ;;  %v2254_v14 = vmul.f32 1.442695, %v2253_v59 }
 0x99a   :  { %4786 = vpow2.f32 %v2241_v5 }
 0x99b   :  { %4788 = vpow2.f32 %v2247_v54 }
 0x99c   :  { %4790 = vpow2.f32 %v2254_v14 }
 0x99d   :  { %4792 = vtanh.f32 %v2238_v27 }
 0x9a4   :  { %v4787_v29 = vpop.eup %4786 }
 0x9a5   :  { %v4789_v57 = vpop.eup %4788  ;;  %v2243_v22 = vadd.f32 1.0, %v4787_v29 }
 0x9a6   :  { %v2249_v3 = vadd.f32 1.0, %v4789_v57  ;;  %v4791_v42 = vpop.eup %4790 }
 0x9a7   :  { %4794 = vrcp.f32 %v2243_v22  ;;  %v4793_v52 = vpop.eup %4792  ;;  %v2256_v38 = vadd.f32 1.0, %v4791_v42 }
 0x9a8   :  { %4796 = vrcp.f32 %v2249_v3 }
 0x9a9   :  { %4798 = vrcp.f32 %v2256_v38 }
 0x9b1   :  { %v4795_v50 = vpop.eup %4794 }
 0x9b2   :  { %v4797_v32 = vpop.eup %4796  ;;  %v2260_v63 = vmul.f32 %v4795_v50, %v4793_v52 }
 0x9b3   :  { %v2259_v25 = vmul.f32 0.0, %v4797_v32  ;;  %v4799_v36 = vpop.eup %4798 }
 0x9b5   :  { %v5790_v47 = vadd.f32 %v2260_v63, %v2259_v25 }
 0x9b7   :  { %4800 = vtanh.f32 %v5790_v47 }
 0x9c1   :  { %v4801_v48 = vpop.eup %4800 }
 0x9c2   :  { %v2263_v45 = vmul.f32 %v4801_v48, %v4799_v36 }
 0x9c4   :  { %2329 = vmatmul.mubr.f32.vlgmr.msra.gmra.mrb[20].mxu0 %v2263_v45  ;;  %3454 = vst [vmem:[#allocation11] sm:$0xff] %v2263_v45  ;;  %2400 = vmatmul.mubr.f32.vlgmr.msra.gmra.mrb[20].mxu1 %v2263_v45 }
 0x9c5   :  { %4202 = vmatpush1.bf16.msra.mxu0 %v5637_v24  ;;  %4234 = vmatpush1.bf16.msra.mxu1 %v5639_v28 }
 0x9c6   :  { %4204 = vmatprep.subr.bf16.mxu0 %v5641_v37  ;;  %4236 = vmatprep.subr.bf16.mxu1 %v5643_v41 }
 0x9c7   :  { %2498 = vmatprep.mubr.f32.mxu0 %v5063_v0  ;;  %2569 = vmatprep.mubr.f32.mxu1 %v5063_v0 }
 0x9c9   :  { %4206 = vmatpush1.bf16.msra.mxu0 %v5647_v4  ;;  %4238 = vmatpush1.bf16.msra.mxu1 %v5649_v7 }
 0x9ca   :  { %4208 = vmatprep.subr.bf16.mxu0 %v5653_v21  ;;  %4240 = vmatprep.subr.bf16.mxu1 %v5655_v26 }
 0x9cd   :  { %4210 = vmatpush1.bf16.msra.mxu0 %v5661_v46  ;;  %4242 = vmatpush1.bf16.msra.mxu1 %v5663_v13 }
 0x9ce   :  { %4212 = vmatprep.subr.bf16.mxu0 %v5667_v20  ;;  %4244 = vmatprep.subr.bf16.mxu1 %v5669_v16 }
 0x9d1   :  { %4214 = vmatpush1.bf16.msra.mxu0 %v5673_v6  ;;  %4246 = vmatpush1.bf16.msra.mxu1 %v5675_v8 }
 0x9d2   :  { %4216 = vmatprep.subr.bf16.mxu0 %v5679_v31  ;;  %4248 = vmatprep.subr.bf16.mxu1 %v5681_v33 }
 0x9d5   :  { %4218 = vmatpush1.bf16.msra.mxu0 %v5685_v55  ;;  %4250 = vmatpush1.bf16.msra.mxu1 %v5687_v51 }
 0x9d6   :  { %4220 = vmatprep.subr.bf16.mxu0 %v5691_v15  ;;  %4252 = vmatprep.subr.bf16.mxu1 %v5693_v19 }
 0x9d9   :  { %4222 = vmatpush1.bf16.msra.mxu0 %v5697_v53  ;;  %4254 = vmatpush1.bf16.msra.mxu1 %v5699_v56 }
 0x9da   :  { %4224 = vmatprep.subr.bf16.mxu0 %v5703_v12  ;;  %4256 = vmatprep.subr.bf16.mxu1 %v5705_v17 }
 0x9dd   :  { %4226 = vmatpush1.bf16.msra.mxu0 %v5709_v43  ;;  %4258 = vmatpush1.bf16.msra.mxu1 %v5711_v18 }
 0x9de   :  { %4228 = vmatprep.subr.bf16.mxu0 %v5715_v10  ;;  %4260 = vmatprep.subr.bf16.mxu1 %v5717_v11 }
 0x9e1   :  { %4230 = vmatpush1.bf16.msra.mxu0 %v5721_v34  ;;  %4262 = vmatpush1.bf16.msra.mxu1 %v5723_v39 }
 0x9e2   :  { %4264 = vmatprep.subr.bf16.mxu0 %v5626_v30  ;;  %4296 = vmatprep.subr.bf16.mxu1 %v5628_v40 }
 0xa97   :  { %v2330_v49 = vpop.f32.mrb[20].mxu0  ;;  %v2401_v60 = vpop.f32.mrb[20].mxu1 }
 0xa98   :  { %v2406_v1 = vadd.f32 %v2330_v49, %v5774_v62  ;;  %v2332_v35 = vpop.f32.mrb[21].mxu0  ;;  %v2403_v44 = vpop.f32.mrb[21].mxu1  ;;  %v2408_v57 = vadd.f32 %v2401_v60, %v5787_v61 }
 0xa99   :  { %v2407_v5 = vadd.f32 %v2332_v35, %v5776_v23  ;;  %v2409_v14 = vadd.f32 %v2403_v44, %v5782_v2 }
 0xa9a   :  { %v2410_v54 = vsub.f32 0.0, %v2406_v1 }
 0xa9b   :  { %v2416_v58 = vsub.f32 0.0, %v2407_v5  ;;  %v2423_v27 = vsub.f32 0.0, %v2409_v14 }
 0xa9c   :  { %v2411_v9 = vmul.f32 1.442695, %v2410_v54 }
 0xa9d   :  { %v2417_v59 = vmul.f32 1.442695, %v2416_v58  ;;  %v2424_v29 = vmul.f32 1.442695, %v2423_v27 }
 0xa9e   :  { %4802 = vpow2.f32 %v2411_v9 }
 0xa9f   :  { %4804 = vpow2.f32 %v2417_v59 }
 0xaa0   :  { %4806 = vpow2.f32 %v2424_v29 }
 0xaa1   :  { %4808 = vtanh.f32 %v2408_v57 }
 0xaa8   :  { %v4803_v22 = vpop.eup %4802 }
 0xaa9   :  { %v4805_v3 = vpop.eup %4804  ;;  %v2413_v42 = vadd.f32 1.0, %v4803_v22 }
 0xaaa   :  { %v2419_v52 = vadd.f32 1.0, %v4805_v3  ;;  %v4807_v50 = vpop.eup %4806 }
 0xaab   :  { %4810 = vrcp.f32 %v2413_v42  ;;  %v4809_v32 = vpop.eup %4808  ;;  %v2426_v36 = vadd.f32 1.0, %v4807_v50 }
 0xaac   :  { %4812 = vrcp.f32 %v2419_v52 }
 0xaad   :  { %4814 = vrcp.f32 %v2426_v36 }
 0xab5   :  { %v4811_v63 = vpop.eup %4810 }
 0xab6   :  { %v4813_v38 = vpop.eup %4812  ;;  %v2430_v25 = vmul.f32 %v4811_v63, %v4809_v32 }
 0xab7   :  { %v2429_v48 = vmul.f32 %v4813_v38, %v5790_v47  ;;  %v4815_v49 = vpop.eup %4814 }
 0xab9   :  { %v5832_v45 = vadd.f32 %v2430_v25, %v2429_v48 }
 0xabb   :  { %4816 = vtanh.f32 %v5832_v45 }
 0xac5   :  { %v4817_v60 = vpop.eup %4816 }
 0xac6   :  { %v2433_v1 = vmul.f32 %v4817_v60, %v4815_v49 }
 0xac8   :  { %2499 = vmatmul.mubr.f32.vlgmr.msra.gmra.mrb[22].mxu0 %v2433_v1  ;;  %3455 = vst [vmem:[#allocation11 + $0x8] sm:$0xff] %v2433_v1  ;;  %2570 = vmatmul.mubr.f32.vlgmr.msra.gmra.mrb[22].mxu1 %v2433_v1 }
 0xac9   :  { %4266 = vmatpush1.bf16.msra.mxu0 %v5637_v24  ;;  %4298 = vmatpush1.bf16.msra.mxu1 %v5639_v28 }
 0xaca   :  { %4268 = vmatprep.subr.bf16.mxu0 %v5641_v37  ;;  %4300 = vmatprep.subr.bf16.mxu1 %v5643_v41 }
 0xacb   :  { %2668 = vmatprep.mubr.f32.mxu0 %v5063_v0  ;;  %2739 = vmatprep.mubr.f32.mxu1 %v5063_v0 }
 0xacd   :  { %4270 = vmatpush1.bf16.msra.mxu0 %v5647_v4  ;;  %4302 = vmatpush1.bf16.msra.mxu1 %v5649_v7 }
 0xace   :  { %4272 = vmatprep.subr.bf16.mxu0 %v5653_v21  ;;  %4304 = vmatprep.subr.bf16.mxu1 %v5655_v26 }
 0xad1   :  { %4274 = vmatpush1.bf16.msra.mxu0 %v5661_v46  ;;  %4306 = vmatpush1.bf16.msra.mxu1 %v5663_v13 }
 0xad2   :  { %4276 = vmatprep.subr.bf16.mxu0 %v5667_v20  ;;  %4308 = vmatprep.subr.bf16.mxu1 %v5669_v16 }
 0xad5   :  { %4278 = vmatpush1.bf16.msra.mxu0 %v5673_v6  ;;  %4310 = vmatpush1.bf16.msra.mxu1 %v5675_v8 }
 0xad6   :  { %4280 = vmatprep.subr.bf16.mxu0 %v5679_v31  ;;  %4312 = vmatprep.subr.bf16.mxu1 %v5681_v33 }
 0xad9   :  { %4282 = vmatpush1.bf16.msra.mxu0 %v5685_v55  ;;  %4314 = vmatpush1.bf16.msra.mxu1 %v5687_v51 }
 0xada   :  { %4284 = vmatprep.subr.bf16.mxu0 %v5691_v15  ;;  %4316 = vmatprep.subr.bf16.mxu1 %v5693_v19 }
 0xadd   :  { %4286 = vmatpush1.bf16.msra.mxu0 %v5697_v53  ;;  %4318 = vmatpush1.bf16.msra.mxu1 %v5699_v56 }
 0xade   :  { %4288 = vmatprep.subr.bf16.mxu0 %v5703_v12  ;;  %4320 = vmatprep.subr.bf16.mxu1 %v5705_v17 }
 0xae1   :  { %4290 = vmatpush1.bf16.msra.mxu0 %v5709_v43  ;;  %4322 = vmatpush1.bf16.msra.mxu1 %v5711_v18 }
 0xae2   :  { %4292 = vmatprep.subr.bf16.mxu0 %v5715_v10  ;;  %4324 = vmatprep.subr.bf16.mxu1 %v5717_v11 }
 0xae5   :  { %4294 = vmatpush1.bf16.msra.mxu0 %v5721_v34  ;;  %4326 = vmatpush1.bf16.msra.mxu1 %v5723_v39 }
 0xae6   :  { %4328 = vmatprep.subr.bf16.mxu0 %v5626_v30  ;;  %4360 = vmatprep.subr.bf16.mxu1 %v5628_v40 }
 0xb9b   :  { %v2500_v47 = vpop.f32.mrb[22].mxu0  ;;  %v2571_v35 = vpop.f32.mrb[22].mxu1 }
 0xb9c   :  { %v2576_v44 = vadd.f32 %v2500_v47, %v5774_v62  ;;  %v2502_v5 = vpop.f32.mrb[23].mxu0  ;;  %v2573_v54 = vpop.f32.mrb[23].mxu1  ;;  %v2578_v3 = vadd.f32 %v2571_v35, %v5787_v61 }
 0xb9d   :  { %v2577_v58 = vadd.f32 %v2502_v5, %v5776_v23  ;;  %v2579_v29 = vadd.f32 %v2573_v54, %v5782_v2 }
 0xb9e   :  { %v2580_v9 = vsub.f32 0.0, %v2576_v44 }
 0xb9f   :  { %v2586_v59 = vsub.f32 0.0, %v2577_v58  ;;  %v2593_v57 = vsub.f32 0.0, %v2579_v29 }
 0xba0   :  { %v2581_v14 = vmul.f32 1.442695, %v2580_v9 }
 0xba1   :  { %v2587_v27 = vmul.f32 1.442695, %v2586_v59  ;;  %v2594_v22 = vmul.f32 1.442695, %v2593_v57 }
 0xba2   :  { %4818 = vpow2.f32 %v2581_v14 }
 0xba3   :  { %4820 = vpow2.f32 %v2587_v27 }
 0xba4   :  { %4822 = vpow2.f32 %v2594_v22 }
 0xba5   :  { %4824 = vtanh.f32 %v2578_v3 }
 0xbac   :  { %v4819_v42 = vpop.eup %4818 }
 0xbad   :  { %v4821_v52 = vpop.eup %4820  ;;  %v2583_v50 = vadd.f32 1.0, %v4819_v42 }
 0xbae   :  { %v2589_v32 = vadd.f32 1.0, %v4821_v52  ;;  %v4823_v63 = vpop.eup %4822 }
 0xbaf   :  { %4826 = vrcp.f32 %v2583_v50  ;;  %v4825_v38 = vpop.eup %4824  ;;  %v2596_v49 = vadd.f32 1.0, %v4823_v63 }
 0xbb0   :  { %4828 = vrcp.f32 %v2589_v32 }
 0xbb1   :  { %4830 = vrcp.f32 %v2596_v49 }
 0xbb9   :  { %v4827_v25 = vpop.eup %4826 }
 0xbba   :  { %v4829_v36 = vpop.eup %4828  ;;  %v2600_v48 = vmul.f32 %v4827_v25, %v4825_v38 }
 0xbbb   :  { %v2599_v60 = vmul.f32 %v4829_v36, %v5832_v45  ;;  %v4831_v47 = vpop.eup %4830 }
 0xbbd   :  { %v5874_v1 = vadd.f32 %v2600_v48, %v2599_v60 }
 0xbbf   :  { %4832 = vtanh.f32 %v5874_v1 }
 0xbc9   :  { %v4833_v35 = vpop.eup %4832 }
 0xbca   :  { %v2603_v44 = vmul.f32 %v4833_v35, %v4831_v47 }
 0xbcc   :  { %2669 = vmatmul.mubr.f32.vlgmr.msra.gmra.mrb[24].mxu0 %v2603_v44  ;;  %3456 = vst [vmem:[#allocation11 + $0x10] sm:$0xff] %v2603_v44  ;;  %2740 = vmatmul.mubr.f32.vlgmr.msra.gmra.mrb[24].mxu1 %v2603_v44 }
 0xbcd   :  { %4330 = vmatpush1.bf16.msra.mxu0 %v5637_v24  ;;  %4362 = vmatpush1.bf16.msra.mxu1 %v5639_v28 }
 0xbce   :  { %4332 = vmatprep.subr.bf16.mxu0 %v5641_v37  ;;  %4364 = vmatprep.subr.bf16.mxu1 %v5643_v41 }
 0xbcf   :  { %2838 = vmatprep.mubr.f32.mxu0 %v5063_v0  ;;  %2909 = vmatprep.mubr.f32.mxu1 %v5063_v0 }
 0xbd1   :  { %4334 = vmatpush1.bf16.msra.mxu0 %v5647_v4  ;;  %4366 = vmatpush1.bf16.msra.mxu1 %v5649_v7 }
 0xbd2   :  { %4336 = vmatprep.subr.bf16.mxu0 %v5653_v21  ;;  %4368 = vmatprep.subr.bf16.mxu1 %v5655_v26 }
 0xbd5   :  { %4338 = vmatpush1.bf16.msra.mxu0 %v5661_v46  ;;  %4370 = vmatpush1.bf16.msra.mxu1 %v5663_v13 }
 0xbd6   :  { %4340 = vmatprep.subr.bf16.mxu0 %v5667_v20  ;;  %4372 = vmatprep.subr.bf16.mxu1 %v5669_v16 }
 0xbd9   :  { %4342 = vmatpush1.bf16.msra.mxu0 %v5673_v6  ;;  %4374 = vmatpush1.bf16.msra.mxu1 %v5675_v8 }
 0xbda   :  { %4344 = vmatprep.subr.bf16.mxu0 %v5679_v31  ;;  %4376 = vmatprep.subr.bf16.mxu1 %v5681_v33 }
 0xbdd   :  { %4346 = vmatpush1.bf16.msra.mxu0 %v5685_v55  ;;  %4378 = vmatpush1.bf16.msra.mxu1 %v5687_v51 }
 0xbde   :  { %4348 = vmatprep.subr.bf16.mxu0 %v5691_v15  ;;  %4380 = vmatprep.subr.bf16.mxu1 %v5693_v19 }
 0xbe1   :  { %4350 = vmatpush1.bf16.msra.mxu0 %v5697_v53  ;;  %4382 = vmatpush1.bf16.msra.mxu1 %v5699_v56 }
 0xbe2   :  { %4352 = vmatprep.subr.bf16.mxu0 %v5703_v12  ;;  %4384 = vmatprep.subr.bf16.mxu1 %v5705_v17 }
 0xbe5   :  { %4354 = vmatpush1.bf16.msra.mxu0 %v5709_v43  ;;  %4386 = vmatpush1.bf16.msra.mxu1 %v5711_v18 }
 0xbe6   :  { %4356 = vmatprep.subr.bf16.mxu0 %v5715_v10  ;;  %4388 = vmatprep.subr.bf16.mxu1 %v5717_v11 }
 0xbe9   :  { %4358 = vmatpush1.bf16.msra.mxu0 %v5721_v34  ;;  %4390 = vmatpush1.bf16.msra.mxu1 %v5723_v39 }
 0xbea   :  { %4392 = vmatprep.subr.bf16.mxu0 %v5626_v30  ;;  %4424 = vmatprep.subr.bf16.mxu1 %v5628_v40 }
 0xc9f   :  { %v2670_v45 = vpop.f32.mrb[24].mxu0  ;;  %v2741_v5 = vpop.f32.mrb[24].mxu1 }
 0xca0   :  { %v2746_v54 = vadd.f32 %v2670_v45, %v5774_v62  ;;  %v2672_v58 = vpop.f32.mrb[25].mxu0  ;;  %v2743_v9 = vpop.f32.mrb[25].mxu1  ;;  %v2748_v52 = vadd.f32 %v2741_v5, %v5787_v61 }
 0xca1   :  { %v2747_v59 = vadd.f32 %v2672_v58, %v5776_v23  ;;  %v2749_v22 = vadd.f32 %v2743_v9, %v5782_v2 }
 0xca2   :  { %v2750_v14 = vsub.f32 0.0, %v2746_v54 }
 0xca3   :  { %v2756_v27 = vsub.f32 0.0, %v2747_v59  ;;  %v2763_v3 = vsub.f32 0.0, %v2749_v22 }
 0xca4   :  { %v2751_v29 = vmul.f32 1.442695, %v2750_v14 }
 0xca5   :  { %v2757_v57 = vmul.f32 1.442695, %v2756_v27  ;;  %v2764_v42 = vmul.f32 1.442695, %v2763_v3 }
 0xca6   :  { %4834 = vpow2.f32 %v2751_v29 }
 0xca7   :  { %4836 = vpow2.f32 %v2757_v57 }
 0xca8   :  { %4838 = vpow2.f32 %v2764_v42 }
 0xca9   :  { %4840 = vtanh.f32 %v2748_v52 }
 0xcb0   :  { %v4835_v50 = vpop.eup %4834 }
 0xcb1   :  { %v4837_v32 = vpop.eup %4836  ;;  %v2753_v63 = vadd.f32 1.0, %v4835_v50 }
 0xcb2   :  { %v2759_v38 = vadd.f32 1.0, %v4837_v32  ;;  %v4839_v25 = vpop.eup %4838 }
 0xcb3   :  { %4842 = vrcp.f32 %v2753_v63  ;;  %v4841_v36 = vpop.eup %4840  ;;  %v2766_v47 = vadd.f32 1.0, %v4839_v25 }
 0xcb4   :  { %4844 = vrcp.f32 %v2759_v38 }
 0xcb5   :  { %4846 = vrcp.f32 %v2766_v47 }
 0xcbd   :  { %v4843_v48 = vpop.eup %4842 }
 0xcbe   :  { %v4845_v49 = vpop.eup %4844  ;;  %v2770_v60 = vmul.f32 %v4843_v48, %v4841_v36 }
 0xcbf   :  { %v2769_v35 = vmul.f32 %v4845_v49, %v5874_v1  ;;  %v4847_v45 = vpop.eup %4846 }
 0xcc1   :  { %v5916_v44 = vadd.f32 %v2770_v60, %v2769_v35 }
 0xcc3   :  { %4848 = vtanh.f32 %v5916_v44 }
 0xccd   :  { %v4849_v5 = vpop.eup %4848 }
 0xcce   :  { %v2773_v54 = vmul.f32 %v4849_v5, %v4847_v45 }
 0xcd0   :  { %2839 = vmatmul.mubr.f32.vlgmr.msra.gmra.mrb[26].mxu0 %v2773_v54  ;;  %3457 = vst [vmem:[#allocation11 + $0x18] sm:$0xff] %v2773_v54  ;;  %2910 = vmatmul.mubr.f32.vlgmr.msra.gmra.mrb[26].mxu1 %v2773_v54 }
 0xcd1   :  { %4394 = vmatpush1.bf16.msra.mxu0 %v5637_v24  ;;  %4426 = vmatpush1.bf16.msra.mxu1 %v5639_v28 }
 0xcd2   :  { %4396 = vmatprep.subr.bf16.mxu0 %v5641_v37  ;;  %4428 = vmatprep.subr.bf16.mxu1 %v5643_v41 }
 0xcd3   :  { %3008 = vmatprep.mubr.f32.mxu0 %v5063_v0  ;;  %3079 = vmatprep.mubr.f32.mxu1 %v5063_v0 }
 0xcd5   :  { %4398 = vmatpush1.bf16.msra.mxu0 %v5647_v4  ;;  %4430 = vmatpush1.bf16.msra.mxu1 %v5649_v7 }
 0xcd6   :  { %4400 = vmatprep.subr.bf16.mxu0 %v5653_v21  ;;  %4432 = vmatprep.subr.bf16.mxu1 %v5655_v26 }
 0xcd9   :  { %4402 = vmatpush1.bf16.msra.mxu0 %v5661_v46  ;;  %4434 = vmatpush1.bf16.msra.mxu1 %v5663_v13 }
 0xcda   :  { %4404 = vmatprep.subr.bf16.mxu0 %v5667_v20  ;;  %4436 = vmatprep.subr.bf16.mxu1 %v5669_v16 }
 0xcdd   :  { %4406 = vmatpush1.bf16.msra.mxu0 %v5673_v6  ;;  %4438 = vmatpush1.bf16.msra.mxu1 %v5675_v8 }
 0xcde   :  { %4408 = vmatprep.subr.bf16.mxu0 %v5679_v31  ;;  %4440 = vmatprep.subr.bf16.mxu1 %v5681_v33 }
 0xce1   :  { %4410 = vmatpush1.bf16.msra.mxu0 %v5685_v55  ;;  %4442 = vmatpush1.bf16.msra.mxu1 %v5687_v51 }
 0xce2   :  { %4412 = vmatprep.subr.bf16.mxu0 %v5691_v15  ;;  %4444 = vmatprep.subr.bf16.mxu1 %v5693_v19 }
 0xce5   :  { %4414 = vmatpush1.bf16.msra.mxu0 %v5697_v53  ;;  %4446 = vmatpush1.bf16.msra.mxu1 %v5699_v56 }
 0xce6   :  { %4416 = vmatprep.subr.bf16.mxu0 %v5703_v12  ;;  %4448 = vmatprep.subr.bf16.mxu1 %v5705_v17 }
 0xce9   :  { %4418 = vmatpush1.bf16.msra.mxu0 %v5709_v43  ;;  %4450 = vmatpush1.bf16.msra.mxu1 %v5711_v18 }
 0xcea   :  { %4420 = vmatprep.subr.bf16.mxu0 %v5715_v10  ;;  %4452 = vmatprep.subr.bf16.mxu1 %v5717_v11 }
 0xced   :  { %4422 = vmatpush1.bf16.msra.mxu0 %v5721_v34  ;;  %4454 = vmatpush1.bf16.msra.mxu1 %v5723_v39 }
 0xcee   :  { %4456 = vmatprep.subr.bf16.mxu0 %v5626_v30  ;;  %4488 = vmatprep.subr.bf16.mxu1 %v5628_v40 }
 0xda3   :  { %v2840_v1 = vpop.f32.mrb[26].mxu0  ;;  %v2911_v58 = vpop.f32.mrb[26].mxu1 }
 0xda4   :  { %v2916_v9 = vadd.f32 %v2840_v1, %v5774_v62  ;;  %v2842_v59 = vpop.f32.mrb[27].mxu0  ;;  %v2913_v14 = vpop.f32.mrb[27].mxu1  ;;  %v2918_v32 = vadd.f32 %v2911_v58, %v5787_v61 }
 0xda5   :  { %v2917_v27 = vadd.f32 %v2842_v59, %v5776_v23  ;;  %v2919_v42 = vadd.f32 %v2913_v14, %v5782_v2 }
 0xda6   :  { %v2920_v29 = vsub.f32 0.0, %v2916_v9 }
 0xda7   :  { %v2926_v57 = vsub.f32 0.0, %v2917_v27  ;;  %v2933_v52 = vsub.f32 0.0, %v2919_v42 }
 0xda8   :  { %v2921_v22 = vmul.f32 1.442695, %v2920_v29 }
 0xda9   :  { %v2927_v3 = vmul.f32 1.442695, %v2926_v57  ;;  %v2934_v50 = vmul.f32 1.442695, %v2933_v52 }
 0xdaa   :  { %4850 = vpow2.f32 %v2921_v22 }
 0xdab   :  { %4852 = vpow2.f32 %v2927_v3 }
 0xdac   :  { %4854 = vpow2.f32 %v2934_v50 }
 0xdad   :  { %4856 = vtanh.f32 %v2918_v32 }
 0xdb4   :  { %v4851_v63 = vpop.eup %4850 }
 0xdb5   :  { %v4853_v38 = vpop.eup %4852  ;;  %v2923_v25 = vadd.f32 1.0, %v4851_v63 }
 0xdb6   :  { %v2929_v36 = vadd.f32 1.0, %v4853_v38  ;;  %v4855_v48 = vpop.eup %4854 }
 0xdb7   :  { %4858 = vrcp.f32 %v2923_v25  ;;  %v4857_v49 = vpop.eup %4856  ;;  %v2936_v45 = vadd.f32 1.0, %v4855_v48 }
 0xdb8   :  { %4860 = vrcp.f32 %v2929_v36 }
 0xdb9   :  { %4862 = vrcp.f32 %v2936_v45 }
 0xdc1   :  { %v4859_v60 = vpop.eup %4858 }
 0xdc2   :  { %v4861_v47 = vpop.eup %4860  ;;  %v2940_v35 = vmul.f32 %v4859_v60, %v4857_v49 }
 0xdc3   :  { %v2939_v5 = vmul.f32 %v4861_v47, %v5916_v44  ;;  %v4863_v1 = vpop.eup %4862 }
 0xdc5   :  { %v5958_v54 = vadd.f32 %v2940_v35, %v2939_v5 }
 0xdc7   :  { %4864 = vtanh.f32 %v5958_v54 }
 0xdd1   :  { %v4865_v58 = vpop.eup %4864 }
 0xdd2   :  { %v2943_v9 = vmul.f32 %v4865_v58, %v4863_v1 }
 0xdd4   :  { %3009 = vmatmul.mubr.f32.vlgmr.msra.gmra.mrb[28].mxu0 %v2943_v9  ;;  %3458 = vst [vmem:[#allocation11 + $0x20] sm:$0xff] %v2943_v9  ;;  %3080 = vmatmul.mubr.f32.vlgmr.msra.gmra.mrb[28].mxu1 %v2943_v9 }
 0xdd5   :  { %4458 = vmatpush1.bf16.msra.mxu0 %v5637_v24  ;;  %4490 = vmatpush1.bf16.msra.mxu1 %v5639_v28 }
 0xdd6   :  { %4460 = vmatprep.subr.bf16.mxu0 %v5641_v37  ;;  %4492 = vmatprep.subr.bf16.mxu1 %v5643_v41 }
 0xdd7   :  { %3178 = vmatprep.mubr.f32.mxu0 %v5063_v0  ;;  %3249 = vmatprep.mubr.f32.mxu1 %v5063_v0 }
 0xdd9   :  { %4462 = vmatpush1.bf16.msra.mxu0 %v5647_v4  ;;  %4494 = vmatpush1.bf16.msra.mxu1 %v5649_v7 }
 0xdda   :  { %4464 = vmatprep.subr.bf16.mxu0 %v5653_v21  ;;  %4496 = vmatprep.subr.bf16.mxu1 %v5655_v26 }
 0xddd   :  { %4466 = vmatpush1.bf16.msra.mxu0 %v5661_v46  ;;  %4498 = vmatpush1.bf16.msra.mxu1 %v5663_v13 }
 0xdde   :  { %4468 = vmatprep.subr.bf16.mxu0 %v5667_v20  ;;  %4500 = vmatprep.subr.bf16.mxu1 %v5669_v16 }
 0xde1   :  { %4470 = vmatpush1.bf16.msra.mxu0 %v5673_v6  ;;  %4502 = vmatpush1.bf16.msra.mxu1 %v5675_v8 }
 0xde2   :  { %4472 = vmatprep.subr.bf16.mxu0 %v5679_v31  ;;  %4504 = vmatprep.subr.bf16.mxu1 %v5681_v33 }
 0xde5   :  { %4474 = vmatpush1.bf16.msra.mxu0 %v5685_v55  ;;  %4506 = vmatpush1.bf16.msra.mxu1 %v5687_v51 }
 0xde6   :  { %4476 = vmatprep.subr.bf16.mxu0 %v5691_v15  ;;  %4508 = vmatprep.subr.bf16.mxu1 %v5693_v19 }
 0xde9   :  { %4478 = vmatpush1.bf16.msra.mxu0 %v5697_v53  ;;  %4510 = vmatpush1.bf16.msra.mxu1 %v5699_v56 }
 0xdea   :  { %4480 = vmatprep.subr.bf16.mxu0 %v5703_v12  ;;  %4512 = vmatprep.subr.bf16.mxu1 %v5705_v17 }
 0xded   :  { %4482 = vmatpush1.bf16.msra.mxu0 %v5709_v43  ;;  %4514 = vmatpush1.bf16.msra.mxu1 %v5711_v18 }
 0xdee   :  { %4484 = vmatprep.subr.bf16.mxu0 %v5715_v10  ;;  %4516 = vmatprep.subr.bf16.mxu1 %v5717_v11 }
 0xdf1   :  { %4486 = vmatpush1.bf16.msra.mxu0 %v5721_v34  ;;  %4518 = vmatpush1.bf16.msra.mxu1 %v5723_v39 }
 0xdf2   :  { %4520 = vmatprep.subr.bf16.mxu0 %v5626_v30  ;;  %4552 = vmatprep.subr.bf16.mxu1 %v5628_v40 }
 0xea7   :  { %v3010_v44 = vpop.f32.mrb[28].mxu0  ;;  %v3081_v59 = vpop.f32.mrb[28].mxu1 }
 0xea8   :  { %v3086_v14 = vadd.f32 %v3010_v44, %v5774_v62  ;;  %v3012_v27 = vpop.f32.mrb[29].mxu0  ;;  %v3083_v29 = vpop.f32.mrb[29].mxu1  ;;  %v3088_v40 = vadd.f32 %v3081_v59, %v5787_v61 }
 0xea9   :  { %v3087_v57 = vadd.f32 %v3012_v27, %v5776_v23  ;;  %v3089_v50 = vadd.f32 %v3083_v29, %v5782_v2 }
 0xeaa   :  { %v3090_v22 = vsub.f32 0.0, %v3086_v14 }
 0xeab   :  { %v3096_v3 = vsub.f32 0.0, %v3087_v57  ;;  %v3103_v32 = vsub.f32 0.0, %v3089_v50 }
 0xeac   :  { %v3091_v42 = vmul.f32 1.442695, %v3090_v22 }
 0xead   :  { %v3097_v52 = vmul.f32 1.442695, %v3096_v3  ;;  %v3104_v30 = vmul.f32 1.442695, %v3103_v32 }
 0xeae   :  { %4866 = vpow2.f32 %v3091_v42 }
 0xeaf   :  { %4868 = vpow2.f32 %v3097_v52 }
 0xeb0   :  { %4870 = vpow2.f32 %v3104_v30 }
 0xeb1   :  { %4872 = vtanh.f32 %v3088_v40 }
 0xeb8   :  { %v4867_v63 = vpop.eup %4866 }
 0xeb9   :  { %v4869_v38 = vpop.eup %4868  ;;  %v3093_v25 = vadd.f32 1.0, %v4867_v63 }
 0xeba   :  { %v3099_v36 = vadd.f32 1.0, %v4869_v38  ;;  %v4871_v48 = vpop.eup %4870 }
 0xebb   :  { %4874 = vrcp.f32 %v3093_v25  ;;  %v4873_v49 = vpop.eup %4872  ;;  %v3106_v45 = vadd.f32 1.0, %v4871_v48 }
 0xebc   :  { %4876 = vrcp.f32 %v3099_v36 }
 0xebd   :  { %4878 = vrcp.f32 %v3106_v45 }
 0xec5   :  { %v4875_v60 = vpop.eup %4874 }
 0xec6   :  { %v4877_v47 = vpop.eup %4876  ;;  %v3110_v35 = vmul.f32 %v4875_v60, %v4873_v49 }
 0xec7   :  { %v3109_v5 = vmul.f32 %v4877_v47, %v5958_v54  ;;  %v4879_v58 = vpop.eup %4878 }
 0xec9   :  { %v6000_v1 = vadd.f32 %v3110_v35, %v3109_v5 }
 0xecb   :  { %4880 = vtanh.f32 %v6000_v1 }
 0xed5   :  { %v4881_v9 = vpop.eup %4880 }
 0xed6   :  { %v3113_v44 = vmul.f32 %v4881_v9, %v4879_v58 }
 0xed8   :  { %3179 = vmatmul.mubr.f32.vlgmr.msra.gmra.mrb[30].mxu0 %v3113_v44  ;;  %3459 = vst [vmem:[#allocation11 + $0x28] sm:$0xff] %v3113_v44  ;;  %3250 = vmatmul.mubr.f32.vlgmr.msra.gmra.mrb[30].mxu1 %v3113_v44 }
 0xed9   :  { %4522 = vmatpush1.bf16.msra.mxu0 %v5637_v24  ;;  %4554 = vmatpush1.bf16.msra.mxu1 %v5639_v28 }
 0xeda   :  { %4524 = vmatprep.subr.bf16.mxu0 %v5641_v37  ;;  %4556 = vmatprep.subr.bf16.mxu1 %v5643_v41 }
 0xedb   :  { %3348 = vmatprep.mubr.f32.mxu0 %v5063_v0  ;;  %3419 = vmatprep.mubr.f32.mxu1 %v5063_v0 }
 0xedd   :  { %4526 = vmatpush1.bf16.msra.mxu0 %v5647_v4  ;;  %4558 = vmatpush1.bf16.msra.mxu1 %v5649_v7 }
 0xede   :  { %4528 = vmatprep.subr.bf16.mxu0 %v5653_v21  ;;  %4560 = vmatprep.subr.bf16.mxu1 %v5655_v26 }
 0xee1   :  { %4530 = vmatpush1.bf16.msra.mxu0 %v5661_v46  ;;  %4562 = vmatpush1.bf16.msra.mxu1 %v5663_v13 }
 0xee2   :  { %4532 = vmatprep.subr.bf16.mxu0 %v5667_v20  ;;  %4564 = vmatprep.subr.bf16.mxu1 %v5669_v16 }
 0xee5   :  { %4534 = vmatpush1.bf16.msra.mxu0 %v5673_v6  ;;  %4566 = vmatpush1.bf16.msra.mxu1 %v5675_v8 }
 0xee6   :  { %4536 = vmatprep.subr.bf16.mxu0 %v5679_v31  ;;  %4568 = vmatprep.subr.bf16.mxu1 %v5681_v33 }
 0xee9   :  { %4538 = vmatpush1.bf16.msra.mxu0 %v5685_v55  ;;  %4570 = vmatpush1.bf16.msra.mxu1 %v5687_v51 }
 0xeea   :  { %4540 = vmatprep.subr.bf16.mxu0 %v5691_v15  ;;  %4572 = vmatprep.subr.bf16.mxu1 %v5693_v19 }
 0xeed   :  { %4542 = vmatpush1.bf16.msra.mxu0 %v5697_v53  ;;  %4574 = vmatpush1.bf16.msra.mxu1 %v5699_v56 }
 0xeee   :  { %4544 = vmatprep.subr.bf16.mxu0 %v5703_v12  ;;  %4576 = vmatprep.subr.bf16.mxu1 %v5705_v17 }
 0xef1   :  { %4546 = vmatpush1.bf16.msra.mxu0 %v5709_v43  ;;  %4578 = vmatpush1.bf16.msra.mxu1 %v5711_v18 }
 0xef2   :  { %4548 = vmatprep.subr.bf16.mxu0 %v5715_v10  ;;  %4580 = vmatprep.subr.bf16.mxu1 %v5717_v11 }
 0xef5   :  { %4550 = vmatpush1.bf16.msra.mxu0 %v5721_v34  ;;  %4582 = vmatpush1.bf16.msra.mxu1 %v5723_v39 }
 0xfab   :  { %v3180_v0 = vpop.f32.mrb[30].mxu0  ;;  %v3251_v24 = vpop.f32.mrb[30].mxu1 }
 0xfac   :  { %v3256_v28 = vadd.f32 %v3180_v0, %v5774_v62  ;;  %v3182_v37 = vpop.f32.mrb[31].mxu0  ;;  %v3253_v41 = vpop.f32.mrb[31].mxu1  ;;  %v3258_v6 = vadd.f32 %v3251_v24, %v5787_v61 }
 0xfad   :  { %v3257_v4 = vadd.f32 %v3182_v37, %v5776_v23  ;;  %v3259_v13 = vadd.f32 %v3253_v41, %v5782_v2 }
 0xfae   :  { %v3260_v7 = vsub.f32 0.0, %v3256_v28 }
 0xfaf   :  { %v3266_v21 = vsub.f32 0.0, %v3257_v4  ;;  %v3273_v20 = vsub.f32 0.0, %v3259_v13 }
 0xfb0   :  { %v3261_v26 = vmul.f32 1.442695, %v3260_v7 }
 0xfb1   :  { %v3267_v46 = vmul.f32 1.442695, %v3266_v21  ;;  %v3274_v16 = vmul.f32 1.442695, %v3273_v20 }
 0xfb2   :  { %4882 = vpow2.f32 %v3261_v26 }
 0xfb3   :  { %4884 = vpow2.f32 %v3267_v46 }
 0xfb4   :  { %4886 = vpow2.f32 %v3274_v16 }
 0xfb5   :  { %4888 = vtanh.f32 %v3258_v6 }
 0xfbc   :  { %v4883_v8 = vpop.eup %4882 }
 0xfbd   :  { %v4885_v31 = vpop.eup %4884  ;;  %v3263_v33 = vadd.f32 1.0, %v4883_v8 }
 0xfbe   :  { %v3269_v55 = vadd.f32 1.0, %v4885_v31  ;;  %v4887_v51 = vpop.eup %4886 }
 0xfbf   :  { %4890 = vrcp.f32 %v3263_v33  ;;  %v4889_v15 = vpop.eup %4888  ;;  %v3276_v12 = vadd.f32 1.0, %v4887_v51 }
 0xfc0   :  { %4892 = vrcp.f32 %v3269_v55 }
 0xfc1   :  { %4894 = vrcp.f32 %v3276_v12 }
 0xfc9   :  { %v4891_v19 = vpop.eup %4890 }
 0xfca   :  { %v4893_v53 = vpop.eup %4892  ;;  %v3280_v56 = vmul.f32 %v4891_v19, %v4889_v15 }
 0xfcb   :  { %v3279_v17 = vmul.f32 %v4893_v53, %v6000_v1  ;;  %v4895_v18 = vpop.eup %4894 }
 0xfcd   :  { %v3281_v43 = vadd.f32 %v3280_v56, %v3279_v17 }
 0xfcf   :  { %4896 = vtanh.f32 %v3281_v43 }
 0xfd9   :  { %v4897_v10 = vpop.eup %4896 }
 0xfda   :  { %v3283_v11 = vmul.f32 %v4897_v10, %v4895_v18 }
 0xfdc   :  { %3349 = vmatmul.mubr.f32.vlgmr.msra.gmra.mrb[32].mxu0 %v3283_v11  ;;  %3460 = vst [vmem:[#allocation11 + $0x30] sm:$0xff] %v3283_v11  ;;  %3420 = vmatmul.mubr.f32.vlgmr.msra.gmra.mrb[32].mxu1 %v3283_v11 }
0x10af   :  { %v3350_v34 = vpop.f32.mrb[32].mxu0  ;;  %v3421_v39 = vpop.f32.mrb[32].mxu1 }
0x10b0   :  { %v3426_v54 = vadd.f32 %v3350_v34, %v5774_v62  ;;  %v3352_v59 = vpop.f32.mrb[33].mxu0  ;;  %v3423_v14 = vpop.f32.mrb[33].mxu1  ;;  %v3428_v32 = vadd.f32 %v3421_v39, %v5787_v61 }
0x10b1   :  { %v3427_v27 = vadd.f32 %v3352_v59, %v5776_v23  ;;  %v3429_v42 = vadd.f32 %v3423_v14, %v5782_v2 }
0x10b2   :  { %v3430_v29 = vsub.f32 0.0, %v3426_v54 }
0x10b3   :  { %v3436_v57 = vsub.f32 0.0, %v3427_v27  ;;  %v3443_v52 = vsub.f32 0.0, %v3429_v42 }
0x10b4   :  { %v3431_v22 = vmul.f32 1.442695, %v3430_v29 }
0x10b5   :  { %v3437_v3 = vmul.f32 1.442695, %v3436_v57  ;;  %v3444_v50 = vmul.f32 1.442695, %v3443_v52 }
0x10b6   :  { %4898 = vpow2.f32 %v3431_v22 }
0x10b7   :  { %4900 = vpow2.f32 %v3437_v3 }
0x10b8   :  { %4902 = vpow2.f32 %v3444_v50 }
0x10b9   :  { %4904 = vtanh.f32 %v3428_v32 }
0x10c0   :  { %v4899_v30 = vpop.eup %4898 }
0x10c1   :  { %v4901_v40 = vpop.eup %4900  ;;  %v3433_v63 = vadd.f32 1.0, %v4899_v30 }
0x10c2   :  { %v3439_v62 = vadd.f32 1.0, %v4901_v40  ;;  %v4903_v23 = vpop.eup %4902 }
0x10c3   :  { %4906 = vrcp.f32 %v3433_v63  ;;  %v4905_v38 = vpop.eup %4904  ;;  %v3446_v2 = vadd.f32 1.0, %v4903_v23 }
0x10c4   :  { %4908 = vrcp.f32 %v3439_v62 }
0x10c5   :  { %4910 = vrcp.f32 %v3446_v2 }
0x10cd   :  { %v4907_v25 = vpop.eup %4906 }
0x10ce   :  { %v4909_v36 = vpop.eup %4908  ;;  %v3450_v48 = vmul.f32 %v4907_v25, %v4905_v38 }
0x10cf   :  { %v3449_v49 = vmul.f32 %v4909_v36, %v3281_v43  ;;  %v4911_v61 = vpop.eup %4910 }
0x10d1   :  { %v3451_v60 = vadd.f32 %v3450_v48, %v3449_v49 }
0x10d3   :  { %4912 = vtanh.f32 %v3451_v60 }
0x10dd   :  { %v4913_v47 = vpop.eup %4912 }
0x10de   :  { %v3453_v35 = vmul.f32 %v4913_v47, %v4911_v61 }
0x10e0   :  { %3461 = vst [vmem:[#allocation11 + $0x38] sm:$0xff] %v3453_v35 }
0x10e1   :  { %5035 = shalt.err (!%p5032_p2)
}
0x10e2   :  { %s5036_s20 = scalar_lea.hbm %s6063_s7, 1024 }
0x10e3   :  { %p5037_p3 = scmp.ne.s32.totalorder %s6063_s7, %s5036_s20  ;;  %p5040_p4 = scmp.lt.u32.totalorder %s5036_s20, %s6063_s7 }
0x10e5   :  { %p5042_p5 = pnand %p5040_p4, %p5037_p3 }
0x10e7   :  { %5045 = shalt.err (!%p5042_p5)
}
0x10e8   :  { %3471 = dma.vmem_to_hbm [thread:$0]  %s3469_s15, 1024, %s6063_s7, [#allocation4]  }
0x10e9   :  { %5052 = dma.done.wait [#allocation4], 1024  }
0x10ea   :  { %5053 = vsyncadd [#allocation4], 4294966272 }
0x10eb   :  { %3475 = vsyncpa [#allocation3], 1 }
0x10ec   :  { %3476 = vsyncpa [#allocation6], 1 }
0x10ed   :  { %3477 = vsyncpa [#allocation9], 1 }
0x10ee   :  { %3478 = vsyncpa [#allocation4], 1 }

</bundles_post_ra>
